<compile_context>
chip_gen: v7x
topology: tpu7x:2x2x1
jax: 0.10.0
libtpu: 0.0.40
codegen_flags: <defaults>
</compile_context>

<pallas_src>
import functools

import jax
import jax.numpy as jnp
from jax import lax
from jax.experimental import pallas as pl
from jax.experimental.pallas import tpu as pltpu


def _additive_kernel_body(a_ref, bt_ref, out_ref, *, exp_in_bf16):
    """sum_k exp(-||(x1 - x2)/ls_k||^2) for one (TN, TM) output tile.

    a_ref  : (K, TN, D+2)  A_k   = [2*x1*w_k | -r1_k | -1]
    bt_ref : (K, D+2, TM)  B_k^T = [x2^T ; 1 ; r2_k]
    out_ref: (TN, TM)      output tile
    """
    num_kernels = a_ref.shape[0]
    total = None
    # Static (unrolled) Python loop over the small, fixed number of sub-kernels.
    for k in range(num_kernels):
        # One MXU contraction yields negsq = 2*cross - r1 - r2 directly; the
        # rank-1 norm terms and the factor 2 were folded into A_k / B_k^T by
        # the wrapper, so no per-tile broadcast adds / mul+sub are needed.
        negsq = lax.dot_general(
            a_ref[k], bt_ref[k],
            dimension_numbers=(((1,), (0,)), ((), ())),   # NN: no RHS relayout
            preferred_element_type=jnp.float32,
        )                                                  # (TN, TM)
        negsq = jnp.minimum(negsq, 0.0)   # guard: cancellation can give sq < 0
        if exp_in_bf16:
            # bf16 EUP path (v6e/v7x only; no bf16 EUP on v5e). ~0.4% rel err.
            term = jnp.exp(negsq.astype(jnp.bfloat16)).astype(jnp.float32)
        else:
            term = jnp.exp(negsq)          # RBF for sub-kernel k
        total = term if total is None else total + term   # AdditiveKernel: SUM

    out_ref[...] = total.astype(out_ref.dtype)


def _pick_tiles(n, m, tn_pref=512, tm_pref=512):
    """Prefer 512x512 tiles; shrink tn for small problems so the grid has >=4
    programs (keeps both v7x TensorCores pipelined, >=2 steps/core)."""
    def fit(dim, pref):
        t = min(pref, dim)
        while dim % t != 0 and t > 8:
            t //= 2
        return t

    tn = fit(n, tn_pref)
    tm = fit(m, tm_pref)
    while (n // tn) * (m // tm) < 4 and tn >= 256 and n % (tn // 2) == 0:
        tn //= 2
    return tn, tm


def additive_kernel(x1, x2, lengthscales, *, tn=None, tm=None,
                    out_dtype=jnp.float32, exp_in_bf16=False):
    """AdditiveKernel forward: elementwise sum of sub-kernel Gram matrices.

    x1           : (N, D) float32
    x2           : (M, D) float32
    lengthscales : (K, D) float32  (exp of each sub-kernel's log_lengthscale)
    returns      : (N, M) Gram matrix (out_dtype, default float32)
    """
    N, D = x1.shape
    M, D2 = x2.shape
    assert D == D2, "x1 and x2 must have the same number of dimensions!"
    K = lengthscales.shape[0]

    auto_tn, auto_tm = _pick_tiles(N, M)
    tn = auto_tn if tn is None else min(tn, N)
    tm = auto_tm if tm is None else min(tm, M)
    assert N % tn == 0 and M % tm == 0, "ragged shapes not supported"
    assert tn % 8 == 0 or tn == N
    assert tm % 128 == 0 or tm == M

    x1 = x1.astype(jnp.float32)
    x2 = x2.astype(jnp.float32)
    w = 1.0 / (lengthscales.astype(jnp.float32) ** 2)     # (K, D)

    # Tiny O(K*(N+M)*D) hoisted precompute: fold the ARD weights, the weighted
    # row norms and the factor 2 into the matmul operands (keep f32: bf16
    # operands would blow the 1e-4 accuracy of the expanded squared distance).
    r1 = jnp.einsum("nd,kd->kn", x1 * x1, w)              # (K, N)
    r2 = jnp.einsum("md,kd->km", x2 * x2, w)              # (K, M)

    a = jnp.concatenate([
        2.0 * x1[None, :, :] * w[:, None, :],             # (K, N, D)
        -r1[:, :, None],                                  # (K, N, 1)
        -jnp.ones((K, N, 1), jnp.float32),                # (K, N, 1)
    ], axis=-1)                                           # (K, N, D+2)

    x2t = jnp.transpose(x2)                               # (D, M): RHS pre-transposed
    bt = jnp.concatenate([
        jnp.broadcast_to(x2t[None, :, :], (K, D, M)),     # (K, D, M)
        jnp.ones((K, 1, M), jnp.float32),                 # (K, 1, M)
        r2[:, None, :],                                   # (K, 1, M)
    ], axis=1)                                            # (K, D+2, M)

    grid = (N // tn, M // tm)
    kernel = functools.partial(_additive_kernel_body, exp_in_bf16=exp_in_bf16)
    return pl.pallas_call(
        kernel,
        out_shape=jax.ShapeDtypeStruct((N, M), out_dtype),
        grid_spec=pltpu.PrefetchScalarGridSpec(
            num_scalar_prefetch=0,
            grid=grid,
            in_specs=[
                pl.BlockSpec((K, tn, D + 2), lambda i, j: (0, i, 0)),  # A tile
                pl.BlockSpec((K, D + 2, tm), lambda i, j: (0, 0, j)),  # B^T tile
            ],
            out_specs=pl.BlockSpec((tn, tm), lambda i, j: (i, j)),
        ),
        compiler_params=pltpu.CompilerParams(
            dimension_semantics=("parallel", "parallel"),
        ),
    )(a, bt)


def additive_kernel_reference(x1, x2, lengthscales):
    """Pure-JAX reference of the same semantics (for verification)."""
    acc = jnp.zeros((x1.shape[0], x2.shape[0]), jnp.float32)
    for k in range(lengthscales.shape[0]):
        diff = (x1[:, None, :] - x2[None, :, :]) / lengthscales[k][None, None, :]
        acc = acc + jnp.exp(-jnp.sum(diff * diff, axis=-1))
    return acc


if __name__ == "__main__":
    key = jax.random.PRNGKey(0)
    k1, k2 = jax.random.split(key)

    # Small synthetic GP inputs: N/M points, D features.  With the tile
    # heuristic this gives a (4, 1) grid -> 2 pipelined steps per v7x core.
    N, M, D = 1024, 512, 16

    x1 = jax.random.normal(k1, (N, D), dtype=jnp.float32)
    x2 = jax.random.normal(k2, (M, D), dtype=jnp.float32)

    # Deterministic parameter init mirroring Kernel.__init__: log_lengthscale
    # is a zero tensor per sub-kernel, perturbed so the two sub-kernels differ.
    log_ls0 = jnp.zeros((D,), jnp.float32)                        # kernel 0: ls = 1
    log_ls1 = jnp.zeros((D,), jnp.float32) + 0.5                  # kernel 1: ls = e^0.5
    lengthscales = jnp.exp(jnp.stack([log_ls0, log_ls1], axis=0))  # (2, D)

    # TODO(synk): gpytorch's lazy-evaluation machinery (LazyEvaluatedKernelVariable,
    # ZeroLazyVariable) and active_dims index_select have no Pallas equivalent;
    # the dense Gram sum is computed directly.

    out = additive_kernel(x1, x2, lengthscales)
    out = jax.block_until_ready(out)

    ref = additive_kernel_reference(x1, x2, lengthscales)
    assert out.shape == (N, M) and out.dtype == jnp.float32
    assert jnp.allclose(out, ref, atol=1e-4, rtol=1e-4)

    print("KERNEL_OK")
</pallas_src>

<mosaic_0001>
module attributes {stable_mosaic.version = 11 : i64} {
  func.func @_additive_kernel_body(%arg0: i32, %arg1: i32, %arg2: memref<2x256x18xf32, #tpu.memory_space<vmem>>, %arg3: memref<2x18x512xf32, #tpu.memory_space<vmem>>, %arg4: memref<256x512xf32, #tpu.memory_space<vmem>>) attributes {dimension_semantics = [#tpu.dimension_semantics<parallel>, #tpu.dimension_semantics<parallel>], iteration_bounds = array<i64: 4, 1>, scalar_prefetch = 0 : i64, scratch_operands = 0 : i64, tpu.core_type = #tpu.core_type<tc>, window_params = [{transform_indices = @transform_0, window_bounds = array<i64: 2, 256, 18>}, {transform_indices = @transform_1, window_bounds = array<i64: 2, 18, 512>}, {transform_indices = @transform_2, window_bounds = array<i64: 256, 512>}]} {
    %c0 = arith.constant 0 : index
    %c0_0 = arith.constant 0 : index
    %c0_1 = arith.constant 0 : index
    %0 = vector.load %arg2[%c0, %c0_0, %c0_1] : memref<2x256x18xf32, #tpu.memory_space<vmem>>, vector<1x256x18xf32>
    %1 = vector.shape_cast %0 : vector<1x256x18xf32> to vector<256x18xf32>
    %c0_2 = arith.constant 0 : index
    %c0_3 = arith.constant 0 : index
    %c0_4 = arith.constant 0 : index
    %2 = vector.load %arg3[%c0_2, %c0_3, %c0_4] : memref<2x18x512xf32, #tpu.memory_space<vmem>>, vector<1x18x512xf32>
    %3 = vector.shape_cast %2 : vector<1x18x512xf32> to vector<18x512xf32>
    %cst = arith.constant dense<0.000000e+00> : vector<256x512xf32>
    %4 = tpu.matmul %1, %3, %cst {dimension_numbers = #tpu.dot_dimension_numbers<[1], [0], [0], [1], [0, 0, 1, 1], [], []>} : vector<256x18xf32>, vector<18x512xf32>, vector<256x512xf32> -> vector<256x512xf32>
    %cst_5 = arith.constant 0.000000e+00 : f32
    %5 = vector.broadcast %cst_5 : f32 to vector<256x512xf32>
    %6 = arith.minimumf %4, %5 : vector<256x512xf32>
    %7 = math.exp %6 : vector<256x512xf32>
    %c1 = arith.constant 1 : index
    %c0_6 = arith.constant 0 : index
    %c0_7 = arith.constant 0 : index
    %8 = vector.load %arg2[%c1, %c0_6, %c0_7] : memref<2x256x18xf32, #tpu.memory_space<vmem>>, vector<1x256x18xf32>
    %9 = vector.shape_cast %8 : vector<1x256x18xf32> to vector<256x18xf32>
    %c1_8 = arith.constant 1 : index
    %c0_9 = arith.constant 0 : index
    %c0_10 = arith.constant 0 : index
    %10 = vector.load %arg3[%c1_8, %c0_9, %c0_10] : memref<2x18x512xf32, #tpu.memory_space<vmem>>, vector<1x18x512xf32>
    %11 = vector.shape_cast %10 : vector<1x18x512xf32> to vector<18x512xf32>
    %cst_11 = arith.constant dense<0.000000e+00> : vector<256x512xf32>
    %12 = tpu.matmul %9, %11, %cst_11 {dimension_numbers = #tpu.dot_dimension_numbers<[1], [0], [0], [1], [0, 0, 1, 1], [], []>} : vector<256x18xf32>, vector<18x512xf32>, vector<256x512xf32> -> vector<256x512xf32>
    %cst_12 = arith.constant 0.000000e+00 : f32
    %13 = vector.broadcast %cst_12 : f32 to vector<256x512xf32>
    %14 = arith.minimumf %12, %13 : vector<256x512xf32>
    %15 = math.exp %14 : vector<256x512xf32>
    %16 = arith.addf %7, %15 : vector<256x512xf32>
    %c0_13 = arith.constant 0 : index
    %c0_14 = arith.constant 0 : index
    %17 = vector.load %arg4[%c0_13, %c0_14] : memref<256x512xf32, #tpu.memory_space<vmem>>, vector<256x512xf32>
    tpu.vector_store %arg4[%c0_13, %c0_14], %16 {strides = array<i32>} : memref<256x512xf32, #tpu.memory_space<vmem>>, vector<256x512xf32>,
    return
  }
  func.func @transform_0(%arg0: i32, %arg1: i32) -> (i32, i32, i32) {
    %c0_i32 = arith.constant 0 : i32
    %c0_i32_0 = arith.constant 0 : i32
    %c0_i32_1 = arith.constant 0 : i32
    return %c0_i32, %arg0, %c0_i32_0 : i32, i32, i32
  }
  func.func @transform_1(%arg0: i32, %arg1: i32) -> (i32, i32, i32) {
    %c0_i32 = arith.constant 0 : i32
    %c0_i32_0 = arith.constant 0 : i32
    %c0_i32_1 = arith.constant 0 : i32
    return %c0_i32, %c0_i32_0, %arg1 : i32, i32, i32
  }
  func.func @transform_2(%arg0: i32, %arg1: i32) -> (i32, i32) {
    %c0_i32 = arith.constant 0 : i32
    return %arg0, %arg1 : i32, i32
  }
}

</mosaic_0001>

<bundles_post_ra>
// kernel: tpu_custom_call.1
= control target key start
LH: loop header
LB: loop body
LE: loop exit
PB: predicated region body
PF: predicated region fallthrough
CT: control target
= control target key end

     0   :  { %7 = vsyncpa [#allocation4], 0  ;;  %s4996_s0 = inlined_call_operand.vmem [shape: f32[2,1024,18], index: 0, kind: input, shape index: {}]   ;;  %s4997_s1 = inlined_call_operand.vmem [shape: f32[2,18,512], index: 1, kind: input, shape index: {}]   ;;  %s4998_s2 = inlined_call_operand.hbm [shape: f32[1024,512], index: 2, kind: output, shape index: {}]  }
   0x1   :  { %9 = vsyncpa [#allocation4 + $0x1], 0  ;;  %s3824_s9 = smov 0   ;;  %s3826_s10 = smov 0  }
   0x2   :  { %s3828_s11 = smov 0   ;;  %s3830_s12 = smov 0  }
   0x3   :  { %s3832_s13 = smov 0   ;;  %s3834_s14 = smov 0  }
   0x4 LB: > { %s2939_s15 = sadd.s32 4294967295, %s3803_s14   ;;  %s2940_s16 = sadd.s32 4294967294, %s3803_s14   ;;  %s3803_s14 = sphi %s3834_s14, %s15_s14   ;;  %s3799_s13 = sphi %s3832_s13, %s5175_s13   ;;  %s3795_s12 = sphi %s3830_s12, %s5174_s12   ;;  %s3791_s11 = sphi %s3828_s11, %s5173_s11   ;;  %s3787_s10 = sphi %s3826_s10, %s5172_s10   ;;  %s3783_s9 = sphi %s3824_s9, %s5171_s9  }
   0x5   : > { %s27_s17 = sadd.s32 1, %s3799_s13  ;;  %s34_s18 = sadd.s32 1, %s3791_s11 }
   0x6   : > { %p29_p0 = scmp.ge.s32.totalorder %s27_s17, 4  ;;  %p41_p1 = scmp.ne.s32.totalorder %s3791_s11, %s3787_s10 }
   0x7   : > { %p42_p2 = scmp.eq.s32.totalorder %s3803_s14, 0  ;;  %p99_p3 = scmp.eq.s32.totalorder %s2939_s15, 3 }
   0x8   : > { %s5177_s17 = smov (%p29_p0, %s27_s17), 0  ;;  %p104_p6 = scmp.ne.s32.totalorder %s3787_s10, %s3783_s9 }
   0x9   : > { %p43_p4 = por %p42_p2, %p41_p1  ;;  %p3863_p5 = por %p99_p3, %p41_p1 }
   0xa   : > { %s31_s20 = ssub.s32 %s3799_s13, %s5177_s17  ;;  %p105_p8 = scmp.eq.s32.totalorder %s2940_s16, 3 }
   0xb   : > { %p32_p7 = scmp.eq.s32.totalorder %s31_s20, 0  ;;  %p2943_p10 = scmp.ge.s32.totalorder %s3803_s14, 4 }
   0xc   : > { %p3874_p9 = por %p105_p8, %p104_p6 }
   0xd   : > { %s3872_s21 = scalar_select %p32_p7, %s3791_s11, %s34_s18  }
   0xe   : > { %130 = sbr.rel (%p2943_p10) target bundleno = 57 (0x39), region = 20 }
  0x15   : > { %133 = sbr.rel (!%p43_p4) target bundleno = 57 (0x39), region = 24  ;;  %s135_s23 = sand.u32 (%p43_p4), 1, %s3791_s11  }
  0x16   : > { %s3136_s24 = sshll.u32 (%p43_p4), %s3799_s13, 8  ;;  %s2944_s25 = sshll.u32 (%p43_p4), %s135_s23, 9 }
  0x17   : > { %s3884_s28 = scalar_lea.vmem (%p43_p4), %s4996_s0, %s3136_s24  ;;  %s3889_s29 = scalar_lea.vmem (%p43_p4), [#allocation2], %s2944_s25 }
  0x18   : > { %v294_v0 = vld [vmem:[%s3884_s28] sm:$0xff] (%p43_p4)  ;;  %v296_v1 = vld [vmem:[%s3884_s28 + $0x8] sm:$0xff] (%p43_p4)  ;;  %v298_v2 = vld [vmem:[%s3884_s28 + $0x10] sm:$0xff] (%p43_p4) }
  0x19   : > { %295 = vst [vmem:[%s3889_s29] sm:$0xff] (%p43_p4), %v294_v0  ;;  %297 = vst [vmem:[%s3889_s29 + $0x8] sm:$0xff] (%p43_p4), %v296_v1  ;;  %v300_v3 = vld [vmem:[%s3884_s28 + $0x18] sm:$0xff] (%p43_p4)  ;;  %v302_v4 = vld [vmem:[%s3884_s28 + $0x20] sm:$0xff] (%p43_p4) }
  0x1a   : > { %299 = vst [vmem:[%s3889_s29 + $0x10] sm:$0xff] (%p43_p4), %v298_v2  ;;  %v304_v5 = vld [vmem:[%s3884_s28 + $0x28] sm:$0xff] (%p43_p4)  ;;  %301 = vst [vmem:[%s3889_s29 + $0x18] sm:$0xff] (%p43_p4), %v300_v3  ;;  %v306_v6 = vld [vmem:[%s3884_s28 + $0x30] sm:$0xff] (%p43_p4) }
  0x1b   : > { %303 = vst [vmem:[%s3889_s29 + $0x20] sm:$0xff] (%p43_p4), %v302_v4  ;;  %305 = vst [vmem:[%s3889_s29 + $0x28] sm:$0xff] (%p43_p4), %v304_v5  ;;  %v308_v7 = vld [vmem:[%s3884_s28 + $0x38] sm:$0xff] (%p43_p4)  ;;  %v310_v8 = vld [vmem:[%s3884_s28 + $0x40] sm:$0xff] (%p43_p4) }
  0x1c   : > { %307 = vst [vmem:[%s3889_s29 + $0x30] sm:$0xff] %v306_v6  ;;  %309 = vst [vmem:[%s3889_s29 + $0x38] sm:$0xff] %v308_v7  ;;  %v312_v9 = vld [vmem:[%s3884_s28 + $0x48] sm:$0xff]  ;;  %v314_v10 = vld [vmem:[%s3884_s28 + $0x50] sm:$0xff] }
  0x1d   : > { %311 = vst [vmem:[%s3889_s29 + $0x40] sm:$0xff] %v310_v8  ;;  %v316_v11 = vld [vmem:[%s3884_s28 + $0x58] sm:$0xff]  ;;  %313 = vst [vmem:[%s3889_s29 + $0x48] sm:$0xff] %v312_v9  ;;  %v318_v12 = vld [vmem:[%s3884_s28 + $0x60] sm:$0xff] }
  0x1e   : > { %315 = vst [vmem:[%s3889_s29 + $0x50] sm:$0xff] %v314_v10  ;;  %317 = vst [vmem:[%s3889_s29 + $0x58] sm:$0xff] %v316_v11  ;;  %v320_v13 = vld [vmem:[%s3884_s28 + $0x68] sm:$0xff]  ;;  %v322_v14 = vld [vmem:[%s3884_s28 + $0x70] sm:$0xff] }
  0x1f   : > { %319 = vst [vmem:[%s3889_s29 + $0x60] sm:$0xff] %v318_v12  ;;  %321 = vst [vmem:[%s3889_s29 + $0x68] sm:$0xff] %v320_v13  ;;  %v324_v15 = vld [vmem:[%s3884_s28 + $0x78] sm:$0xff]  ;;  %v326_v16 = vld [vmem:[%s3884_s28 + $0x80] sm:$0xff] }
  0x20   : > { %323 = vst [vmem:[%s3889_s29 + $0x70] sm:$0xff] %v322_v14  ;;  %v328_v17 = vld [vmem:[%s3884_s28 + $0x88] sm:$0xff]  ;;  %325 = vst [vmem:[%s3889_s29 + $0x78] sm:$0xff] %v324_v15  ;;  %v330_v18 = vld [vmem:[%s3884_s28 + $0x90] sm:$0xff] }
  0x21   : > { %327 = vst [vmem:[%s3889_s29 + $0x80] sm:$0xff] %v326_v16  ;;  %329 = vst [vmem:[%s3889_s29 + $0x88] sm:$0xff] %v328_v17  ;;  %v332_v19 = vld [vmem:[%s3884_s28 + $0x98] sm:$0xff]  ;;  %v334_v20 = vld [vmem:[%s3884_s28 + $0xa0] sm:$0xff] }
  0x22   : > { %331 = vst [vmem:[%s3889_s29 + $0x90] sm:$0xff] %v330_v18  ;;  %333 = vst [vmem:[%s3889_s29 + $0x98] sm:$0xff] %v332_v19  ;;  %v336_v21 = vld [vmem:[%s3884_s28 + $0xa8] sm:$0xff]  ;;  %v338_v22 = vld [vmem:[%s3884_s28 + $0xb0] sm:$0xff] }
  0x23   : > { %335 = vst [vmem:[%s3889_s29 + $0xa0] sm:$0xff] %v334_v20  ;;  %v340_v23 = vld [vmem:[%s3884_s28 + $0xb8] sm:$0xff]  ;;  %337 = vst [vmem:[%s3889_s29 + $0xa8] sm:$0xff] %v336_v21  ;;  %v342_v24 = vld [vmem:[%s3884_s28 + $0xc0] sm:$0xff] }
  0x24   : > { %339 = vst [vmem:[%s3889_s29 + $0xb0] sm:$0xff] %v338_v22  ;;  %341 = vst [vmem:[%s3889_s29 + $0xb8] sm:$0xff] %v340_v23  ;;  %v344_v25 = vld [vmem:[%s3884_s28 + $0xc8] sm:$0xff]  ;;  %v346_v26 = vld [vmem:[%s3884_s28 + $0xd0] sm:$0xff] }
  0x25   : > { %343 = vst [vmem:[%s3889_s29 + $0xc0] sm:$0xff] %v342_v24  ;;  %345 = vst [vmem:[%s3889_s29 + $0xc8] sm:$0xff] %v344_v25  ;;  %v348_v27 = vld [vmem:[%s3884_s28 + $0xd8] sm:$0xff]  ;;  %v350_v28 = vld [vmem:[%s3884_s28 + $0xe0] sm:$0xff] }
  0x26   : > { %347 = vst [vmem:[%s3889_s29 + $0xd0] sm:$0xff] %v346_v26  ;;  %v352_v29 = vld [vmem:[%s3884_s28 + $0xe8] sm:$0xff]  ;;  %349 = vst [vmem:[%s3889_s29 + $0xd8] sm:$0xff] %v348_v27  ;;  %v354_v30 = vld [vmem:[%s3884_s28 + $0xf0] sm:$0xff] }
  0x27   : > { %351 = vst [vmem:[%s3889_s29 + $0xe0] sm:$0xff] %v350_v28  ;;  %353 = vst [vmem:[%s3889_s29 + $0xe8] sm:$0xff] %v352_v29  ;;  %v356_v31 = vld [vmem:[%s3884_s28 + $0xf8] sm:$0xff]  ;;  %v358_v32 = vld [vmem:[%s3884_s28 + $0x400] sm:$0xff] }
  0x28   : > { %355 = vst [vmem:[%s3889_s29 + $0xf0] sm:$0xff] %v354_v30  ;;  %357 = vst [vmem:[%s3889_s29 + $0xf8] sm:$0xff] %v356_v31  ;;  %v360_v33 = vld [vmem:[%s3884_s28 + $0x408] sm:$0xff]  ;;  %v362_v34 = vld [vmem:[%s3884_s28 + $0x410] sm:$0xff] }
  0x29   : > { %359 = vst [vmem:[%s3889_s29 + $0x100] sm:$0xff] %v358_v32  ;;  %v364_v35 = vld [vmem:[%s3884_s28 + $0x418] sm:$0xff]  ;;  %361 = vst [vmem:[%s3889_s29 + $0x108] sm:$0xff] %v360_v33  ;;  %v366_v36 = vld [vmem:[%s3884_s28 + $0x420] sm:$0xff] }
  0x2a   : > { %363 = vst [vmem:[%s3889_s29 + $0x110] sm:$0xff] %v362_v34  ;;  %365 = vst [vmem:[%s3889_s29 + $0x118] sm:$0xff] %v364_v35  ;;  %v368_v37 = vld [vmem:[%s3884_s28 + $0x428] sm:$0xff]  ;;  %v370_v38 = vld [vmem:[%s3884_s28 + $0x430] sm:$0xff] }
  0x2b   : > { %367 = vst [vmem:[%s3889_s29 + $0x120] sm:$0xff] %v366_v36  ;;  %369 = vst [vmem:[%s3889_s29 + $0x128] sm:$0xff] %v368_v37  ;;  %v372_v39 = vld [vmem:[%s3884_s28 + $0x438] sm:$0xff]  ;;  %v374_v40 = vld [vmem:[%s3884_s28 + $0x440] sm:$0xff] }
  0x2c   : > { %371 = vst [vmem:[%s3889_s29 + $0x130] sm:$0xff] %v370_v38  ;;  %v376_v41 = vld [vmem:[%s3884_s28 + $0x448] sm:$0xff]  ;;  %373 = vst [vmem:[%s3889_s29 + $0x138] sm:$0xff] %v372_v39  ;;  %v378_v42 = vld [vmem:[%s3884_s28 + $0x450] sm:$0xff] }
  0x2d   : > { %375 = vst [vmem:[%s3889_s29 + $0x140] sm:$0xff] %v374_v40  ;;  %377 = vst [vmem:[%s3889_s29 + $0x148] sm:$0xff] %v376_v41  ;;  %v380_v43 = vld [vmem:[%s3884_s28 + $0x458] sm:$0xff]  ;;  %v382_v44 = vld [vmem:[%s3884_s28 + $0x460] sm:$0xff] }
  0x2e   : > { %379 = vst [vmem:[%s3889_s29 + $0x150] sm:$0xff] %v378_v42  ;;  %381 = vst [vmem:[%s3889_s29 + $0x158] sm:$0xff] %v380_v43  ;;  %v384_v45 = vld [vmem:[%s3884_s28 + $0x468] sm:$0xff]  ;;  %v386_v46 = vld [vmem:[%s3884_s28 + $0x470] sm:$0xff] }
  0x2f   : > { %383 = vst [vmem:[%s3889_s29 + $0x160] sm:$0xff] %v382_v44  ;;  %v388_v47 = vld [vmem:[%s3884_s28 + $0x478] sm:$0xff]  ;;  %385 = vst [vmem:[%s3889_s29 + $0x168] sm:$0xff] %v384_v45  ;;  %v390_v48 = vld [vmem:[%s3884_s28 + $0x480] sm:$0xff] }
  0x30   : > { %387 = vst [vmem:[%s3889_s29 + $0x170] sm:$0xff] %v386_v46  ;;  %389 = vst [vmem:[%s3889_s29 + $0x178] sm:$0xff] %v388_v47  ;;  %v392_v49 = vld [vmem:[%s3884_s28 + $0x488] sm:$0xff]  ;;  %v394_v50 = vld [vmem:[%s3884_s28 + $0x490] sm:$0xff] }
  0x31   : > { %391 = vst [vmem:[%s3889_s29 + $0x180] sm:$0xff] %v390_v48  ;;  %393 = vst [vmem:[%s3889_s29 + $0x188] sm:$0xff] %v392_v49  ;;  %v396_v51 = vld [vmem:[%s3884_s28 + $0x498] sm:$0xff]  ;;  %v398_v52 = vld [vmem:[%s3884_s28 + $0x4a0] sm:$0xff] }
  0x32   : > { %395 = vst [vmem:[%s3889_s29 + $0x190] sm:$0xff] %v394_v50  ;;  %v400_v53 = vld [vmem:[%s3884_s28 + $0x4a8] sm:$0xff]  ;;  %397 = vst [vmem:[%s3889_s29 + $0x198] sm:$0xff] %v396_v51  ;;  %v402_v54 = vld [vmem:[%s3884_s28 + $0x4b0] sm:$0xff] }
  0x33   : > { %399 = vst [vmem:[%s3889_s29 + $0x1a0] sm:$0xff] %v398_v52  ;;  %401 = vst [vmem:[%s3889_s29 + $0x1a8] sm:$0xff] %v400_v53  ;;  %v404_v55 = vld [vmem:[%s3884_s28 + $0x4b8] sm:$0xff]  ;;  %v406_v56 = vld [vmem:[%s3884_s28 + $0x4c0] sm:$0xff] }
  0x34   : > { %403 = vst [vmem:[%s3889_s29 + $0x1b0] sm:$0xff] %v402_v54  ;;  %405 = vst [vmem:[%s3889_s29 + $0x1b8] sm:$0xff] %v404_v55  ;;  %v408_v57 = vld [vmem:[%s3884_s28 + $0x4c8] sm:$0xff]  ;;  %v410_v58 = vld [vmem:[%s3884_s28 + $0x4d0] sm:$0xff] }
  0x35   : > { %407 = vst [vmem:[%s3889_s29 + $0x1c0] sm:$0xff] %v406_v56  ;;  %v412_v59 = vld [vmem:[%s3884_s28 + $0x4d8] sm:$0xff]  ;;  %409 = vst [vmem:[%s3889_s29 + $0x1c8] sm:$0xff] %v408_v57  ;;  %v414_v60 = vld [vmem:[%s3884_s28 + $0x4e0] sm:$0xff] }
  0x36   : > { %411 = vst [vmem:[%s3889_s29 + $0x1d0] sm:$0xff] %v410_v58  ;;  %413 = vst [vmem:[%s3889_s29 + $0x1d8] sm:$0xff] %v412_v59  ;;  %v416_v61 = vld [vmem:[%s3884_s28 + $0x4e8] sm:$0xff]  ;;  %v418_v62 = vld [vmem:[%s3884_s28 + $0x4f0] sm:$0xff] }
  0x37   : > { %415 = vst [vmem:[%s3889_s29 + $0x1e0] sm:$0xff] %v414_v60  ;;  %417 = vst [vmem:[%s3889_s29 + $0x1e8] sm:$0xff] %v416_v61  ;;  %v420_v63 = vld [vmem:[%s3884_s28 + $0x4f8] sm:$0xff] }
  0x38   : > { %419 = vst [vmem:[%s3889_s29 + $0x1f0] sm:$0xff] %v418_v62  ;;  %421 = vst [vmem:[%s3889_s29 + $0x1f8] sm:$0xff] %v420_v63 }
  0x39 PF: > { %p2947_p11 = scmp.ge.s32.totalorder %s3803_s14, 1  ;;  %p426_p12 = scmp.lt.s32.totalorder %s3803_s14, 5 }
  0x3b   : > { %p427_p13 = pnand %p2947_p11, %p426_p12 }
  0x3d   : > { %430 = sbr.rel (%p427_p13) target bundleno = 577 (0x241), region = 62 }
  0x44   : > { %v501_v0 = vld [vmem:[%s4997_s1 + $0x8] sm:$0xff]  ;;  %v503_v2 = vld [vmem:[%s4997_s1 + $0x18] sm:$0xff]  ;;  %s4028_s8 = sand.u32 1, %s3787_s10   ;;  %v500_v5 = vld [vmem:[%s4997_s1] sm:$0xff]  ;;  %v3805_v7 = vmov 0.0   ;;  %vm609_vm0 = vcmask 1041408  }
  0x45   : > { %v505_v1 = vld [vmem:[%s4997_s1 + $0x28] sm:$0xff]  ;;  %v507_v4 = vld [vmem:[%s4997_s1 + $0x38] sm:$0xff]  ;;  %v504_v6 = vld [vmem:[%s4997_s1 + $0x20] sm:$0xff]  ;;  %686 = vmatprep.mubr.f32.mxu0 %v3805_v7  ;;  %943 = vmatprep.mubr.f32.mxu1 %v3805_v7  ;;  %s2948_s25 = sshll.u32 %s4028_s8, 9  ;;  %vm512_vm1 = vcmask 146432   ;;  %s3138_s3 = sshll.u32 %s3795_s12, 14 }
  0x46   : > { %v3139_v3 = vpack.c.bf16 %v505_v1, %v501_v0  ;;  %v3143_v8 = vpack.c.bf16 %v507_v4, %v503_v2  ;;  %v3141_v9 = vpack.c.bf16 %v504_v6, %v500_v5  ;;  %v502_v10 = vld [vmem:[%s4997_s1 + $0x10] sm:$0xff]  ;;  %v509_v12 = vld [vmem:[%s4997_s1 + $0x48] sm:$0x3]  ;;  %v511_v14 = vld [vmem:[%s4997_s1 + $0x58] sm:$0x3]  ;;  %s4060_s18 = scalar_lea.vmem [#allocation2], %s2948_s25  ;;  %s4942_s12 = scalar_lea.hbm %s4998_s2, %s3138_s3 }
  0x47   : > { %v506_v11 = vld [vmem:[%s4997_s1 + $0x30] sm:$0xff]  ;;  %v508_v15 = vld [vmem:[%s4997_s1 + $0x40] sm:$0x3]  ;;  %v3051_v18 = vld [vmem:[%s4997_s1 + $0x68] sm:$0xff]  ;;  %s2829_s7 = scalar_lea.sflag [#allocation4], %s4028_s8  ;;  %s3806_s16 = smov [#allocation3]  }
  0x48   : > { %3140 = vmatprep.subr.bf16.mxu0 %v3139_v3  ;;  %v3145_v13 = vpack.c.bf16 %v506_v11, %v502_v10  ;;  %3144 = vmatprep.subr.bf16.mxu1 %v3143_v8  ;;  %v510_v16 = vld [vmem:[%s4997_s1 + $0x50] sm:$0x3]  ;;  %v468_v17 = vld [vmem:[%s4060_s18] sm:$0xff]  ;;  %v3055_v19 = vld [vmem:[%s4997_s1 + $0x88] sm:$0xff]  ;;  %s3729_s20 = sshll.u32 %s3806_s16, 4  ;;  %s3730_s20 = int_to_ptr.vmem [resolvable:$false] %s3729_s20 }
  0x49   : > { %3142 = vmatpush1.bf16.msra.mxu0 %v3141_v9  ;;  %v3053_v20 = vld [vmem:[%s4997_s1 + $0x78] sm:$0xff]  ;;  %v3050_v22 = vld [vmem:[%s4997_s1 + $0x60] sm:$0xff]  ;;  %v3147_v23 = vpack.c.bf16 %v3055_v19, %v3051_v18  ;;  %v3052_v25 = vld [vmem:[%s4997_s1 + $0x70] sm:$0xff]  ;;  %s3731_s23 = scalar_lea.vmem %s3730_s20, 32768 }
  0x4a   : > { %3146 = vmatpush1.bf16.msra.mxu1 %v3145_v13  ;;  %2950 = vmatprep.subr.msk.mxu0 %vm609_vm0, %v509_v12  ;;  %v3057_v21 = vld [vmem:[%s4997_s1 + $0x98] sm:$0xff]  ;;  %v3054_v24 = vld [vmem:[%s4997_s1 + $0x80] sm:$0xff]  ;;  %v3056_v26 = vld [vmem:[%s4997_s1 + $0x90] sm:$0xff] }
  0x4b   : > { %2984 = vmatprep.subr.msk.mxu1 %vm609_vm0, %v511_v14  ;;  %v3151_v27 = vpack.c.bf16 %v3057_v21, %v3053_v20  ;;  %v3149_v28 = vpack.c.bf16 %v3054_v24, %v3050_v22  ;;  %v3153_v29 = vpack.c.bf16 %v3056_v26, %v3052_v25  ;;  %v469_v30 = vld [vmem:[%s4060_s18 + $0x8] sm:$0xff]  ;;  %v3061_v32 = vld [vmem:[%s4997_s1 + $0xb8] sm:$0x3]  ;;  %v3058_v33 = vld [vmem:[%s4997_s1 + $0xa0] sm:$0x3] }
  0x4c   : > { %v3059_v31 = vld [vmem:[%s4997_s1 + $0xa8] sm:$0x3]  ;;  %v470_v34 = vld [vmem:[%s4060_s18 + $0x10] sm:$0xff]  ;;  %v471_v36 = vld [vmem:[%s4060_s18 + $0x18] sm:$0xff] }
  0x4d   : > { %2951 = vmatpush1.msk.msra.mxu0 %vm609_vm0, %v508_v15  ;;  %v3060_v35 = vld [vmem:[%s4997_s1 + $0xb0] sm:$0x3]  ;;  %v472_v37 = vld [vmem:[%s4060_s18 + $0x20] sm:$0xff]  ;;  %v473_v38 = vld [vmem:[%s4060_s18 + $0x28] sm:$0xff] }
  0x4e   : > { %2985 = vmatpush1.msk.msra.mxu1 %vm609_vm0, %v510_v16  ;;  %2952 = vmatmul.mubr.msk.f32.vlgmr.msra.gmra.mrb[0].mxu0 %vm512_vm1, %v468_v17  ;;  %v474_v39 = vld [vmem:[%s4060_s18 + $0x30] sm:$0xff]  ;;  %v475_v40 = vld [vmem:[%s4060_s18 + $0x38] sm:$0xff]  ;;  %v476_v41 = vld [vmem:[%s4060_s18 + $0x40] sm:$0xff] }
  0x4f   : > { %2986 = vmatmul.mubr.msk.f32.vlgmr.msra.gmra.mrb[0].mxu1 %vm512_vm1, %v468_v17  ;;  %3148 = vmatprep.subr.bf16.mxu0 %v3147_v23  ;;  %v477_v42 = vld [vmem:[%s4060_s18 + $0x48] sm:$0xff]  ;;  %v478_v43 = vld [vmem:[%s4060_s18 + $0x50] sm:$0xff]  ;;  %v479_v44 = vld [vmem:[%s4060_s18 + $0x58] sm:$0xff] }
  0x50   : > { %3152 = vmatprep.subr.bf16.mxu1 %v3151_v27  ;;  %3150 = vmatpush1.bf16.msra.mxu0 %v3149_v28  ;;  %v480_v45 = vld [vmem:[%s4060_s18 + $0x60] sm:$0xff]  ;;  %v481_v46 = vld [vmem:[%s4060_s18 + $0x68] sm:$0xff]  ;;  %v482_v47 = vld [vmem:[%s4060_s18 + $0x70] sm:$0xff] }
  0x51   : > { %3154 = vmatpush1.bf16.msra.mxu1 %v3153_v29  ;;  %692 = vmatprep.mubr.f32.mxu0 %v3805_v7  ;;  %v483_v48 = vld [vmem:[%s4060_s18 + $0x78] sm:$0xff]  ;;  %v484_v49 = vld [vmem:[%s4060_s18 + $0x80] sm:$0xff]  ;;  %v485_v50 = vld [vmem:[%s4060_s18 + $0x88] sm:$0xff] }
  0x52   : > { %949 = vmatprep.mubr.f32.mxu1 %v3805_v7  ;;  %2953 = vmatmul.mubr.msk.f32.gmra.mrb[2].mxu0 %vm512_vm1, %v469_v30  ;;  %v486_v51 = vld [vmem:[%s4060_s18 + $0x90] sm:$0xff]  ;;  %v487_v52 = vld [vmem:[%s4060_s18 + $0x98] sm:$0xff]  ;;  %v488_v53 = vld [vmem:[%s4060_s18 + $0xa0] sm:$0xff] }
  0x53   : > { %2987 = vmatmul.mubr.msk.f32.gmra.mrb[2].mxu1 %vm512_vm1, %v469_v30  ;;  %698 = vmatprep.mubr.f32.mxu0 %v3805_v7  ;;  %v489_v54 = vld [vmem:[%s4060_s18 + $0xa8] sm:$0xff]  ;;  %v490_v55 = vld [vmem:[%s4060_s18 + $0xb0] sm:$0xff]  ;;  %v491_v56 = vld [vmem:[%s4060_s18 + $0xb8] sm:$0xff] }
  0x54   : > { %955 = vmatprep.mubr.f32.mxu1 %v3805_v7  ;;  %3062 = vmatprep.subr.msk.mxu0 %vm609_vm0, %v3059_v31  ;;  %v492_v57 = vld [vmem:[%s4060_s18 + $0xc0] sm:$0xff]  ;;  %v493_v58 = vld [vmem:[%s4060_s18 + $0xc8] sm:$0xff]  ;;  %v494_v59 = vld [vmem:[%s4060_s18 + $0xd0] sm:$0xff] }
  0x55   : > { %3096 = vmatprep.subr.msk.mxu1 %vm609_vm0, %v3061_v32  ;;  %3063 = vmatpush1.msk.msra.mxu0 %vm609_vm0, %v3058_v33  ;;  %v495_v60 = vld [vmem:[%s4060_s18 + $0xd8] sm:$0xff]  ;;  %v496_v61 = vld [vmem:[%s4060_s18 + $0xe0] sm:$0xff]  ;;  %v497_v62 = vld [vmem:[%s4060_s18 + $0xe8] sm:$0xff] }
  0x56   : > { %2954 = vmatmul.mubr.msk.f32.gmra.mrb[4].mxu0 %vm512_vm1, %v470_v34  ;;  %3097 = vmatpush1.msk.msra.mxu1 %vm609_vm0, %v3060_v35  ;;  %v498_v63 = vld [vmem:[%s4060_s18 + $0xf0] sm:$0xff]  ;;  %v499_v0 = vld [vmem:[%s4060_s18 + $0xf8] sm:$0xff]  ;;  %v3018_v1 = vld [vmem:[%s4060_s18 + $0x100] sm:$0xff] }
  0x57   : > { %2988 = vmatmul.mubr.msk.f32.gmra.mrb[4].mxu1 %vm512_vm1, %v470_v34  ;;  %704 = vmatprep.mubr.f32.mxu0 %v3805_v7  ;;  %v3019_v2 = vld [vmem:[%s4060_s18 + $0x108] sm:$0xff]  ;;  %v3020_v3 = vld [vmem:[%s4060_s18 + $0x110] sm:$0xff]  ;;  %v3021_v4 = vld [vmem:[%s4060_s18 + $0x118] sm:$0xff] }
  0x58   : > { %961 = vmatprep.mubr.f32.mxu1 %v3805_v7  ;;  %v3022_v5 = vld [vmem:[%s4060_s18 + $0x120] sm:$0xff]  ;;  %v3023_v6 = vld [vmem:[%s4060_s18 + $0x128] sm:$0xff]  ;;  %v3024_v8 = vld [vmem:[%s4060_s18 + $0x130] sm:$0xff] }
  0x59   : > { %v3025_v9 = vld [vmem:[%s4060_s18 + $0x138] sm:$0xff]  ;;  %v3026_v10 = vld [vmem:[%s4060_s18 + $0x140] sm:$0xff]  ;;  %v3027_v11 = vld [vmem:[%s4060_s18 + $0x148] sm:$0xff] }
  0x5a   : > { %2955 = vmatmul.mubr.msk.f32.gmra.mrb[6].mxu0 %vm512_vm1, %v471_v36  ;;  %v3028_v12 = vld [vmem:[%s4060_s18 + $0x150] sm:$0xff]  ;;  %v3029_v13 = vld [vmem:[%s4060_s18 + $0x158] sm:$0xff]  ;;  %v3030_v14 = vld [vmem:[%s4060_s18 + $0x160] sm:$0xff] }
  0x5b   : > { %2989 = vmatmul.mubr.msk.f32.gmra.mrb[6].mxu1 %vm512_vm1, %v471_v36  ;;  %710 = vmatprep.mubr.f32.mxu0 %v3805_v7  ;;  %v3031_v15 = vld [vmem:[%s4060_s18 + $0x168] sm:$0xff]  ;;  %v3032_v16 = vld [vmem:[%s4060_s18 + $0x170] sm:$0xff]  ;;  %v3033_v17 = vld [vmem:[%s4060_s18 + $0x178] sm:$0xff] }
  0x5c   : > { %967 = vmatprep.mubr.f32.mxu1 %v3805_v7  ;;  %v3034_v18 = vld [vmem:[%s4060_s18 + $0x180] sm:$0xff]  ;;  %v3035_v19 = vld [vmem:[%s4060_s18 + $0x188] sm:$0xff]  ;;  %v3036_v20 = vld [vmem:[%s4060_s18 + $0x190] sm:$0xff] }
  0x5d   : > { %v3037_v21 = vld [vmem:[%s4060_s18 + $0x198] sm:$0xff]  ;;  %v3038_v22 = vld [vmem:[%s4060_s18 + $0x1a0] sm:$0xff]  ;;  %v3039_v23 = vld [vmem:[%s4060_s18 + $0x1a8] sm:$0xff] }
  0x5e   : > { %2956 = vmatmul.mubr.msk.f32.gmra.mrb[8].mxu0 %vm512_vm1, %v472_v37  ;;  %v3040_v31 = vld [vmem:[%s4060_s18 + $0x1b0] sm:$0xff] }
  0x5f   : > { %2990 = vmatmul.mubr.msk.f32.gmra.mrb[8].mxu1 %vm512_vm1, %v472_v37  ;;  %716 = vmatprep.mubr.f32.mxu0 %v3805_v7 }
  0x60   : > { %973 = vmatprep.mubr.f32.mxu1 %v3805_v7 }
  0x62   : > { %2957 = vmatmul.mubr.msk.f32.gmra.mrb[10].mxu0 %vm512_vm1, %v473_v38 }
  0x63   : > { %2991 = vmatmul.mubr.msk.f32.gmra.mrb[10].mxu1 %vm512_vm1, %v473_v38  ;;  %722 = vmatprep.mubr.f32.mxu0 %v3805_v7 }
  0x64   : > { %979 = vmatprep.mubr.f32.mxu1 %v3805_v7 }
  0x66   : > { %2958 = vmatmul.mubr.msk.f32.gmra.mrb[12].mxu0 %vm512_vm1, %v474_v39 }
  0x67   : > { %2992 = vmatmul.mubr.msk.f32.gmra.mrb[12].mxu1 %vm512_vm1, %v474_v39  ;;  %728 = vmatprep.mubr.f32.mxu0 %v3805_v7 }
  0x68   : > { %985 = vmatprep.mubr.f32.mxu1 %v3805_v7 }
  0x6a   : > { %2959 = vmatmul.mubr.msk.f32.gmra.mrb[14].mxu0 %vm512_vm1, %v475_v40 }
  0x6b   : > { %2993 = vmatmul.mubr.msk.f32.gmra.mrb[14].mxu1 %vm512_vm1, %v475_v40  ;;  %734 = vmatprep.mubr.f32.mxu0 %v3805_v7 }
  0x6c   : > { %991 = vmatprep.mubr.f32.mxu1 %v3805_v7 }
  0x6e   : > { %2960 = vmatmul.mubr.msk.f32.gmra.mrb[16].mxu0 %vm512_vm1, %v476_v41 }
  0x6f   : > { %2994 = vmatmul.mubr.msk.f32.gmra.mrb[16].mxu1 %vm512_vm1, %v476_v41  ;;  %740 = vmatprep.mubr.f32.mxu0 %v3805_v7 }
  0x70   : > { %997 = vmatprep.mubr.f32.mxu1 %v3805_v7 }
  0x72   : > { %2961 = vmatmul.mubr.msk.f32.gmra.mrb[18].mxu0 %vm512_vm1, %v477_v42 }
  0x73   : > { %2995 = vmatmul.mubr.msk.f32.gmra.mrb[18].mxu1 %vm512_vm1, %v477_v42  ;;  %746 = vmatprep.mubr.f32.mxu0 %v3805_v7 }
  0x74   : > { %1003 = vmatprep.mubr.f32.mxu1 %v3805_v7 }
  0x76   : > { %2962 = vmatmul.mubr.msk.f32.gmra.mrb[20].mxu0 %vm512_vm1, %v478_v43 }
  0x77   : > { %2996 = vmatmul.mubr.msk.f32.gmra.mrb[20].mxu1 %vm512_vm1, %v478_v43  ;;  %752 = vmatprep.mubr.f32.mxu0 %v3805_v7 }
  0x78   : > { %1009 = vmatprep.mubr.f32.mxu1 %v3805_v7 }
  0x7a   : > { %2963 = vmatmul.mubr.msk.f32.gmra.mrb[22].mxu0 %vm512_vm1, %v479_v44 }
  0x7b   : > { %2997 = vmatmul.mubr.msk.f32.gmra.mrb[22].mxu1 %vm512_vm1, %v479_v44  ;;  %758 = vmatprep.mubr.f32.mxu0 %v3805_v7  ;;  %v3041_v44 = vld [vmem:[%s4060_s18 + $0x1b8] sm:$0xff] }
  0x7c   : > { %1015 = vmatprep.mubr.f32.mxu1 %v3805_v7 }
  0x7e   : > { %2964 = vmatmul.mubr.msk.f32.gmra.mrb[24].mxu0 %vm512_vm1, %v480_v45 }
  0x7f   : > { %2998 = vmatmul.mubr.msk.f32.gmra.mrb[24].mxu1 %vm512_vm1, %v480_v45  ;;  %764 = vmatprep.mubr.f32.mxu0 %v3805_v7 }
  0x80   : > { %1021 = vmatprep.mubr.f32.mxu1 %v3805_v7 }
  0x82   : > { %2965 = vmatmul.mubr.msk.f32.gmra.mrb[26].mxu0 %vm512_vm1, %v481_v46 }
  0x83   : > { %2999 = vmatmul.mubr.msk.f32.gmra.mrb[26].mxu1 %vm512_vm1, %v481_v46  ;;  %770 = vmatprep.mubr.f32.mxu0 %v3805_v7 }
  0x84   : > { %1027 = vmatprep.mubr.f32.mxu1 %v3805_v7 }
  0x86   : > { %2966 = vmatmul.mubr.msk.f32.gmra.mrb[28].mxu0 %vm512_vm1, %v482_v47 }
  0x87   : > { %3000 = vmatmul.mubr.msk.f32.gmra.mrb[28].mxu1 %vm512_vm1, %v482_v47  ;;  %776 = vmatprep.mubr.f32.mxu0 %v3805_v7 }
  0x88   : > { %1033 = vmatprep.mubr.f32.mxu1 %v3805_v7 }
  0x8a   : > { %2967 = vmatmul.mubr.msk.f32.gmra.mrb[30].mxu0 %vm512_vm1, %v483_v48 }
  0x8b   : > { %3001 = vmatmul.mubr.msk.f32.gmra.mrb[30].mxu1 %vm512_vm1, %v483_v48  ;;  %782 = vmatprep.mubr.f32.mxu0 %v3805_v7 }
  0x8c   : > { %1039 = vmatprep.mubr.f32.mxu1 %v3805_v7 }
  0x8e   : > { %2968 = vmatmul.mubr.msk.f32.gmra.mrb[32].mxu0 %vm512_vm1, %v484_v49 }
  0x8f   : > { %3002 = vmatmul.mubr.msk.f32.gmra.mrb[32].mxu1 %vm512_vm1, %v484_v49  ;;  %788 = vmatprep.mubr.f32.mxu0 %v3805_v7 }
  0x90   : > { %1045 = vmatprep.mubr.f32.mxu1 %v3805_v7 }
  0x92   : > { %2969 = vmatmul.mubr.msk.f32.gmra.mrb[34].mxu0 %vm512_vm1, %v485_v50 }
  0x93   : > { %3003 = vmatmul.mubr.msk.f32.gmra.mrb[34].mxu1 %vm512_vm1, %v485_v50  ;;  %794 = vmatprep.mubr.f32.mxu0 %v3805_v7 }
  0x94   : > { %1051 = vmatprep.mubr.f32.mxu1 %v3805_v7 }
  0x96   : > { %2970 = vmatmul.mubr.msk.f32.gmra.mrb[36].mxu0 %vm512_vm1, %v486_v51 }
  0x97   : > { %3004 = vmatmul.mubr.msk.f32.gmra.mrb[36].mxu1 %vm512_vm1, %v486_v51  ;;  %800 = vmatprep.mubr.f32.mxu0 %v3805_v7 }
  0x98   : > { %1057 = vmatprep.mubr.f32.mxu1 %v3805_v7 }
  0x9a   : > { %2971 = vmatmul.mubr.msk.f32.gmra.mrb[38].mxu0 %vm512_vm1, %v487_v52 }
  0x9b   : > { %3005 = vmatmul.mubr.msk.f32.gmra.mrb[38].mxu1 %vm512_vm1, %v487_v52  ;;  %806 = vmatprep.mubr.f32.mxu0 %v3805_v7 }
  0x9c   : > { %1063 = vmatprep.mubr.f32.mxu1 %v3805_v7 }
  0x9e   : > { %2972 = vmatmul.mubr.msk.f32.gmra.mrb[40].mxu0 %vm512_vm1, %v488_v53 }
  0x9f   : > { %3006 = vmatmul.mubr.msk.f32.gmra.mrb[40].mxu1 %vm512_vm1, %v488_v53  ;;  %812 = vmatprep.mubr.f32.mxu0 %v3805_v7 }
  0xa0   : > { %1069 = vmatprep.mubr.f32.mxu1 %v3805_v7 }
  0xa2   : > { %2973 = vmatmul.mubr.msk.f32.gmra.mrb[42].mxu0 %vm512_vm1, %v489_v54 }
  0xa3   : > { %3007 = vmatmul.mubr.msk.f32.gmra.mrb[42].mxu1 %vm512_vm1, %v489_v54  ;;  %818 = vmatprep.mubr.f32.mxu0 %v3805_v7 }
  0xa4   : > { %1075 = vmatprep.mubr.f32.mxu1 %v3805_v7 }
  0xa6   : > { %2974 = vmatmul.mubr.msk.f32.gmra.mrb[44].mxu0 %vm512_vm1, %v490_v55 }
  0xa7   : > { %3008 = vmatmul.mubr.msk.f32.gmra.mrb[44].mxu1 %vm512_vm1, %v490_v55  ;;  %824 = vmatprep.mubr.f32.mxu0 %v3805_v7 }
  0xa8   : > { %1081 = vmatprep.mubr.f32.mxu1 %v3805_v7 }
  0xaa   : > { %2975 = vmatmul.mubr.msk.f32.gmra.mrb[46].mxu0 %vm512_vm1, %v491_v56 }
  0xab   : > { %3009 = vmatmul.mubr.msk.f32.gmra.mrb[46].mxu1 %vm512_vm1, %v491_v56  ;;  %830 = vmatprep.mubr.f32.mxu0 %v3805_v7 }
  0xac   : > { %1087 = vmatprep.mubr.f32.mxu1 %v3805_v7 }
  0xae   : > { %2976 = vmatmul.mubr.msk.f32.gmra.mrb[48].mxu0 %vm512_vm1, %v492_v57 }
  0xaf   : > { %3010 = vmatmul.mubr.msk.f32.gmra.mrb[48].mxu1 %vm512_vm1, %v492_v57  ;;  %836 = vmatprep.mubr.f32.mxu0 %v3805_v7  ;;  %v3042_v57 = vld [vmem:[%s4060_s18 + $0x1c0] sm:$0xff] }
  0xb0   : > { %1093 = vmatprep.mubr.f32.mxu1 %v3805_v7 }
  0xb2   : > { %2977 = vmatmul.mubr.msk.f32.gmra.mrb[50].mxu0 %vm512_vm1, %v493_v58 }
  0xb3   : > { %3011 = vmatmul.mubr.msk.f32.gmra.mrb[50].mxu1 %vm512_vm1, %v493_v58  ;;  %842 = vmatprep.mubr.f32.mxu0 %v3805_v7 }
  0xb4   : > { %1099 = vmatprep.mubr.f32.mxu1 %v3805_v7 }
  0xb6   : > { %2978 = vmatmul.mubr.msk.f32.gmra.mrb[52].mxu0 %vm512_vm1, %v494_v59 }
  0xb7   : > { %3012 = vmatmul.mubr.msk.f32.gmra.mrb[52].mxu1 %vm512_vm1, %v494_v59  ;;  %848 = vmatprep.mubr.f32.mxu0 %v3805_v7 }
  0xb8   : > { %1105 = vmatprep.mubr.f32.mxu1 %v3805_v7 }
  0xba   : > { %2979 = vmatmul.mubr.msk.f32.gmra.mrb[54].mxu0 %vm512_vm1, %v495_v60 }
  0xbb   : > { %3013 = vmatmul.mubr.msk.f32.gmra.mrb[54].mxu1 %vm512_vm1, %v495_v60  ;;  %854 = vmatprep.mubr.f32.mxu0 %v3805_v7 }
  0xbc   : > { %1111 = vmatprep.mubr.f32.mxu1 %v3805_v7 }
  0xbe   : > { %2980 = vmatmul.mubr.msk.f32.gmra.mrb[56].mxu0 %vm512_vm1, %v496_v61 }
  0xbf   : > { %3014 = vmatmul.mubr.msk.f32.gmra.mrb[56].mxu1 %vm512_vm1, %v496_v61  ;;  %860 = vmatprep.mubr.f32.mxu0 %v3805_v7 }
  0xc0   : > { %1117 = vmatprep.mubr.f32.mxu1 %v3805_v7 }
  0xc2   : > { %2981 = vmatmul.mubr.msk.f32.gmra.mrb[58].mxu0 %vm512_vm1, %v497_v62 }
  0xc3   : > { %3015 = vmatmul.mubr.msk.f32.gmra.mrb[58].mxu1 %vm512_vm1, %v497_v62  ;;  %866 = vmatprep.mubr.f32.mxu0 %v3805_v7 }
  0xc4   : > { %1123 = vmatprep.mubr.f32.mxu1 %v3805_v7 }
  0xc6   : > { %2982 = vmatmul.mubr.msk.f32.gmra.mrb[60].mxu0 %vm512_vm1, %v498_v63 }
  0xc7   : > { %3016 = vmatmul.mubr.msk.f32.gmra.mrb[60].mxu1 %vm512_vm1, %v498_v63  ;;  %872 = vmatprep.mubr.f32.mxu0 %v3805_v7 }
  0xc8   : > { %1129 = vmatprep.mubr.f32.mxu1 %v3805_v7 }
  0xca   : > { %2983 = vmatmul.mubr.msk.f32.gmra.mrb[62].mxu0 %vm512_vm1, %v499_v0 }
  0xcb   : > { %3017 = vmatmul.mubr.msk.f32.gmra.mrb[62].mxu1 %vm512_vm1, %v499_v0  ;;  %1738 = vmatprep.mubr.f32.mxu0 %v3805_v7 }
  0xcc   : > { %1995 = vmatprep.mubr.f32.mxu1 %v3805_v7 }
  0xce   : > { %3064 = vmatmul.mubr.msk.f32.vlgmr.msra.gmra.mrb[64].mxu0 %vm512_vm1, %v3018_v1 }
  0xcf   : > { %3098 = vmatmul.mubr.msk.f32.vlgmr.msra.gmra.mrb[64].mxu1 %vm512_vm1, %v3018_v1  ;;  %1744 = vmatprep.mubr.f32.mxu0 %v3805_v7 }
  0xd0   : > { %2001 = vmatprep.mubr.f32.mxu1 %v3805_v7 }
  0xd2   : > { %3065 = vmatmul.mubr.msk.f32.gmra.mrb[66].mxu0 %vm512_vm1, %v3019_v2 }
  0xd3   : > { %3099 = vmatmul.mubr.msk.f32.gmra.mrb[66].mxu1 %vm512_vm1, %v3019_v2  ;;  %1750 = vmatprep.mubr.f32.mxu0 %v3805_v7 }
  0xd4   : > { %2007 = vmatprep.mubr.f32.mxu1 %v3805_v7 }
  0xd6   : > { %3066 = vmatmul.mubr.msk.f32.gmra.mrb[68].mxu0 %vm512_vm1, %v3020_v3 }
  0xd7   : > { %3100 = vmatmul.mubr.msk.f32.gmra.mrb[68].mxu1 %vm512_vm1, %v3020_v3  ;;  %1756 = vmatprep.mubr.f32.mxu0 %v3805_v7 }
  0xd8   : > { %2013 = vmatprep.mubr.f32.mxu1 %v3805_v7 }
  0xda   : > { %3067 = vmatmul.mubr.msk.f32.gmra.mrb[70].mxu0 %vm512_vm1, %v3021_v4 }
  0xdb   : > { %3101 = vmatmul.mubr.msk.f32.gmra.mrb[70].mxu1 %vm512_vm1, %v3021_v4  ;;  %1762 = vmatprep.mubr.f32.mxu0 %v3805_v7 }
  0xdc   : > { %2019 = vmatprep.mubr.f32.mxu1 %v3805_v7 }
  0xde   : > { %3068 = vmatmul.mubr.msk.f32.gmra.mrb[72].mxu0 %vm512_vm1, %v3022_v5 }
  0xdf   : > { %3102 = vmatmul.mubr.msk.f32.gmra.mrb[72].mxu1 %vm512_vm1, %v3022_v5  ;;  %1768 = vmatprep.mubr.f32.mxu0 %v3805_v7 }
  0xe0   : > { %2025 = vmatprep.mubr.f32.mxu1 %v3805_v7 }
  0xe2   : > { %3069 = vmatmul.mubr.msk.f32.gmra.mrb[74].mxu0 %vm512_vm1, %v3023_v6 }
  0xe3   : > { %3103 = vmatmul.mubr.msk.f32.gmra.mrb[74].mxu1 %vm512_vm1, %v3023_v6  ;;  %1774 = vmatprep.mubr.f32.mxu0 %v3805_v7  ;;  %v3043_v6 = vld [vmem:[%s4060_s18 + $0x1c8] sm:$0xff] }
  0xe4   : > { %2031 = vmatprep.mubr.f32.mxu1 %v3805_v7 }
  0xe6   : > { %3070 = vmatmul.mubr.msk.f32.gmra.mrb[76].mxu0 %vm512_vm1, %v3024_v8 }
  0xe7   : > { %3104 = vmatmul.mubr.msk.f32.gmra.mrb[76].mxu1 %vm512_vm1, %v3024_v8  ;;  %1780 = vmatprep.mubr.f32.mxu0 %v3805_v7 }
  0xe8   : > { %2037 = vmatprep.mubr.f32.mxu1 %v3805_v7 }
  0xea   : > { %3071 = vmatmul.mubr.msk.f32.gmra.mrb[78].mxu0 %vm512_vm1, %v3025_v9 }
  0xeb   : > { %3105 = vmatmul.mubr.msk.f32.gmra.mrb[78].mxu1 %vm512_vm1, %v3025_v9  ;;  %1786 = vmatprep.mubr.f32.mxu0 %v3805_v7 }
  0xec   : > { %2043 = vmatprep.mubr.f32.mxu1 %v3805_v7 }
  0xee   : > { %3072 = vmatmul.mubr.msk.f32.gmra.mrb[80].mxu0 %vm512_vm1, %v3026_v10 }
  0xef   : > { %3106 = vmatmul.mubr.msk.f32.gmra.mrb[80].mxu1 %vm512_vm1, %v3026_v10  ;;  %1792 = vmatprep.mubr.f32.mxu0 %v3805_v7 }
  0xf0   : > { %2049 = vmatprep.mubr.f32.mxu1 %v3805_v7 }
  0xf2   : > { %3073 = vmatmul.mubr.msk.f32.gmra.mrb[82].mxu0 %vm512_vm1, %v3027_v11 }
  0xf3   : > { %3107 = vmatmul.mubr.msk.f32.gmra.mrb[82].mxu1 %vm512_vm1, %v3027_v11  ;;  %1798 = vmatprep.mubr.f32.mxu0 %v3805_v7 }
  0xf4   : > { %2055 = vmatprep.mubr.f32.mxu1 %v3805_v7 }
  0xf6   : > { %3074 = vmatmul.mubr.msk.f32.gmra.mrb[84].mxu0 %vm512_vm1, %v3028_v12 }
  0xf7   : > { %3108 = vmatmul.mubr.msk.f32.gmra.mrb[84].mxu1 %vm512_vm1, %v3028_v12  ;;  %1804 = vmatprep.mubr.f32.mxu0 %v3805_v7 }
  0xf8   : > { %2061 = vmatprep.mubr.f32.mxu1 %v3805_v7 }
  0xfa   : > { %3075 = vmatmul.mubr.msk.f32.gmra.mrb[86].mxu0 %vm512_vm1, %v3029_v13 }
  0xfb   : > { %3109 = vmatmul.mubr.msk.f32.gmra.mrb[86].mxu1 %vm512_vm1, %v3029_v13  ;;  %1810 = vmatprep.mubr.f32.mxu0 %v3805_v7 }
  0xfc   : > { %2067 = vmatprep.mubr.f32.mxu1 %v3805_v7 }
  0xfe   : > { %3076 = vmatmul.mubr.msk.f32.gmra.mrb[88].mxu0 %vm512_vm1, %v3030_v14 }
  0xff   : > { %3110 = vmatmul.mubr.msk.f32.gmra.mrb[88].mxu1 %vm512_vm1, %v3030_v14  ;;  %1816 = vmatprep.mubr.f32.mxu0 %v3805_v7 }
 0x100   : > { %2073 = vmatprep.mubr.f32.mxu1 %v3805_v7 }
 0x102   : > { %3077 = vmatmul.mubr.msk.f32.gmra.mrb[90].mxu0 %vm512_vm1, %v3031_v15 }
 0x103   : > { %3111 = vmatmul.mubr.msk.f32.gmra.mrb[90].mxu1 %vm512_vm1, %v3031_v15  ;;  %1822 = vmatprep.mubr.f32.mxu0 %v3805_v7 }
 0x104   : > { %2079 = vmatprep.mubr.f32.mxu1 %v3805_v7 }
 0x106   : > { %3078 = vmatmul.mubr.msk.f32.gmra.mrb[92].mxu0 %vm512_vm1, %v3032_v16 }
 0x107   : > { %3112 = vmatmul.mubr.msk.f32.gmra.mrb[92].mxu1 %vm512_vm1, %v3032_v16  ;;  %1828 = vmatprep.mubr.f32.mxu0 %v3805_v7 }
 0x108   : > { %2085 = vmatprep.mubr.f32.mxu1 %v3805_v7 }
 0x10a   : > { %3079 = vmatmul.mubr.msk.f32.gmra.mrb[94].mxu0 %vm512_vm1, %v3033_v17 }
 0x10b   : > { %3113 = vmatmul.mubr.msk.f32.gmra.mrb[94].mxu1 %vm512_vm1, %v3033_v17  ;;  %1834 = vmatprep.mubr.f32.mxu0 %v3805_v7 }
 0x10c   : > { %2091 = vmatprep.mubr.f32.mxu1 %v3805_v7 }
 0x10e   : > { %3080 = vmatmul.mubr.msk.f32.gmra.mrb[96].mxu0 %vm512_vm1, %v3034_v18 }
 0x10f   : > { %3114 = vmatmul.mubr.msk.f32.gmra.mrb[96].mxu1 %vm512_vm1, %v3034_v18  ;;  %1840 = vmatprep.mubr.f32.mxu0 %v3805_v7 }
 0x110   : > { %2097 = vmatprep.mubr.f32.mxu1 %v3805_v7 }
 0x112   : > { %3081 = vmatmul.mubr.msk.f32.gmra.mrb[98].mxu0 %vm512_vm1, %v3035_v19 }
 0x113   : > { %3115 = vmatmul.mubr.msk.f32.gmra.mrb[98].mxu1 %vm512_vm1, %v3035_v19  ;;  %1846 = vmatprep.mubr.f32.mxu0 %v3805_v7 }
 0x114   : > { %2103 = vmatprep.mubr.f32.mxu1 %v3805_v7 }
 0x116   : > { %3082 = vmatmul.mubr.msk.f32.gmra.mrb[100].mxu0 %vm512_vm1, %v3036_v20 }
 0x117   : > { %3116 = vmatmul.mubr.msk.f32.gmra.mrb[100].mxu1 %vm512_vm1, %v3036_v20  ;;  %1852 = vmatprep.mubr.f32.mxu0 %v3805_v7 }
 0x118   : > { %2109 = vmatprep.mubr.f32.mxu1 %v3805_v7 }
 0x11a   : > { %3083 = vmatmul.mubr.msk.f32.gmra.mrb[102].mxu0 %vm512_vm1, %v3037_v21 }
 0x11b   : > { %3117 = vmatmul.mubr.msk.f32.gmra.mrb[102].mxu1 %vm512_vm1, %v3037_v21  ;;  %1858 = vmatprep.mubr.f32.mxu0 %v3805_v7 }
 0x11c   : > { %2115 = vmatprep.mubr.f32.mxu1 %v3805_v7 }
 0x11e   : > { %3084 = vmatmul.mubr.msk.f32.gmra.mrb[104].mxu0 %vm512_vm1, %v3038_v22 }
 0x11f   : > { %3118 = vmatmul.mubr.msk.f32.gmra.mrb[104].mxu1 %vm512_vm1, %v3038_v22  ;;  %1864 = vmatprep.mubr.f32.mxu0 %v3805_v7 }
 0x120   : > { %2121 = vmatprep.mubr.f32.mxu1 %v3805_v7 }
 0x121   : > { %v688_v24 = vpop.f32.mrb[0].mxu0 }
 0x122   : > { %v1136_v25 = vmin.f32 %v688_v24, 0.0  ;;  %v945_v26 = vpop.f32.mrb[0].mxu1  ;;  %v690_v27 = vpop.f32.mrb[1].mxu0  ;;  %3085 = vmatmul.mubr.msk.f32.gmra.mrb[106].mxu0 %vm512_vm1, %v3039_v23  ;;  %v3044_v24 = vld [vmem:[%s4060_s18 + $0x1d0] sm:$0xff] }
 0x123   : > { %v1138_v28 = vmin.f32 %v945_v26, 0.0  ;;  %v1137_v29 = vmin.f32 %v690_v27, 0.0  ;;  %v947_v30 = vpop.f32.mrb[1].mxu1  ;;  %3119 = vmatmul.mubr.msk.f32.gmra.mrb[106].mxu1 %vm512_vm1, %v3039_v23  ;;  %1870 = vmatprep.mubr.f32.mxu0 %v3805_v7 }
 0x124   : > { %v1264_v32 = vmul.f32 1.442695, %v1136_v25  ;;  %v1139_v33 = vmin.f32 %v947_v30, 0.0  ;;  %2127 = vmatprep.mubr.f32.mxu1 %v3805_v7 }
 0x125   : > { %v1268_v34 = vmul.f32 1.442695, %v1138_v28  ;;  %v1266_v35 = vmul.f32 1.442695, %v1137_v29  ;;  %v694_v36 = vpop.f32.mrb[2].mxu0 }
 0x126   : > { %3213 = vpow2.f32 %v1264_v32  ;;  %v1270_v37 = vmul.f32 1.442695, %v1139_v33  ;;  %v1140_v38 = vmin.f32 %v694_v36, 0.0  ;;  %v951_v39 = vpop.f32.mrb[2].mxu1  ;;  %v696_v40 = vpop.f32.mrb[3].mxu0  ;;  %3086 = vmatmul.mubr.msk.f32.gmra.mrb[108].mxu0 %vm512_vm1, %v3040_v31 }
 0x127   : > { %3215 = vpow2.f32 %v1268_v34  ;;  %v1142_v41 = vmin.f32 %v951_v39, 0.0  ;;  %v1141_v42 = vmin.f32 %v696_v40, 0.0  ;;  %v953_v43 = vpop.f32.mrb[3].mxu1  ;;  %3120 = vmatmul.mubr.msk.f32.gmra.mrb[108].mxu1 %vm512_vm1, %v3040_v31  ;;  %1876 = vmatprep.mubr.f32.mxu0 %v3805_v7 }
 0x128   : > { %3217 = vpow2.f32 %v1266_v35  ;;  %v1272_v45 = vmul.f32 1.442695, %v1140_v38  ;;  %v1143_v46 = vmin.f32 %v953_v43, 0.0  ;;  %2133 = vmatprep.mubr.f32.mxu1 %v3805_v7 }
 0x129   : > { %3219 = vpow2.f32 %v1270_v37  ;;  %v1276_v47 = vmul.f32 1.442695, %v1142_v41  ;;  %v1274_v48 = vmul.f32 1.442695, %v1141_v42  ;;  %v700_v49 = vpop.f32.mrb[4].mxu0  ;;  %v3045_v41 = vld [vmem:[%s4060_s18 + $0x1d8] sm:$0xff] }
 0x12a   : > { %3221 = vpow2.f32 %v1272_v45  ;;  %v1278_v50 = vmul.f32 1.442695, %v1143_v46  ;;  %v1144_v51 = vmin.f32 %v700_v49, 0.0  ;;  %v957_v52 = vpop.f32.mrb[4].mxu1  ;;  %v702_v53 = vpop.f32.mrb[5].mxu0  ;;  %3087 = vmatmul.mubr.msk.f32.gmra.mrb[110].mxu0 %vm512_vm1, %v3041_v44 }
 0x12b   : > { %3223 = vpow2.f32 %v1276_v47  ;;  %v1146_v54 = vmin.f32 %v957_v52, 0.0  ;;  %v1145_v55 = vmin.f32 %v702_v53, 0.0  ;;  %v959_v56 = vpop.f32.mrb[5].mxu1  ;;  %3121 = vmatmul.mubr.msk.f32.gmra.mrb[110].mxu1 %vm512_vm1, %v3041_v44  ;;  %1882 = vmatprep.mubr.f32.mxu0 %v3805_v7 }
 0x12c   : > { %3225 = vpow2.f32 %v1274_v48  ;;  %v1280_v58 = vmul.f32 1.442695, %v1144_v51  ;;  %v1147_v59 = vmin.f32 %v959_v56, 0.0  ;;  %2139 = vmatprep.mubr.f32.mxu1 %v3805_v7 }
 0x12d   : > { %3227 = vpow2.f32 %v1278_v50  ;;  %v1284_v60 = vmul.f32 1.442695, %v1146_v54  ;;  %v1282_v61 = vmul.f32 1.442695, %v1145_v55  ;;  %v706_v62 = vpop.f32.mrb[6].mxu0 }
 0x12e   : > { %3229 = vpow2.f32 %v1280_v58  ;;  %v1286_v63 = vmul.f32 1.442695, %v1147_v59  ;;  %v1148_v0 = vmin.f32 %v706_v62, 0.0  ;;  %v963_v1 = vpop.f32.mrb[6].mxu1  ;;  %v708_v2 = vpop.f32.mrb[7].mxu0  ;;  %3088 = vmatmul.mubr.msk.f32.gmra.mrb[112].mxu0 %vm512_vm1, %v3042_v57  ;;  %v3046_v58 = vld [vmem:[%s4060_s18 + $0x1e0] sm:$0xff] }
 0x12f   : > { %3231 = vpow2.f32 %v1284_v60  ;;  %v1150_v3 = vmin.f32 %v963_v1, 0.0  ;;  %v1149_v4 = vmin.f32 %v708_v2, 0.0  ;;  %v965_v5 = vpop.f32.mrb[7].mxu1  ;;  %3122 = vmatmul.mubr.msk.f32.gmra.mrb[112].mxu1 %vm512_vm1, %v3042_v57  ;;  %1888 = vmatprep.mubr.f32.mxu0 %v3805_v7 }
 0x130   : > { %v4391_v8 = vpop.eup %3213  ;;  %3233 = vpow2.f32 %v1282_v61  ;;  %v1288_v9 = vmul.f32 1.442695, %v1148_v0  ;;  %v1151_v10 = vmin.f32 %v965_v5, 0.0  ;;  %2145 = vmatprep.mubr.f32.mxu1 %v3805_v7 }
 0x131   : > { %v4394_v11 = vpop.eup %3215  ;;  %3235 = vpow2.f32 %v1286_v63  ;;  %v1292_v12 = vmul.f32 1.442695, %v1150_v3  ;;  %v1290_v13 = vmul.f32 1.442695, %v1149_v4  ;;  %v712_v14 = vpop.f32.mrb[8].mxu0 }
 0x132   : > { %v4396_v15 = vpop.eup %3217  ;;  %3237 = vpow2.f32 %v1288_v9  ;;  %v1294_v16 = vmul.f32 1.442695, %v1151_v10  ;;  %v1152_v17 = vmin.f32 %v712_v14, 0.0  ;;  %v969_v18 = vpop.f32.mrb[8].mxu1  ;;  %3089 = vmatmul.mubr.msk.f32.gmra.mrb[114].mxu0 %vm512_vm1, %v3043_v6  ;;  %v3047_v14 = vld [vmem:[%s4060_s18 + $0x1e8] sm:$0xff] }
 0x133   : > { %v714_v19 = vpop.f32.mrb[9].mxu0  ;;  %v4399_v20 = vpop.eup %3219  ;;  %3239 = vpow2.f32 %v1292_v12  ;;  %v1154_v21 = vmin.f32 %v969_v18, 0.0  ;;  %3123 = vmatmul.mubr.msk.f32.gmra.mrb[114].mxu1 %vm512_vm1, %v3043_v6  ;;  %1894 = vmatprep.mubr.f32.mxu0 %v3805_v7 }
 0x134   : > { %v1153_v22 = vmin.f32 %v714_v19, 0.0  ;;  %v971_v23 = vpop.f32.mrb[9].mxu1  ;;  %v4404_v25 = vpop.eup %3221  ;;  %3241 = vpow2.f32 %v1290_v13  ;;  %v1296_v26 = vmul.f32 1.442695, %v1152_v17  ;;  %2151 = vmatprep.mubr.f32.mxu1 %v3805_v7 }
 0x135   : > { %v1155_v27 = vmin.f32 %v971_v23, 0.0  ;;  %v4407_v28 = vpop.eup %3223  ;;  %3243 = vpow2.f32 %v1294_v16  ;;  %v1300_v29 = vmul.f32 1.442695, %v1154_v21  ;;  %v718_v31 = vpop.f32.mrb[10].mxu0 }
 0x136   : > { %v1298_v30 = vmul.f32 1.442695, %v1153_v22  ;;  %v4409_v32 = vpop.eup %3225  ;;  %3245 = vpow2.f32 %v1296_v26  ;;  %v1156_v34 = vmin.f32 %v718_v31, 0.0  ;;  %v975_v35 = vpop.f32.mrb[10].mxu1  ;;  %3090 = vmatmul.mubr.msk.f32.gmra.mrb[116].mxu0 %vm512_vm1, %v3044_v24 }
 0x137   : > { %v1302_v33 = vmul.f32 1.442695, %v1155_v27  ;;  %v720_v36 = vpop.f32.mrb[11].mxu0  ;;  %v4412_v37 = vpop.eup %3227  ;;  %3247 = vpow2.f32 %v1300_v29  ;;  %v1158_v38 = vmin.f32 %v975_v35, 0.0  ;;  %3124 = vmatmul.mubr.msk.f32.gmra.mrb[116].mxu1 %vm512_vm1, %v3044_v24  ;;  %1900 = vmatprep.mubr.f32.mxu0 %v3805_v7 }
 0x138   : > { %v1157_v39 = vmin.f32 %v720_v36, 0.0  ;;  %v977_v40 = vpop.f32.mrb[11].mxu1  ;;  %v4417_v42 = vpop.eup %3229  ;;  %3249 = vpow2.f32 %v1298_v30  ;;  %v1304_v43 = vmul.f32 1.442695, %v1156_v34  ;;  %2157 = vmatprep.mubr.f32.mxu1 %v3805_v7  ;;  %v3048_v36 = vld [vmem:[%s4060_s18 + $0x1f0] sm:$0xff] }
 0x139   : > { %v1159_v44 = vmin.f32 %v977_v40, 0.0  ;;  %v4420_v45 = vpop.eup %3231  ;;  %3251 = vpow2.f32 %v1302_v33  ;;  %v1308_v46 = vmul.f32 1.442695, %v1158_v38  ;;  %v724_v48 = vpop.f32.mrb[12].mxu0 }
 0x13a   : > { %v1306_v47 = vmul.f32 1.442695, %v1157_v39  ;;  %v4422_v49 = vpop.eup %3233  ;;  %3253 = vpow2.f32 %v1304_v43  ;;  %v1160_v51 = vmin.f32 %v724_v48, 0.0  ;;  %v981_v52 = vpop.f32.mrb[12].mxu1  ;;  %3091 = vmatmul.mubr.msk.f32.gmra.mrb[118].mxu0 %vm512_vm1, %v3045_v41 }
 0x13b   : > { %v1310_v50 = vmul.f32 1.442695, %v1159_v44  ;;  %v726_v53 = vpop.f32.mrb[13].mxu0  ;;  %v4425_v54 = vpop.eup %3235  ;;  %3255 = vpow2.f32 %v1308_v46  ;;  %v1162_v55 = vmin.f32 %v981_v52, 0.0  ;;  %3125 = vmatmul.mubr.msk.f32.gmra.mrb[118].mxu1 %vm512_vm1, %v3045_v41  ;;  %1906 = vmatprep.mubr.f32.mxu0 %v3805_v7 }
 0x13c   : > { %v1161_v56 = vmin.f32 %v726_v53, 0.0  ;;  %v983_v57 = vpop.f32.mrb[13].mxu1  ;;  %v4430_v59 = vpop.eup %3237  ;;  %3257 = vpow2.f32 %v1306_v47  ;;  %v1312_v60 = vmul.f32 1.442695, %v1160_v51  ;;  %2163 = vmatprep.mubr.f32.mxu1 %v3805_v7 }
 0x13d   : > { %v1163_v61 = vmin.f32 %v983_v57, 0.0  ;;  %v4433_v62 = vpop.eup %3239  ;;  %3259 = vpow2.f32 %v1310_v50  ;;  %v1316_v63 = vmul.f32 1.442695, %v1162_v55  ;;  %v730_v1 = vpop.f32.mrb[14].mxu0 }
 0x13e   : > { %v1314_v0 = vmul.f32 1.442695, %v1161_v56  ;;  %v4435_v2 = vpop.eup %3241  ;;  %3261 = vpow2.f32 %v1312_v60  ;;  %v1164_v4 = vmin.f32 %v730_v1, 0.0  ;;  %v987_v5 = vpop.f32.mrb[14].mxu1  ;;  %3092 = vmatmul.mubr.msk.f32.gmra.mrb[120].mxu0 %vm512_vm1, %v3046_v58 }
 0x13f   : > { %v1318_v3 = vmul.f32 1.442695, %v1163_v61  ;;  %v732_v6 = vpop.f32.mrb[15].mxu0  ;;  %v4438_v9 = vpop.eup %3243  ;;  %3263 = vpow2.f32 %v1316_v63  ;;  %v1166_v10 = vmin.f32 %v987_v5, 0.0  ;;  %3126 = vmatmul.mubr.msk.f32.gmra.mrb[120].mxu1 %vm512_vm1, %v3046_v58  ;;  %1912 = vmatprep.mubr.f32.mxu0 %v3805_v7  ;;  %v3049_v58 = vld [vmem:[%s4060_s18 + $0x1f8] sm:$0xff]  ;;  %s2949_s18 = sshll.u32 %s4028_s8, 10 }
 0x140   : > { %v1165_v12 = vmin.f32 %v732_v6, 0.0  ;;  %v989_v13 = vpop.f32.mrb[15].mxu1  ;;  %v4443_v16 = vpop.eup %3245  ;;  %3265 = vpow2.f32 %v1314_v0  ;;  %v1320_v17 = vmul.f32 1.442695, %v1164_v4  ;;  %2169 = vmatprep.mubr.f32.mxu1 %v3805_v7  ;;  %s4685_s30 = scalar_lea.vmem [#allocation3], %s2949_s18 }
 0x141   : > { %v1167_v18 = vmin.f32 %v989_v13, 0.0  ;;  %v4446_v19 = vpop.eup %3247  ;;  %3267 = vpow2.f32 %v1318_v3  ;;  %v1324_v21 = vmul.f32 1.442695, %v1166_v10  ;;  %v736_v23 = vpop.f32.mrb[16].mxu0  ;;  %s2845_s4 = sshll.u32 %s4685_s30, 4  ;;  %s4944_s4 = int_to_ptr.vmem [resolvable:$true] %s2845_s4 }
 0x142   : > { %v1322_v22 = vmul.f32 1.442695, %v1165_v12  ;;  %v4448_v24 = vpop.eup %3249  ;;  %3269 = vpow2.f32 %v1320_v17  ;;  %v1168_v27 = vmin.f32 %v736_v23, 0.0  ;;  %v993_v29 = vpop.f32.mrb[16].mxu1  ;;  %3093 = vmatmul.mubr.msk.f32.gmra.mrb[122].mxu0 %vm512_vm1, %v3047_v14  ;;  %s3725_s15 = scalar_lea.vmem %s4944_s4, 16384  ;;  %p3732_p3 = scmp.lt.s32.totalorder %s4944_s4, %s3730_s20 }
 0x143   : > { %v1326_v26 = vmul.f32 1.442695, %v1167_v18  ;;  %v738_v30 = vpop.f32.mrb[17].mxu0  ;;  %v4451_v31 = vpop.eup %3251  ;;  %3271 = vpow2.f32 %v1324_v21  ;;  %v1170_v33 = vmin.f32 %v993_v29, 0.0  ;;  %3127 = vmatmul.mubr.msk.f32.gmra.mrb[122].mxu1 %vm512_vm1, %v3047_v14  ;;  %1918 = vmatprep.mubr.f32.mxu0 %v3805_v7  ;;  %p3726_p0 = scmp.ne.s32.totalorder %s4944_s4, %s3725_s15  ;;  %p3733_p4 = scmp.lt.s32.totalorder %s3731_s23, %s3725_s15 }
 0x144   : > { %v1169_v34 = vmin.f32 %v738_v30, 0.0  ;;  %v995_v35 = vpop.f32.mrb[17].mxu1  ;;  %v4456_v38 = vpop.eup %3253  ;;  %3273 = vpow2.f32 %v1322_v22  ;;  %v1328_v39 = vmul.f32 1.442695, %v1168_v27  ;;  %2175 = vmatprep.mubr.f32.mxu1 %v3805_v7 }
 0x145   : > { %v1171_v40 = vmin.f32 %v995_v35, 0.0  ;;  %v4459_v41 = vpop.eup %3255  ;;  %3275 = vpow2.f32 %v1326_v26  ;;  %v1332_v43 = vmul.f32 1.442695, %v1170_v33  ;;  %v742_v46 = vpop.f32.mrb[18].mxu0  ;;  %p3727_p1 = pnand %p3726_p0, %p3863_p5  ;;  %p3734_p6 = por %p3733_p4, %p3732_p3 }
 0x146   : > { %v1330_v44 = vmul.f32 1.442695, %v1169_v34  ;;  %v4461_v47 = vpop.eup %3257  ;;  %3277 = vpow2.f32 %v1328_v39  ;;  %v1172_v50 = vmin.f32 %v742_v46, 0.0  ;;  %v999_v51 = vpop.f32.mrb[18].mxu1  ;;  %3094 = vmatmul.mubr.msk.f32.gmra.mrb[124].mxu0 %vm512_vm1, %v3048_v36 }
 0x147   : > { %v1334_v48 = vmul.f32 1.442695, %v1171_v40  ;;  %v744_v52 = vpop.f32.mrb[19].mxu0  ;;  %v4464_v53 = vpop.eup %3259  ;;  %3279 = vpow2.f32 %v1332_v43  ;;  %v1174_v55 = vmin.f32 %v999_v51, 0.0  ;;  %3128 = vmatmul.mubr.msk.f32.gmra.mrb[124].mxu1 %vm512_vm1, %v3048_v36  ;;  %1924 = vmatprep.mubr.f32.mxu0 %v3805_v7  ;;  %p3728_p2 = pneg %p3727_p1 }
 0x148   : > { %v1173_v56 = vmin.f32 %v744_v52, 0.0  ;;  %v1001_v57 = vpop.f32.mrb[19].mxu1  ;;  %v4469_v60 = vpop.eup %3261  ;;  %3281 = vpow2.f32 %v1330_v44  ;;  %v1336_v61 = vmul.f32 1.442695, %v1172_v50  ;;  %2181 = vmatprep.mubr.f32.mxu1 %v3805_v7 }
 0x149   : > { %v1175_v63 = vmin.f32 %v1001_v57, 0.0  ;;  %v4472_v0 = vpop.eup %3263  ;;  %3283 = vpow2.f32 %v1334_v48  ;;  %v1340_v1 = vmul.f32 1.442695, %v1174_v55  ;;  %v748_v4 = vpop.f32.mrb[20].mxu0  ;;  %p3735_p7 = pnand %p3734_p6, %p3728_p2 }
 0x14a   : > { %v1338_v3 = vmul.f32 1.442695, %v1173_v56  ;;  %v4474_v5 = vpop.eup %3265  ;;  %3285 = vpow2.f32 %v1336_v61  ;;  %v1176_v10 = vmin.f32 %v748_v4, 0.0  ;;  %v1005_v12 = vpop.f32.mrb[20].mxu1  ;;  %3095 = vmatmul.mubr.msk.f32.gmra.mrb[126].mxu0 %vm512_vm1, %v3049_v58 }
 0x14b   : > { %v1342_v6 = vmul.f32 1.442695, %v1175_v63  ;;  %v750_v13 = vpop.f32.mrb[21].mxu0  ;;  %v4477_v14 = vpop.eup %3267  ;;  %3287 = vpow2.f32 %v1340_v1  ;;  %v1178_v17 = vmin.f32 %v1005_v12, 0.0  ;;  %3129 = vmatmul.mubr.msk.f32.gmra.mrb[126].mxu1 %vm512_vm1, %v3049_v58 }
 0x14c   : > { %v1177_v7 = vmin.f32 %v750_v13, 0.0  ;;  %v1007_v18 = vpop.f32.mrb[21].mxu1  ;;  %v4480_v21 = vpop.eup %3269  ;;  %3289 = vpow2.f32 %v1338_v3  ;;  %v1344_v22 = vmul.f32 1.442695, %v1176_v10 }
 0x14d   : > { %v1179_v23 = vmin.f32 %v1007_v18, 0.0  ;;  %v4482_v26 = vpop.eup %3271  ;;  %3291 = vpow2.f32 %v1342_v6  ;;  %v1348_v27 = vmul.f32 1.442695, %v1178_v17  ;;  %v754_v30 = vpop.f32.mrb[22].mxu0 }
 0x14e   : > { %v1346_v29 = vmul.f32 1.442695, %v1177_v7  ;;  %v4484_v33 = vpop.eup %3273  ;;  %3293 = vpow2.f32 %v1344_v22  ;;  %v1180_v35 = vmin.f32 %v754_v30, 0.0  ;;  %v1011_v36 = vpop.f32.mrb[22].mxu1 }
 0x14f   : > { %v1350_v34 = vmul.f32 1.442695, %v1179_v23  ;;  %v756_v39 = vpop.f32.mrb[23].mxu0  ;;  %v4486_v40 = vpop.eup %3275  ;;  %3295 = vpow2.f32 %v1348_v27  ;;  %v1182_v43 = vmin.f32 %v1011_v36, 0.0 }
 0x150   : > { %v1181_v44 = vmin.f32 %v756_v39, 0.0  ;;  %v1013_v46 = vpop.f32.mrb[23].mxu1  ;;  %v4488_v48 = vpop.eup %3277  ;;  %3297 = vpow2.f32 %v1346_v29  ;;  %v1352_v50 = vmul.f32 1.442695, %v1180_v35 }
 0x151   : > { %v1183_v51 = vmin.f32 %v1013_v46, 0.0  ;;  %v4490_v52 = vpop.eup %3279  ;;  %3299 = vpow2.f32 %v1350_v34  ;;  %v1356_v55 = vmul.f32 1.442695, %v1182_v43  ;;  %v760_v57 = vpop.f32.mrb[24].mxu0 }
 0x152   : > { %v1354_v56 = vmul.f32 1.442695, %v1181_v44  ;;  %v4492_v58 = vpop.eup %3281  ;;  %3301 = vpow2.f32 %v1352_v50  ;;  %v1184_v63 = vmin.f32 %v760_v57, 0.0  ;;  %v1017_v1 = vpop.f32.mrb[24].mxu1 }
 0x153   : > { %v1358_v61 = vmul.f32 1.442695, %v1183_v51  ;;  %v762_v3 = vpop.f32.mrb[25].mxu0  ;;  %v4494_v4 = vpop.eup %3283  ;;  %3303 = vpow2.f32 %v1356_v55  ;;  %v1186_v6 = vmin.f32 %v1017_v1, 0.0 }
 0x154   : > { %v1185_v10 = vmin.f32 %v762_v3, 0.0  ;;  %v1019_v12 = vpop.f32.mrb[25].mxu1  ;;  %v4496_v13 = vpop.eup %3285  ;;  %3305 = vpow2.f32 %v1354_v56  ;;  %v1360_v17 = vmul.f32 1.442695, %v1184_v63 }
 0x155   : > { %v1187_v7 = vmin.f32 %v1019_v12, 0.0  ;;  %v4498_v18 = vpop.eup %3287  ;;  %3307 = vpow2.f32 %v1358_v61  ;;  %v1364_v22 = vmul.f32 1.442695, %v1186_v6  ;;  %v766_v27 = vpop.f32.mrb[26].mxu0 }
 0x156   : > { %v1362_v23 = vmul.f32 1.442695, %v1185_v10  ;;  %v4500_v29 = vpop.eup %3289  ;;  %3309 = vpow2.f32 %v1360_v17  ;;  %v1188_v34 = vmin.f32 %v766_v27, 0.0  ;;  %v1023_v35 = vpop.f32.mrb[26].mxu1 }
 0x157   : > { %v1366_v30 = vmul.f32 1.442695, %v1187_v7  ;;  %v768_v36 = vpop.f32.mrb[27].mxu0  ;;  %v4502_v39 = vpop.eup %3291  ;;  %3311 = vpow2.f32 %v1364_v22  ;;  %v1190_v43 = vmin.f32 %v1023_v35, 0.0 }
 0x158   : > { %v1189_v44 = vmin.f32 %v768_v36, 0.0  ;;  %v1025_v46 = vpop.f32.mrb[27].mxu1  ;;  %v4504_v50 = vpop.eup %3293  ;;  %3313 = vpow2.f32 %v1362_v23  ;;  %v1368_v51 = vmul.f32 1.442695, %v1188_v34 }
 0x159   : > { %v1191_v55 = vmin.f32 %v1025_v46, 0.0  ;;  %v4506_v56 = vpop.eup %3295  ;;  %3315 = vpow2.f32 %v1366_v30  ;;  %v1372_v57 = vmul.f32 1.442695, %v1190_v43  ;;  %v772_v63 = vpop.f32.mrb[28].mxu0 }
 0x15a   : > { %v1370_v61 = vmul.f32 1.442695, %v1189_v44  ;;  %v4508_v1 = vpop.eup %3297  ;;  %3317 = vpow2.f32 %v1368_v51  ;;  %v1192_v6 = vmin.f32 %v772_v63, 0.0  ;;  %v1029_v10 = vpop.f32.mrb[28].mxu1 }
 0x15b   : > { %v1374_v3 = vmul.f32 1.442695, %v1191_v55  ;;  %v774_v12 = vpop.f32.mrb[29].mxu0  ;;  %v4510_v17 = vpop.eup %3299  ;;  %3319 = vpow2.f32 %v1372_v57  ;;  %v1194_v7 = vmin.f32 %v1029_v10, 0.0 }
 0x15c   : > { %5001 = vst [vmem:[#allocation6_spill] sm:$0xff] %v4510_v17  ;;  %v1193_v22 = vmin.f32 %v774_v12, 0.0  ;;  %v1031_v23 = vpop.f32.mrb[29].mxu1  ;;  %v4512_v27 = vpop.eup %3301  ;;  %3321 = vpow2.f32 %v1370_v61  ;;  %v1376_v30 = vmul.f32 1.442695, %v1192_v6 }
 0x15d   : > { %5002 = vst [vmem:[#allocation7_spill] sm:$0xff] %v4512_v27  ;;  %v1195_v34 = vmin.f32 %v1031_v23, 0.0  ;;  %v4514_v35 = vpop.eup %3303  ;;  %3323 = vpow2.f32 %v1374_v3  ;;  %v1380_v36 = vmul.f32 1.442695, %v1194_v7  ;;  %v778_v44 = vpop.f32.mrb[30].mxu0 }
 0x15e   : > { %5003 = vst [vmem:[#allocation8_spill] sm:$0xff] %v4514_v35  ;;  %v1378_v43 = vmul.f32 1.442695, %v1193_v22  ;;  %v4516_v46 = vpop.eup %3305  ;;  %3325 = vpow2.f32 %v1376_v30  ;;  %v1196_v55 = vmin.f32 %v778_v44, 0.0  ;;  %v1035_v57 = vpop.f32.mrb[30].mxu1 }
 0x15f   : > { %5004 = vst [vmem:[#allocation9_spill] sm:$0xff] %v4516_v46  ;;  %v1382_v51 = vmul.f32 1.442695, %v1195_v34  ;;  %v780_v63 = vpop.f32.mrb[31].mxu0  ;;  %v4518_v10 = vpop.eup %3307  ;;  %3327 = vpow2.f32 %v1380_v36  ;;  %v1198_v12 = vmin.f32 %v1035_v57, 0.0 }
 0x160   : > { %5005 = vst [vmem:[#allocation10_spill] sm:$0xff] %v4518_v10  ;;  %v1197_v61 = vmin.f32 %v780_v63, 0.0  ;;  %v1037_v6 = vpop.f32.mrb[31].mxu1  ;;  %v4520_v23 = vpop.eup %3309  ;;  %3329 = vpow2.f32 %v1378_v43  ;;  %v1384_v3 = vmul.f32 1.442695, %v1196_v55 }
 0x161   : > { %5006 = vst [vmem:[#allocation11_spill] sm:$0xff] %v4520_v23  ;;  %v1199_v7 = vmin.f32 %v1037_v6, 0.0  ;;  %v4522_v22 = vpop.eup %3311  ;;  %3331 = vpow2.f32 %v1382_v51  ;;  %v1388_v46 = vmul.f32 1.442695, %v1198_v12  ;;  %v784_v34 = vpop.f32.mrb[32].mxu0 }
 0x162   : > { %5007 = vst [vmem:[#allocation12_spill] sm:$0xff] %v4522_v22  ;;  %v1386_v30 = vmul.f32 1.442695, %v1197_v61  ;;  %v4524_v44 = vpop.eup %3313  ;;  %3333 = vpow2.f32 %v1384_v3  ;;  %v1200_v10 = vmin.f32 %v784_v34, 0.0  ;;  %v1041_v36 = vpop.f32.mrb[32].mxu1 }
 0x163   : > { %5008 = vst [vmem:[#allocation13_spill] sm:$0xff] %v4524_v44  ;;  %v1390_v35 = vmul.f32 1.442695, %v1199_v7  ;;  %v786_v57 = vpop.f32.mrb[33].mxu0  ;;  %v4526_v63 = vpop.eup %3315  ;;  %3335 = vpow2.f32 %v1388_v46  ;;  %v1202_v23 = vmin.f32 %v1041_v36, 0.0 }
 0x164   : > { %5009 = vst [vmem:[#allocation14_spill] sm:$0xff] %v4526_v63  ;;  %v1201_v43 = vmin.f32 %v786_v57, 0.0  ;;  %v1043_v55 = vpop.f32.mrb[33].mxu1  ;;  %v4528_v6 = vpop.eup %3317  ;;  %3337 = vpow2.f32 %v1386_v30  ;;  %v1392_v51 = vmul.f32 1.442695, %v1200_v10 }
 0x165   : > { %5010 = vst [vmem:[#allocation15_spill] sm:$0xff] %v4528_v6  ;;  %v1203_v12 = vmin.f32 %v1043_v55, 0.0  ;;  %v4530_v61 = vpop.eup %3319  ;;  %3339 = vpow2.f32 %v1390_v35  ;;  %v1396_v44 = vmul.f32 1.442695, %v1202_v23  ;;  %v790_v7 = vpop.f32.mrb[34].mxu0 }
 0x166   : > { %5011 = vst [vmem:[#allocation16_spill] sm:$0xff] %v4530_v61  ;;  %v1394_v3 = vmul.f32 1.442695, %v1201_v43  ;;  %v4532_v34 = vpop.eup %3321  ;;  %3341 = vpow2.f32 %v1392_v51  ;;  %v1204_v63 = vmin.f32 %v790_v7, 0.0  ;;  %v1047_v46 = vpop.f32.mrb[34].mxu1 }
 0x167   : > { %5012 = vst [vmem:[#allocation17_spill] sm:$0xff] %v4532_v34  ;;  %v1398_v22 = vmul.f32 1.442695, %v1203_v12  ;;  %v792_v36 = vpop.f32.mrb[35].mxu0  ;;  %v4534_v57 = vpop.eup %3323  ;;  %3343 = vpow2.f32 %v1396_v44  ;;  %v1206_v6 = vmin.f32 %v1047_v46, 0.0 }
 0x168   : > { %5013 = vst [vmem:[#allocation18_spill] sm:$0xff] %v4534_v57  ;;  %v1205_v30 = vmin.f32 %v792_v36, 0.0  ;;  %v1049_v10 = vpop.f32.mrb[35].mxu1  ;;  %v4536_v55 = vpop.eup %3325  ;;  %3345 = vpow2.f32 %v1394_v3  ;;  %v1400_v35 = vmul.f32 1.442695, %v1204_v63 }
 0x169   : > { %5014 = vst [vmem:[#allocation19_spill] sm:$0xff] %v4536_v55  ;;  %v1207_v23 = vmin.f32 %v1049_v10, 0.0  ;;  %v4538_v43 = vpop.eup %3327  ;;  %3347 = vpow2.f32 %v1398_v22  ;;  %v1404_v34 = vmul.f32 1.442695, %v1206_v6  ;;  %v796_v12 = vpop.f32.mrb[36].mxu0 }
 0x16a   : > { %5015 = vst [vmem:[#allocation20_spill] sm:$0xff] %v4538_v43  ;;  %v1402_v51 = vmul.f32 1.442695, %v1205_v30  ;;  %v4540_v7 = vpop.eup %3329  ;;  %3349 = vpow2.f32 %v1400_v35  ;;  %v1208_v57 = vmin.f32 %v796_v12, 0.0  ;;  %v1053_v44 = vpop.f32.mrb[36].mxu1 }
 0x16b   : > { %5016 = vst [vmem:[#allocation21_spill] sm:$0xff] %v4540_v7  ;;  %v1406_v61 = vmul.f32 1.442695, %v1207_v23  ;;  %v798_v46 = vpop.f32.mrb[37].mxu0  ;;  %v4542_v36 = vpop.eup %3331  ;;  %3351 = vpow2.f32 %v1404_v34  ;;  %v1210_v55 = vmin.f32 %v1053_v44, 0.0 }
 0x16c   : > { %5017 = vst [vmem:[#allocation22_spill] sm:$0xff] %v4542_v36  ;;  %v1209_v3 = vmin.f32 %v798_v46, 0.0  ;;  %v1055_v63 = vpop.f32.mrb[37].mxu1  ;;  %v4544_v10 = vpop.eup %3333  ;;  %3353 = vpow2.f32 %v1402_v51  ;;  %v1408_v22 = vmul.f32 1.442695, %v1208_v57 }
 0x16d   : > { %5018 = vst [vmem:[#allocation23_spill] sm:$0xff] %v4544_v10  ;;  %v1211_v6 = vmin.f32 %v1055_v63, 0.0  ;;  %v4546_v30 = vpop.eup %3335  ;;  %3355 = vpow2.f32 %v1406_v61  ;;  %v1412_v7 = vmul.f32 1.442695, %v1210_v55  ;;  %v802_v23 = vpop.f32.mrb[38].mxu0 }
 0x16e   : > { %5019 = vst [vmem:[#allocation24_spill] sm:$0xff] %v4546_v30  ;;  %v1410_v35 = vmul.f32 1.442695, %v1209_v3  ;;  %v4548_v12 = vpop.eup %3337  ;;  %3357 = vpow2.f32 %v1408_v22  ;;  %v1212_v36 = vmin.f32 %v802_v23, 0.0  ;;  %v1059_v34 = vpop.f32.mrb[38].mxu1 }
 0x16f   : > { %5020 = vst [vmem:[#allocation25_spill] sm:$0xff] %v4548_v12  ;;  %v1414_v43 = vmul.f32 1.442695, %v1211_v6  ;;  %v804_v44 = vpop.f32.mrb[39].mxu0  ;;  %v4550_v46 = vpop.eup %3339  ;;  %3359 = vpow2.f32 %v1412_v7  ;;  %v1214_v10 = vmin.f32 %v1059_v34, 0.0 }
 0x170   : > { %5021 = vst [vmem:[#allocation26_spill] sm:$0xff] %v4550_v46  ;;  %v1213_v51 = vmin.f32 %v804_v44, 0.0  ;;  %v1061_v57 = vpop.f32.mrb[39].mxu1  ;;  %v4552_v63 = vpop.eup %3341  ;;  %3361 = vpow2.f32 %v1410_v35  ;;  %v1416_v61 = vmul.f32 1.442695, %v1212_v36 }
 0x171   : > { %5022 = vst [vmem:[#allocation27_spill] sm:$0xff] %v4552_v63  ;;  %v1215_v55 = vmin.f32 %v1061_v57, 0.0  ;;  %v4554_v3 = vpop.eup %3343  ;;  %3363 = vpow2.f32 %v1414_v43  ;;  %v1420_v12 = vmul.f32 1.442695, %v1214_v10  ;;  %v808_v6 = vpop.f32.mrb[40].mxu0 }
 0x172   : > { %5023 = vst [vmem:[#allocation28_spill] sm:$0xff] %v4554_v3  ;;  %v1418_v22 = vmul.f32 1.442695, %v1213_v51  ;;  %v4556_v23 = vpop.eup %3345  ;;  %3365 = vpow2.f32 %v1416_v61  ;;  %v1216_v46 = vmin.f32 %v808_v6, 0.0  ;;  %v1065_v7 = vpop.f32.mrb[40].mxu1 }
 0x173   : > { %5024 = vst [vmem:[#allocation29_spill] sm:$0xff] %v4556_v23  ;;  %v1422_v30 = vmul.f32 1.442695, %v1215_v55  ;;  %v810_v34 = vpop.f32.mrb[41].mxu0  ;;  %v4558_v44 = vpop.eup %3347  ;;  %3367 = vpow2.f32 %v1420_v12  ;;  %v1218_v63 = vmin.f32 %v1065_v7, 0.0 }
 0x174   : > { %5025 = vst [vmem:[#allocation30_spill] sm:$0xff] %v4558_v44  ;;  %v1217_v35 = vmin.f32 %v810_v34, 0.0  ;;  %v1067_v36 = vpop.f32.mrb[41].mxu1  ;;  %v4560_v57 = vpop.eup %3349  ;;  %3369 = vpow2.f32 %v1418_v22  ;;  %v1424_v43 = vmul.f32 1.442695, %v1216_v46 }
 0x175   : > { %5026 = vst [vmem:[#allocation31_spill] sm:$0xff] %v4560_v57  ;;  %v1219_v10 = vmin.f32 %v1067_v36, 0.0  ;;  %v4562_v51 = vpop.eup %3351  ;;  %3371 = vpow2.f32 %v1422_v30  ;;  %v1428_v23 = vmul.f32 1.442695, %v1218_v63  ;;  %v814_v55 = vpop.f32.mrb[42].mxu0 }
 0x176   : > { %5027 = vst [vmem:[#allocation32_spill] sm:$0xff] %v4562_v51  ;;  %v1426_v61 = vmul.f32 1.442695, %v1217_v35  ;;  %v4564_v6 = vpop.eup %3353  ;;  %3373 = vpow2.f32 %v1424_v43  ;;  %v1220_v44 = vmin.f32 %v814_v55, 0.0  ;;  %v1071_v12 = vpop.f32.mrb[42].mxu1 }
 0x177   : > { %5028 = vst [vmem:[#allocation33_spill] sm:$0xff] %v4564_v6  ;;  %v1430_v3 = vmul.f32 1.442695, %v1219_v10  ;;  %v816_v7 = vpop.f32.mrb[43].mxu0  ;;  %v4566_v34 = vpop.eup %3355  ;;  %3375 = vpow2.f32 %v1428_v23  ;;  %v1222_v57 = vmin.f32 %v1071_v12, 0.0 }
 0x178   : > { %5029 = vst [vmem:[#allocation34_spill] sm:$0xff] %v4566_v34  ;;  %v1221_v22 = vmin.f32 %v816_v7, 0.0  ;;  %v1073_v46 = vpop.f32.mrb[43].mxu1  ;;  %v4568_v36 = vpop.eup %3357  ;;  %3377 = vpow2.f32 %v1426_v61  ;;  %v1432_v30 = vmul.f32 1.442695, %v1220_v44 }
 0x179   : > { %5030 = vst [vmem:[#allocation35_spill] sm:$0xff] %v4568_v36  ;;  %v1223_v63 = vmin.f32 %v1073_v46, 0.0  ;;  %v4570_v35 = vpop.eup %3359  ;;  %3379 = vpow2.f32 %v1430_v3  ;;  %v1436_v6 = vmul.f32 1.442695, %v1222_v57  ;;  %v820_v10 = vpop.f32.mrb[44].mxu0 }
 0x17a   : > { %5031 = vst [vmem:[#allocation36_spill] sm:$0xff] %v4570_v35  ;;  %v1434_v43 = vmul.f32 1.442695, %v1221_v22  ;;  %v4572_v55 = vpop.eup %3361  ;;  %3381 = vpow2.f32 %v1432_v30  ;;  %v1224_v34 = vmin.f32 %v820_v10, 0.0  ;;  %v1077_v23 = vpop.f32.mrb[44].mxu1 }
 0x17b   : > { %5032 = vst [vmem:[#allocation37_spill] sm:$0xff] %v4572_v55  ;;  %v1438_v51 = vmul.f32 1.442695, %v1223_v63  ;;  %v822_v12 = vpop.f32.mrb[45].mxu0  ;;  %v4574_v7 = vpop.eup %3363  ;;  %3383 = vpow2.f32 %v1436_v6  ;;  %v1226_v36 = vmin.f32 %v1077_v23, 0.0 }
 0x17c   : > { %5033 = vst [vmem:[#allocation38_spill] sm:$0xff] %v4574_v7  ;;  %v1225_v61 = vmin.f32 %v822_v12, 0.0  ;;  %v1079_v44 = vpop.f32.mrb[45].mxu1  ;;  %v4576_v46 = vpop.eup %3365  ;;  %3385 = vpow2.f32 %v1434_v43  ;;  %v1440_v3 = vmul.f32 1.442695, %v1224_v34 }
 0x17d   : > { %5034 = vst [vmem:[#allocation39_spill] sm:$0xff] %v4576_v46  ;;  %v1227_v57 = vmin.f32 %v1079_v44, 0.0  ;;  %v4578_v22 = vpop.eup %3367  ;;  %3387 = vpow2.f32 %v1438_v51  ;;  %v1444_v55 = vmul.f32 1.442695, %v1226_v36  ;;  %v826_v63 = vpop.f32.mrb[46].mxu0 }
 0x17e   : > { %5035 = vst [vmem:[#allocation40_spill] sm:$0xff] %v4578_v22  ;;  %v1442_v30 = vmul.f32 1.442695, %v1225_v61  ;;  %v4580_v10 = vpop.eup %3369  ;;  %3389 = vpow2.f32 %v1440_v3  ;;  %v1228_v7 = vmin.f32 %v826_v63, 0.0  ;;  %v1083_v6 = vpop.f32.mrb[46].mxu1 }
 0x17f   : > { %5036 = vst [vmem:[#allocation41_spill] sm:$0xff] %v4580_v10  ;;  %v1446_v35 = vmul.f32 1.442695, %v1227_v57  ;;  %v828_v23 = vpop.f32.mrb[47].mxu0  ;;  %v4582_v12 = vpop.eup %3371  ;;  %3391 = vpow2.f32 %v1444_v55  ;;  %v1230_v46 = vmin.f32 %v1083_v6, 0.0 }
 0x180   : > { %5037 = vst [vmem:[#allocation42_spill] sm:$0xff] %v4582_v12  ;;  %v1229_v43 = vmin.f32 %v828_v23, 0.0  ;;  %v1085_v34 = vpop.f32.mrb[47].mxu1  ;;  %v4584_v44 = vpop.eup %3373  ;;  %3393 = vpow2.f32 %v1442_v30  ;;  %v1448_v51 = vmul.f32 1.442695, %v1228_v7 }
 0x181   : > { %5038 = vst [vmem:[#allocation43_spill] sm:$0xff] %v4584_v44  ;;  %v1231_v36 = vmin.f32 %v1085_v34, 0.0  ;;  %v4586_v61 = vpop.eup %3375  ;;  %3395 = vpow2.f32 %v1446_v35  ;;  %v1452_v10 = vmul.f32 1.442695, %v1230_v46  ;;  %v832_v57 = vpop.f32.mrb[48].mxu0 }
 0x182   : > { %5039 = vst [vmem:[#allocation44_spill] sm:$0xff] %v4586_v61  ;;  %v1450_v3 = vmul.f32 1.442695, %v1229_v43  ;;  %v4588_v63 = vpop.eup %3377  ;;  %3397 = vpow2.f32 %v1448_v51  ;;  %v1232_v12 = vmin.f32 %v832_v57, 0.0  ;;  %v1089_v55 = vpop.f32.mrb[48].mxu1 }
 0x183   : > { %5040 = vst [vmem:[#allocation45_spill] sm:$0xff] %v4588_v63  ;;  %v1454_v22 = vmul.f32 1.442695, %v1231_v36  ;;  %v834_v6 = vpop.f32.mrb[49].mxu0  ;;  %v4590_v23 = vpop.eup %3379  ;;  %3399 = vpow2.f32 %v1452_v10  ;;  %v1234_v44 = vmin.f32 %v1089_v55, 0.0 }
 0x184   : > { %5041 = vst [vmem:[#allocation46_spill] sm:$0xff] %v4590_v23  ;;  %v1233_v30 = vmin.f32 %v834_v6, 0.0  ;;  %v1091_v7 = vpop.f32.mrb[49].mxu1  ;;  %v4592_v34 = vpop.eup %3381  ;;  %3401 = vpow2.f32 %v1450_v3  ;;  %v1456_v35 = vmul.f32 1.442695, %v1232_v12 }
 0x185   : > { %5042 = vst [vmem:[#allocation47_spill] sm:$0xff] %v4592_v34  ;;  %v1235_v46 = vmin.f32 %v1091_v7, 0.0  ;;  %v4594_v43 = vpop.eup %3383  ;;  %3403 = vpow2.f32 %v1454_v22  ;;  %v1460_v63 = vmul.f32 1.442695, %v1234_v44  ;;  %v838_v36 = vpop.f32.mrb[50].mxu0 }
 0x186   : > { %5043 = vst [vmem:[#allocation48_spill] sm:$0xff] %v4594_v43  ;;  %v1458_v51 = vmul.f32 1.442695, %v1233_v30  ;;  %v4596_v57 = vpop.eup %3385  ;;  %3405 = vpow2.f32 %v1456_v35  ;;  %v1236_v23 = vmin.f32 %v838_v36, 0.0  ;;  %v1095_v10 = vpop.f32.mrb[50].mxu1 }
 0x187   : > { %5044 = vst [vmem:[#allocation49_spill] sm:$0xff] %v4596_v57  ;;  %v1462_v61 = vmul.f32 1.442695, %v1235_v46  ;;  %v840_v55 = vpop.f32.mrb[51].mxu0  ;;  %v4598_v6 = vpop.eup %3387  ;;  %3407 = vpow2.f32 %v1460_v63  ;;  %v1238_v34 = vmin.f32 %v1095_v10, 0.0 }
 0x188   : > { %5045 = vst [vmem:[#allocation50_spill] sm:$0xff] %v4598_v6  ;;  %v1237_v3 = vmin.f32 %v840_v55, 0.0  ;;  %v1097_v12 = vpop.f32.mrb[51].mxu1  ;;  %v4600_v7 = vpop.eup %3389  ;;  %3409 = vpow2.f32 %v1458_v51  ;;  %v1464_v22 = vmul.f32 1.442695, %v1236_v23 }
 0x189   : > { %5046 = vst [vmem:[#allocation51_spill] sm:$0xff] %v4600_v7  ;;  %v1239_v44 = vmin.f32 %v1097_v12, 0.0  ;;  %v4602_v30 = vpop.eup %3391  ;;  %3411 = vpow2.f32 %v1462_v61  ;;  %v1468_v57 = vmul.f32 1.442695, %v1238_v34  ;;  %v844_v46 = vpop.f32.mrb[52].mxu0 }
 0x18a   : > { %5047 = vst [vmem:[#allocation52_spill] sm:$0xff] %v4602_v30  ;;  %v1466_v35 = vmul.f32 1.442695, %v1237_v3  ;;  %v4604_v36 = vpop.eup %3393  ;;  %3413 = vpow2.f32 %v1464_v22  ;;  %v1240_v6 = vmin.f32 %v844_v46, 0.0  ;;  %v1101_v63 = vpop.f32.mrb[52].mxu1 }
 0x18b   : > { %5048 = vst [vmem:[#allocation53_spill] sm:$0xff] %v4604_v36  ;;  %v1470_v43 = vmul.f32 1.442695, %v1239_v44  ;;  %v846_v10 = vpop.f32.mrb[53].mxu0  ;;  %v4606_v55 = vpop.eup %3395  ;;  %3415 = vpow2.f32 %v1468_v57  ;;  %v1242_v7 = vmin.f32 %v1101_v63, 0.0 }
 0x18c   : > { %5049 = vst [vmem:[#allocation54_spill] sm:$0xff] %v4606_v55  ;;  %v1241_v51 = vmin.f32 %v846_v10, 0.0  ;;  %v1103_v23 = vpop.f32.mrb[53].mxu1  ;;  %v4608_v12 = vpop.eup %3397  ;;  %3417 = vpow2.f32 %v1466_v35  ;;  %v1472_v61 = vmul.f32 1.442695, %v1240_v6 }
 0x18d   : > { %5050 = vst [vmem:[#allocation55_spill] sm:$0xff] %v4608_v12  ;;  %v1243_v34 = vmin.f32 %v1103_v23, 0.0  ;;  %v4610_v3 = vpop.eup %3399  ;;  %3419 = vpow2.f32 %v1470_v43  ;;  %v1476_v36 = vmul.f32 1.442695, %v1242_v7  ;;  %v850_v44 = vpop.f32.mrb[54].mxu0 }
 0x18e   : > { %5051 = vst [vmem:[#allocation56_spill] sm:$0xff] %v4610_v3  ;;  %v1474_v22 = vmul.f32 1.442695, %v1241_v51  ;;  %v4612_v46 = vpop.eup %3401  ;;  %3421 = vpow2.f32 %v1472_v61  ;;  %v1244_v55 = vmin.f32 %v850_v44, 0.0  ;;  %v1107_v57 = vpop.f32.mrb[54].mxu1 }
 0x18f   : > { %5052 = vst [vmem:[#allocation57_spill] sm:$0xff] %v4612_v46  ;;  %v1478_v30 = vmul.f32 1.442695, %v1243_v34  ;;  %v852_v63 = vpop.f32.mrb[55].mxu0  ;;  %v4614_v10 = vpop.eup %3403  ;;  %3423 = vpow2.f32 %v1476_v36  ;;  %v1246_v12 = vmin.f32 %v1107_v57, 0.0 }
 0x190   : > { %5053 = vst [vmem:[#allocation58_spill] sm:$0xff] %v4614_v10  ;;  %v1245_v35 = vmin.f32 %v852_v63, 0.0  ;;  %v1109_v6 = vpop.f32.mrb[55].mxu1  ;;  %v4616_v23 = vpop.eup %3405  ;;  %3425 = vpow2.f32 %v1474_v22  ;;  %v1480_v43 = vmul.f32 1.442695, %v1244_v55 }
 0x191   : > { %5054 = vst [vmem:[#allocation59_spill] sm:$0xff] %v4616_v23  ;;  %v1247_v7 = vmin.f32 %v1109_v6, 0.0  ;;  %v4618_v51 = vpop.eup %3407  ;;  %3427 = vpow2.f32 %v1478_v30  ;;  %v1484_v46 = vmul.f32 1.442695, %v1246_v12  ;;  %v856_v34 = vpop.f32.mrb[56].mxu0 }
 0x192   : > { %5055 = vst [vmem:[#allocation60_spill] sm:$0xff] %v4618_v51  ;;  %v1482_v61 = vmul.f32 1.442695, %v1245_v35  ;;  %v4620_v44 = vpop.eup %3409  ;;  %3429 = vpow2.f32 %v1480_v43  ;;  %v1248_v10 = vmin.f32 %v856_v34, 0.0  ;;  %v1113_v36 = vpop.f32.mrb[56].mxu1 }
 0x193   : > { %5056 = vst [vmem:[#allocation61_spill] sm:$0xff] %v4620_v44  ;;  %v1486_v3 = vmul.f32 1.442695, %v1247_v7  ;;  %v858_v57 = vpop.f32.mrb[57].mxu0  ;;  %v4622_v63 = vpop.eup %3411  ;;  %3431 = vpow2.f32 %v1484_v46  ;;  %v1250_v23 = vmin.f32 %v1113_v36, 0.0 }
 0x194   : > { %5057 = vst [vmem:[#allocation62_spill] sm:$0xff] %v4622_v63  ;;  %v1249_v22 = vmin.f32 %v858_v57, 0.0  ;;  %v1115_v55 = vpop.f32.mrb[57].mxu1  ;;  %v4624_v6 = vpop.eup %3413  ;;  %3433 = vpow2.f32 %v1482_v61  ;;  %v1488_v30 = vmul.f32 1.442695, %v1248_v10 }
 0x195   : > { %5058 = vst [vmem:[#allocation63_spill] sm:$0xff] %v4624_v6  ;;  %v1251_v12 = vmin.f32 %v1115_v55, 0.0  ;;  %v4626_v35 = vpop.eup %3415  ;;  %3435 = vpow2.f32 %v1486_v3  ;;  %v1492_v44 = vmul.f32 1.442695, %v1250_v23  ;;  %v862_v7 = vpop.f32.mrb[58].mxu0 }
 0x196   : > { %5059 = vst [vmem:[#allocation64_spill] sm:$0xff] %v4626_v35  ;;  %v1490_v43 = vmul.f32 1.442695, %v1249_v22  ;;  %v4628_v34 = vpop.eup %3417  ;;  %3437 = vpow2.f32 %v1488_v30  ;;  %v1252_v63 = vmin.f32 %v862_v7, 0.0  ;;  %v1119_v46 = vpop.f32.mrb[58].mxu1 }
 0x197   : > { %5060 = vst [vmem:[#allocation65_spill] sm:$0xff] %v4628_v34  ;;  %v1494_v51 = vmul.f32 1.442695, %v1251_v12  ;;  %v864_v36 = vpop.f32.mrb[59].mxu0  ;;  %v4630_v57 = vpop.eup %3419  ;;  %3439 = vpow2.f32 %v1492_v44  ;;  %v1254_v6 = vmin.f32 %v1119_v46, 0.0 }
 0x198   : > { %5061 = vst [vmem:[#allocation66_spill] sm:$0xff] %v4630_v57  ;;  %v1253_v61 = vmin.f32 %v864_v36, 0.0  ;;  %v1121_v10 = vpop.f32.mrb[59].mxu1  ;;  %v4632_v55 = vpop.eup %3421  ;;  %3441 = vpow2.f32 %v1490_v43  ;;  %v1496_v3 = vmul.f32 1.442695, %v1252_v63 }
 0x199   : > { %5062 = vst [vmem:[#allocation67_spill] sm:$0xff] %v4632_v55  ;;  %v1255_v23 = vmin.f32 %v1121_v10, 0.0  ;;  %v4634_v22 = vpop.eup %3423  ;;  %3443 = vpow2.f32 %v1494_v51  ;;  %v1500_v34 = vmul.f32 1.442695, %v1254_v6  ;;  %v868_v12 = vpop.f32.mrb[60].mxu0 }
 0x19a   : > { %5063 = vst [vmem:[#allocation68_spill] sm:$0xff] %v4634_v22  ;;  %v1498_v30 = vmul.f32 1.442695, %v1253_v61  ;;  %v4636_v7 = vpop.eup %3425  ;;  %3445 = vpow2.f32 %v1496_v3  ;;  %v1256_v57 = vmin.f32 %v868_v12, 0.0  ;;  %v1125_v44 = vpop.f32.mrb[60].mxu1 }
 0x19b   : > { %5064 = vst [vmem:[#allocation69_spill] sm:$0xff] %v4636_v7  ;;  %v1502_v35 = vmul.f32 1.442695, %v1255_v23  ;;  %v870_v46 = vpop.f32.mrb[61].mxu0  ;;  %v4638_v36 = vpop.eup %3427  ;;  %3447 = vpow2.f32 %v1500_v34  ;;  %v1258_v55 = vmin.f32 %v1125_v44, 0.0 }
 0x19c   : > { %5065 = vst [vmem:[#allocation70_spill] sm:$0xff] %v4638_v36  ;;  %v1257_v43 = vmin.f32 %v870_v46, 0.0  ;;  %v1127_v63 = vpop.f32.mrb[61].mxu1  ;;  %v4640_v10 = vpop.eup %3429  ;;  %3449 = vpow2.f32 %v1498_v30  ;;  %v1504_v51 = vmul.f32 1.442695, %v1256_v57 }
 0x19d   : > { %5066 = vst [vmem:[#allocation71_spill] sm:$0xff] %v4640_v10  ;;  %v1259_v6 = vmin.f32 %v1127_v63, 0.0  ;;  %v4642_v61 = vpop.eup %3431  ;;  %3451 = vpow2.f32 %v1502_v35  ;;  %v1508_v7 = vmul.f32 1.442695, %v1258_v55  ;;  %v874_v23 = vpop.f32.mrb[62].mxu0 }
 0x19e   : > { %5067 = vst [vmem:[#allocation72_spill] sm:$0xff] %v4642_v61  ;;  %v1506_v3 = vmul.f32 1.442695, %v1257_v43  ;;  %v4644_v12 = vpop.eup %3433  ;;  %3453 = vpow2.f32 %v1504_v51  ;;  %v1260_v36 = vmin.f32 %v874_v23, 0.0  ;;  %v1131_v34 = vpop.f32.mrb[62].mxu1 }
 0x19f   : > { %5068 = vst [vmem:[#allocation73_spill] sm:$0xff] %v4644_v12  ;;  %v1510_v22 = vmul.f32 1.442695, %v1259_v6  ;;  %v876_v44 = vpop.f32.mrb[63].mxu0  ;;  %v4646_v46 = vpop.eup %3435  ;;  %3455 = vpow2.f32 %v1508_v7  ;;  %v1262_v10 = vmin.f32 %v1131_v34, 0.0 }
 0x1a0   : > { %5069 = vst [vmem:[#allocation74_spill] sm:$0xff] %v4646_v46  ;;  %v1261_v30 = vmin.f32 %v876_v44, 0.0  ;;  %v1133_v57 = vpop.f32.mrb[63].mxu1  ;;  %v4648_v63 = vpop.eup %3437  ;;  %3457 = vpow2.f32 %v1506_v3  ;;  %v1512_v35 = vmul.f32 1.442695, %v1260_v36 }
 0x1a1   : > { %5070 = vst [vmem:[#allocation75_spill] sm:$0xff] %v4648_v63  ;;  %v1263_v55 = vmin.f32 %v1133_v57, 0.0  ;;  %v4650_v43 = vpop.eup %3439  ;;  %3459 = vpow2.f32 %v1510_v22  ;;  %v1516_v12 = vmul.f32 1.442695, %v1262_v10  ;;  %v1740_v6 = vpop.f32.mrb[64].mxu0 }
 0x1a2   : > { %5071 = vst [vmem:[#allocation76_spill] sm:$0xff] %v4650_v43  ;;  %v1514_v51 = vmul.f32 1.442695, %v1261_v30  ;;  %v4652_v23 = vpop.eup %3441  ;;  %3461 = vpow2.f32 %v1512_v35  ;;  %v2188_v46 = vmin.f32 %v1740_v6, 0.0  ;;  %v1997_v7 = vpop.f32.mrb[64].mxu1 }
 0x1a3   : > { %5072 = vst [vmem:[#allocation77_spill] sm:$0xff] %v4652_v23  ;;  %v1518_v61 = vmul.f32 1.442695, %v1263_v55  ;;  %v1742_v34 = vpop.f32.mrb[65].mxu0  ;;  %v4654_v44 = vpop.eup %3443  ;;  %3463 = vpow2.f32 %v1516_v12  ;;  %v2190_v63 = vmin.f32 %v1997_v7, 0.0 }
 0x1a4   : > { %5073 = vst [vmem:[#allocation78_spill] sm:$0xff] %v4654_v44  ;;  %v2189_v3 = vmin.f32 %v1742_v34, 0.0  ;;  %v1999_v36 = vpop.f32.mrb[65].mxu1  ;;  %v4656_v57 = vpop.eup %3445  ;;  %3465 = vpow2.f32 %v1514_v51  ;;  %v2316_v22 = vmul.f32 1.442695, %v2188_v46 }
 0x1a5   : > { %5074 = vst [vmem:[#allocation79_spill] sm:$0xff] %v4656_v57  ;;  %v2191_v10 = vmin.f32 %v1999_v36, 0.0  ;;  %v4658_v30 = vpop.eup %3447  ;;  %3467 = vpow2.f32 %v1518_v61  ;;  %v2320_v23 = vmul.f32 1.442695, %v2190_v63  ;;  %v1746_v55 = vpop.f32.mrb[66].mxu0 }
 0x1a6   : > { %5075 = vst [vmem:[#allocation80_spill] sm:$0xff] %v4658_v30  ;;  %v2318_v35 = vmul.f32 1.442695, %v2189_v3  ;;  %v4660_v6 = vpop.eup %3449  ;;  %3469 = vpow2.f32 %v2316_v22  ;;  %v2192_v44 = vmin.f32 %v1746_v55, 0.0  ;;  %v2003_v12 = vpop.f32.mrb[66].mxu1 }
 0x1a7   : > { %5076 = vst [vmem:[#allocation81_spill] sm:$0xff] %v4660_v6  ;;  %v2322_v43 = vmul.f32 1.442695, %v2191_v10  ;;  %v1748_v7 = vpop.f32.mrb[67].mxu0  ;;  %v4662_v34 = vpop.eup %3451  ;;  %3471 = vpow2.f32 %v2320_v23  ;;  %v2194_v57 = vmin.f32 %v2003_v12, 0.0 }
 0x1a8   : > { %5077 = vst [vmem:[#allocation82_spill] sm:$0xff] %v4662_v34  ;;  %v2193_v51 = vmin.f32 %v1748_v7, 0.0  ;;  %v2005_v46 = vpop.f32.mrb[67].mxu1  ;;  %v4664_v36 = vpop.eup %3453  ;;  %3473 = vpow2.f32 %v2318_v35  ;;  %v2324_v61 = vmul.f32 1.442695, %v2192_v44 }
 0x1a9   : > { %5078 = vst [vmem:[#allocation83_spill] sm:$0xff] %v4664_v36  ;;  %v2195_v63 = vmin.f32 %v2005_v46, 0.0  ;;  %v4666_v3 = vpop.eup %3455  ;;  %3475 = vpow2.f32 %v2322_v43  ;;  %v2328_v6 = vmul.f32 1.442695, %v2194_v57  ;;  %v1752_v10 = vpop.f32.mrb[68].mxu0 }
 0x1aa   : > { %5079 = vst [vmem:[#allocation84_spill] sm:$0xff] %v4666_v3  ;;  %v2326_v22 = vmul.f32 1.442695, %v2193_v51  ;;  %v4668_v55 = vpop.eup %3457  ;;  %3477 = vpow2.f32 %v2324_v61  ;;  %v2196_v23 = vmin.f32 %v1752_v10, 0.0  ;;  %v2009_v12 = vpop.f32.mrb[68].mxu1 }
 0x1ab   : > { %5080 = vst [vmem:[#allocation85_spill] sm:$0xff] %v4668_v55  ;;  %v2330_v34 = vmul.f32 1.442695, %v2195_v63  ;;  %v1754_v7 = vpop.f32.mrb[69].mxu0  ;;  %v4670_v30 = vpop.eup %3459  ;;  %3479 = vpow2.f32 %v2328_v6  ;;  %v2198_v35 = vmin.f32 %v2009_v12, 0.0 }
 0x1ac   : > { %5081 = vst [vmem:[#allocation86_spill] sm:$0xff] %v4670_v30  ;;  %v2197_v44 = vmin.f32 %v1754_v7, 0.0  ;;  %v2011_v46 = vpop.f32.mrb[69].mxu1  ;;  %v4672_v36 = vpop.eup %3461  ;;  %3481 = vpow2.f32 %v2326_v22  ;;  %v2332_v43 = vmul.f32 1.442695, %v2196_v23 }
 0x1ad   : > { %5082 = vst [vmem:[#allocation87_spill] sm:$0xff] %v4672_v36  ;;  %v2199_v57 = vmin.f32 %v2011_v46, 0.0  ;;  %v4674_v51 = vpop.eup %3463  ;;  %3483 = vpow2.f32 %v2330_v34  ;;  %v2336_v61 = vmul.f32 1.442695, %v2198_v35  ;;  %v1758_v10 = vpop.f32.mrb[70].mxu0 }
 0x1ae   : > { %5083 = vst [vmem:[#allocation88_spill] sm:$0xff] %v4674_v51  ;;  %v2334_v63 = vmul.f32 1.442695, %v2197_v44  ;;  %v4677_v55 = vpop.eup %3465  ;;  %3485 = vpow2.f32 %v2332_v43  ;;  %v2200_v6 = vmin.f32 %v1758_v10, 0.0  ;;  %v2015_v12 = vpop.f32.mrb[70].mxu1 }
 0x1af   : > { %5084 = vst [vmem:[#allocation89_spill] sm:$0xff] %v4677_v55  ;;  %v2338_v30 = vmul.f32 1.442695, %v2199_v57  ;;  %v1760_v7 = vpop.f32.mrb[71].mxu0  ;;  %v4679_v3 = vpop.eup %3467  ;;  %3487 = vpow2.f32 %v2336_v61  ;;  %v2202_v22 = vmin.f32 %v2015_v12, 0.0 }
 0x1b0   : > { %5085 = vst [vmem:[#allocation90_spill] sm:$0xff] %v4679_v3  ;;  %v2201_v23 = vmin.f32 %v1760_v7, 0.0  ;;  %v2017_v46 = vpop.f32.mrb[71].mxu1  ;;  %v3470_v36 = vpop.eup %3469  ;;  %3489 = vpow2.f32 %v2334_v63  ;;  %v2340_v51 = vmul.f32 1.442695, %v2200_v6 }
 0x1b1   : > { %v2203_v34 = vmin.f32 %v2017_v46, 0.0  ;;  %v3472_v35 = vpop.eup %3471  ;;  %v2572_v44 = vadd.f32 %v3470_v36, %v4391_v8  ;;  %3491 = vpow2.f32 %v2338_v30  ;;  %v2344_v43 = vmul.f32 1.442695, %v2202_v22  ;;  %v1764_v10 = vpop.f32.mrb[72].mxu0 }
 0x1b2   : > { %v2342_v57 = vmul.f32 1.442695, %v2201_v23  ;;  %v3474_v55 = vpop.eup %3473  ;;  %v2574_v27 = vadd.f32 %v3472_v35, %v4394_v11  ;;  %3493 = vpow2.f32 %v2340_v51  ;;  %v2204_v12 = vmin.f32 %v1764_v10, 0.0  ;;  %v2021_v7 = vpop.f32.mrb[72].mxu1 }
 0x1b3   : > { %v2346_v61 = vmul.f32 1.442695, %v2203_v34  ;;  %v1766_v3 = vpop.f32.mrb[73].mxu0  ;;  %v3476_v17 = vpop.eup %3475  ;;  %2700 = vst [vmem:[%s4685_s30] sm:$0xff] %v2572_v44  ;;  %v2573_v8 = vadd.f32 %v3474_v55, %v4396_v15  ;;  %3495 = vpow2.f32 %v2344_v43  ;;  %v2206_v30 = vmin.f32 %v2021_v7, 0.0 }
 0x1b4   : > { %v2205_v36 = vmin.f32 %v1766_v3, 0.0  ;;  %v2023_v11 = vpop.f32.mrb[73].mxu1  ;;  %v3478_v51 = vpop.eup %3477  ;;  %2702 = vst [vmem:[%s4685_s30 + $0x10] sm:$0xff] %v2574_v27  ;;  %v2575_v63 = vadd.f32 %v3476_v17, %v4399_v20  ;;  %3497 = vpow2.f32 %v2342_v57  ;;  %v2348_v6 = vmul.f32 1.442695, %v2204_v12 }
 0x1b5   : > { %v2207_v22 = vmin.f32 %v2023_v11, 0.0  ;;  %v3480_v23 = vpop.eup %3479  ;;  %2701 = vst [vmem:[%s4685_s30 + $0x8] sm:$0xff] %v2573_v8  ;;  %v2576_v46 = vadd.f32 %v3478_v51, %v4404_v25  ;;  %3499 = vpow2.f32 %v2346_v61  ;;  %v2352_v34 = vmul.f32 1.442695, %v2206_v30  ;;  %v1770_v55 = vpop.f32.mrb[74].mxu0 }
 0x1b6   : > { %v2350_v15 = vmul.f32 1.442695, %v2205_v36  ;;  %v3482_v35 = vpop.eup %3481  ;;  %2703 = vst [vmem:[%s4685_s30 + $0x18] sm:$0xff] %v2575_v63  ;;  %v2578_v3 = vadd.f32 %v3480_v23, %v4407_v28  ;;  %3501 = vpow2.f32 %v2348_v6  ;;  %v2208_v20 = vmin.f32 %v1770_v55, 0.0  ;;  %v2027_v17 = vpop.f32.mrb[74].mxu1 }
 0x1b7   : > { %v2354_v27 = vmul.f32 1.442695, %v2207_v22  ;;  %v1772_v44 = vpop.f32.mrb[75].mxu0  ;;  %v3484_v43 = vpop.eup %3483  ;;  %2704 = vst [vmem:[%s4685_s30 + $0x20] sm:$0xff] %v2576_v46  ;;  %v2577_v57 = vadd.f32 %v3482_v35, %v4409_v32  ;;  %3503 = vpow2.f32 %v2352_v34  ;;  %v2210_v25 = vmin.f32 %v2027_v17, 0.0 }
 0x1b8   : > { %v2209_v10 = vmin.f32 %v1772_v44, 0.0  ;;  %v2029_v61 = vpop.f32.mrb[75].mxu1  ;;  %v3486_v12 = vpop.eup %3485  ;;  %2706 = vst [vmem:[%s4685_s30 + $0x30] sm:$0xff] %v2578_v3  ;;  %v2579_v7 = vadd.f32 %v3484_v43, %v4412_v37  ;;  %3505 = vpow2.f32 %v2350_v15  ;;  %v2356_v28 = vmul.f32 1.442695, %v2208_v20 }
 0x1b9   : > { %v2211_v8 = vmin.f32 %v2029_v61, 0.0  ;;  %v3488_v30 = vpop.eup %3487  ;;  %2705 = vst [vmem:[%s4685_s30 + $0x28] sm:$0xff] %v2577_v57  ;;  %v2580_v36 = vadd.f32 %v3486_v12, %v4417_v42  ;;  %3507 = vpow2.f32 %v2354_v27  ;;  %v2360_v11 = vmul.f32 1.442695, %v2210_v25  ;;  %v1776_v51 = vpop.f32.mrb[76].mxu0 }
 0x1ba   : > { %v2358_v32 = vmul.f32 1.442695, %v2209_v10  ;;  %v3490_v63 = vpop.eup %3489  ;;  %2707 = vst [vmem:[%s4685_s30 + $0x38] sm:$0xff] %v2579_v7  ;;  %v2582_v6 = vadd.f32 %v3488_v30, %v4420_v45  ;;  %3509 = vpow2.f32 %v2356_v28  ;;  %v2212_v37 = vmin.f32 %v1776_v51, 0.0  ;;  %v2033_v23 = vpop.f32.mrb[76].mxu1 }
 0x1bb   : > { %v2362_v22 = vmul.f32 1.442695, %v2211_v8  ;;  %v1778_v46 = vpop.f32.mrb[77].mxu0  ;;  %v3492_v34 = vpop.eup %3491  ;;  %2708 = vst [vmem:[%s4685_s30 + $0x40] sm:$0xff] %v2580_v36  ;;  %v2581_v15 = vadd.f32 %v3490_v63, %v4422_v49  ;;  %3511 = vpow2.f32 %v2360_v11  ;;  %v2214_v42 = vmin.f32 %v2033_v23, 0.0 }
 0x1bc   : > { %v2213_v55 = vmin.f32 %v1778_v46, 0.0  ;;  %v2035_v35 = vpop.f32.mrb[77].mxu1  ;;  %v3494_v3 = vpop.eup %3493  ;;  %2710 = vst [vmem:[%s4685_s30 + $0x50] sm:$0xff] %v2582_v6  ;;  %v2583_v27 = vadd.f32 %v3492_v34, %v4425_v54  ;;  %3513 = vpow2.f32 %v2358_v32  ;;  %v2364_v45 = vmul.f32 1.442695, %v2212_v37 }
 0x1bd   : > { %v2215_v20 = vmin.f32 %v2035_v35, 0.0  ;;  %v3496_v17 = vpop.eup %3495  ;;  %2709 = vst [vmem:[%s4685_s30 + $0x48] sm:$0xff] %v2581_v15  ;;  %v2584_v44 = vadd.f32 %v3494_v3, %v4430_v59  ;;  %3515 = vpow2.f32 %v2362_v22  ;;  %v2368_v43 = vmul.f32 1.442695, %v2214_v42  ;;  %v1782_v57 = vpop.f32.mrb[78].mxu0 }
 0x1be   : > { %v2366_v49 = vmul.f32 1.442695, %v2213_v55  ;;  %v3498_v25 = vpop.eup %3497  ;;  %2711 = vst [vmem:[%s4685_s30 + $0x58] sm:$0xff] %v2583_v27  ;;  %v2586_v10 = vadd.f32 %v3496_v17, %v4433_v62  ;;  %3517 = vpow2.f32 %v2364_v45  ;;  %v2216_v54 = vmin.f32 %v1782_v57, 0.0  ;;  %v2039_v12 = vpop.f32.mrb[78].mxu1 }
 0x1bf   : > { %v2370_v61 = vmul.f32 1.442695, %v2215_v20  ;;  %v1784_v7 = vpop.f32.mrb[79].mxu0  ;;  %v3500_v28 = vpop.eup %3499  ;;  %2712 = vst [vmem:[%s4685_s30 + $0x60] sm:$0xff] %v2584_v44  ;;  %v2585_v8 = vadd.f32 %v3498_v25, %v4435_v2  ;;  %3519 = vpow2.f32 %v2368_v43  ;;  %v2218_v59 = vmin.f32 %v2039_v12, 0.0 }
 0x1c0   : > { %v2217_v30 = vmin.f32 %v1784_v7, 0.0  ;;  %v2041_v36 = vpop.f32.mrb[79].mxu1  ;;  %v3502_v11 = vpop.eup %3501  ;;  %2714 = vst [vmem:[%s4685_s30 + $0x70] sm:$0xff] %v2586_v10  ;;  %v2587_v32 = vadd.f32 %v3500_v28, %v4438_v9  ;;  %3521 = vpow2.f32 %v2366_v49  ;;  %v2372_v62 = vmul.f32 1.442695, %v2216_v54 }
 0x1c1   : > { %v2219_v51 = vmin.f32 %v2041_v36, 0.0  ;;  %v3504_v63 = vpop.eup %3503  ;;  %2713 = vst [vmem:[%s4685_s30 + $0x68] sm:$0xff] %v2585_v8  ;;  %v2588_v6 = vadd.f32 %v3502_v11, %v4443_v16  ;;  %3523 = vpow2.f32 %v2370_v61  ;;  %v2376_v22 = vmul.f32 1.442695, %v2218_v59  ;;  %v1788_v37 = vpop.f32.mrb[80].mxu0 }
 0x1c2   : > { %v2374_v2 = vmul.f32 1.442695, %v2217_v30  ;;  %v3506_v23 = vpop.eup %3505  ;;  %2715 = vst [vmem:[%s4685_s30 + $0x78] sm:$0xff] %v2587_v32  ;;  %v2590_v46 = vadd.f32 %v3504_v63, %v4446_v19  ;;  %3525 = vpow2.f32 %v2372_v62  ;;  %v2220_v9 = vmin.f32 %v1788_v37, 0.0  ;;  %v2045_v15 = vpop.f32.mrb[80].mxu1 }
 0x1c3   : > { %v2378_v34 = vmul.f32 1.442695, %v2219_v51  ;;  %v1790_v42 = vpop.f32.mrb[81].mxu0  ;;  %v3508_v55 = vpop.eup %3507  ;;  %2716 = vst [vmem:[%s4685_s30 + $0x80] sm:$0xff] %v2588_v6  ;;  %v2589_v35 = vadd.f32 %v3506_v23, %v4448_v24  ;;  %3527 = vpow2.f32 %v2376_v22  ;;  %v2222_v16 = vmin.f32 %v2045_v15, 0.0 }
 0x1c4   : > { %v2221_v3 = vmin.f32 %v1790_v42, 0.0  ;;  %v2047_v27 = vpop.f32.mrb[81].mxu1  ;;  %v3510_v45 = vpop.eup %3509  ;;  %2718 = vst [vmem:[%s4685_s30 + $0x90] sm:$0xff] %v2590_v46  ;;  %v2591_v20 = vadd.f32 %v3508_v55, %v4451_v31  ;;  %3529 = vpow2.f32 %v2374_v2  ;;  %v2380_v19 = vmul.f32 1.442695, %v2220_v9 }
 0x1c5   : > { %v2223_v17 = vmin.f32 %v2047_v27, 0.0  ;;  %v3512_v44 = vpop.eup %3511  ;;  %2717 = vst [vmem:[%s4685_s30 + $0x88] sm:$0xff] %v2589_v35  ;;  %v2592_v43 = vadd.f32 %v3510_v45, %v4456_v38  ;;  %3531 = vpow2.f32 %v2378_v34  ;;  %v2384_v49 = vmul.f32 1.442695, %v2222_v16  ;;  %v1794_v57 = vpop.f32.mrb[82].mxu0 }
 0x1c6   : > { %v2382_v24 = vmul.f32 1.442695, %v2221_v3  ;;  %v3514_v25 = vpop.eup %3513  ;;  %2719 = vst [vmem:[%s4685_s30 + $0x98] sm:$0xff] %v2591_v20  ;;  %v2594_v10 = vadd.f32 %v3512_v44, %v4459_v41  ;;  %3533 = vpow2.f32 %v2380_v19  ;;  %v2224_v31 = vmin.f32 %v1794_v57, 0.0  ;;  %v2051_v54 = vpop.f32.mrb[82].mxu1 }
 0x1c7   : > { %v2386_v61 = vmul.f32 1.442695, %v2223_v17  ;;  %v1796_v12 = vpop.f32.mrb[83].mxu0  ;;  %v3516_v7 = vpop.eup %3515  ;;  %2720 = vst [vmem:[%s4685_s30 + $0xa0] sm:$0xff] %v2592_v43  ;;  %v2593_v28 = vadd.f32 %v3514_v25, %v4461_v47  ;;  %3535 = vpow2.f32 %v2384_v49  ;;  %v2226_v38 = vmin.f32 %v2051_v54, 0.0 }
 0x1c8   : > { %v2225_v8 = vmin.f32 %v1796_v12, 0.0  ;;  %v2053_v59 = vpop.f32.mrb[83].mxu1  ;;  %v3518_v30 = vpop.eup %3517  ;;  %2722 = vst [vmem:[%s4685_s30 + $0xb0] sm:$0xff] %v2594_v10  ;;  %v2595_v36 = vadd.f32 %v3516_v7, %v4464_v53  ;;  %3537 = vpow2.f32 %v2382_v24  ;;  %v2388_v41 = vmul.f32 1.442695, %v2224_v31 }
 0x1c9   : > { %v2227_v11 = vmin.f32 %v2053_v59, 0.0  ;;  %v3520_v32 = vpop.eup %3519  ;;  %2721 = vst [vmem:[%s4685_s30 + $0xa8] sm:$0xff] %v2593_v28  ;;  %v2596_v62 = vadd.f32 %v3518_v30, %v4469_v60  ;;  %3539 = vpow2.f32 %v2386_v61  ;;  %v2392_v51 = vmul.f32 1.442695, %v2226_v38  ;;  %v1800_v63 = vpop.f32.mrb[84].mxu0 }
 0x1ca   : > { %v2390_v47 = vmul.f32 1.442695, %v2225_v8  ;;  %v3522_v6 = vpop.eup %3521  ;;  %2723 = vst [vmem:[%s4685_s30 + $0xb8] sm:$0xff] %v2595_v36  ;;  %v2598_v22 = vadd.f32 %v3520_v32, %v4472_v0  ;;  %3541 = vpow2.f32 %v2388_v41  ;;  %v2228_v53 = vmin.f32 %v1800_v63, 0.0  ;;  %v2057_v37 = vpop.f32.mrb[84].mxu1 }
 0x1cb   : > { %v2394_v2 = vmul.f32 1.442695, %v2227_v11  ;;  %v1802_v23 = vpop.f32.mrb[85].mxu0  ;;  %v3524_v46 = vpop.eup %3523  ;;  %2724 = vst [vmem:[%s4685_s30 + $0xc0] sm:$0xff] %v2596_v62  ;;  %v2597_v34 = vadd.f32 %v3522_v6, %v4474_v5  ;;  %3543 = vpow2.f32 %v2392_v51  ;;  %v2230_v60 = vmin.f32 %v2057_v37, 0.0 }
 0x1cc   : > { %v2229_v9 = vmin.f32 %v1802_v23, 0.0  ;;  %v2059_v15 = vpop.f32.mrb[85].mxu1  ;;  %v3526_v42 = vpop.eup %3525  ;;  %2726 = vst [vmem:[%s4685_s30 + $0xd0] sm:$0xff] %v2598_v22  ;;  %v2599_v55 = vadd.f32 %v3524_v46, %v4477_v14  ;;  %3545 = vpow2.f32 %v2390_v47  ;;  %v2396_v0 = vmul.f32 1.442695, %v2228_v53 }
 0x1cd   : > { %v2231_v35 = vmin.f32 %v2059_v15, 0.0  ;;  %v3528_v16 = vpop.eup %3527  ;;  %2725 = vst [vmem:[%s4685_s30 + $0xc8] sm:$0xff] %v2597_v34  ;;  %v2600_v3 = vadd.f32 %v3526_v42, %v4480_v21  ;;  %3547 = vpow2.f32 %v2394_v2  ;;  %v2400_v27 = vmul.f32 1.442695, %v2230_v60  ;;  %v1806_v45 = vpop.f32.mrb[86].mxu0 }
 0x1ce   : > { %v2398_v5 = vmul.f32 1.442695, %v2229_v9  ;;  %v3530_v20 = vpop.eup %3529  ;;  %2727 = vst [vmem:[%s4685_s30 + $0xd8] sm:$0xff] %v2599_v55  ;;  %v2602_v19 = vadd.f32 %v3528_v16, %v4482_v26  ;;  %3549 = vpow2.f32 %v2396_v0  ;;  %v2232_v14 = vmin.f32 %v1806_v45, 0.0  ;;  %v2063_v44 = vpop.f32.mrb[86].mxu1 }
 0x1cf   : > { %v2402_v17 = vmul.f32 1.442695, %v2231_v35  ;;  %v1808_v43 = vpop.f32.mrb[87].mxu0  ;;  %v3532_v49 = vpop.eup %3531  ;;  %2728 = vst [vmem:[%s4685_s30 + $0xe0] sm:$0xff] %v2600_v3  ;;  %v2601_v24 = vadd.f32 %v3530_v20, %v4484_v33  ;;  %3551 = vpow2.f32 %v2400_v27  ;;  %v2234_v21 = vmin.f32 %v2063_v44, 0.0 }
 0x1d0   : > { %v2233_v57 = vmin.f32 %v1808_v43, 0.0  ;;  %v2065_v25 = vpop.f32.mrb[87].mxu1  ;;  %v3534_v10 = vpop.eup %3533  ;;  %2730 = vst [vmem:[%s4685_s30 + $0xf0] sm:$0xff] %v2602_v19  ;;  %v2603_v61 = vadd.f32 %v3532_v49, %v4486_v40  ;;  %3553 = vpow2.f32 %v2398_v5  ;;  %v2404_v26 = vmul.f32 1.442695, %v2232_v14 }
 0x1d1   : > { %v2235_v31 = vmin.f32 %v2065_v25, 0.0  ;;  %v3536_v54 = vpop.eup %3535  ;;  %2729 = vst [vmem:[%s4685_s30 + $0xe8] sm:$0xff] %v2601_v24  ;;  %v2604_v12 = vadd.f32 %v3534_v10, %v4488_v48  ;;  %3555 = vpow2.f32 %v2402_v17  ;;  %v2408_v7 = vmul.f32 1.442695, %v2234_v21  ;;  %v1812_v28 = vpop.f32.mrb[88].mxu0  ;;  %v5086_v25 = vld [vmem:[#allocation6_spill] sm:$0xff] }
 0x1d2   : > { %v2406_v33 = vmul.f32 1.442695, %v2233_v57  ;;  %v3538_v38 = vpop.eup %3537  ;;  %2731 = vst [vmem:[%s4685_s30 + $0xf8] sm:$0xff] %v2603_v61  ;;  %v2606_v8 = vadd.f32 %v3536_v54, %v4490_v52  ;;  %3557 = vpow2.f32 %v2404_v26  ;;  %v2236_v40 = vmin.f32 %v1812_v28, 0.0  ;;  %v2069_v30 = vpop.f32.mrb[88].mxu1  ;;  %v5088_v28 = vld [vmem:[#allocation8_spill] sm:$0xff] }
 0x1d3   : > { %v2410_v59 = vmul.f32 1.442695, %v2235_v31  ;;  %v1814_v36 = vpop.f32.mrb[89].mxu0  ;;  %v3540_v41 = vpop.eup %3539  ;;  %2732 = vst [vmem:[%s4685_s30 + $0x100] sm:$0xff] %v2604_v12  ;;  %v2605_v11 = vadd.f32 %v3538_v38, %v4492_v58  ;;  %3559 = vpow2.f32 %v2408_v7  ;;  %v2238_v48 = vmin.f32 %v2069_v30, 0.0  ;;  %v5087_v31 = vld [vmem:[#allocation7_spill] sm:$0xff] }
 0x1d4   : > { %v2237_v32 = vmin.f32 %v1814_v36, 0.0  ;;  %v2071_v62 = vpop.f32.mrb[89].mxu1  ;;  %v3542_v51 = vpop.eup %3541  ;;  %2734 = vst [vmem:[%s4685_s30 + $0x110] sm:$0xff] %v2606_v8  ;;  %v2607_v47 = vadd.f32 %v3540_v41, %v4494_v4  ;;  %3561 = vpow2.f32 %v2406_v33  ;;  %v2412_v52 = vmul.f32 1.442695, %v2236_v40  ;;  %v5089_v41 = vld [vmem:[#allocation9_spill] sm:$0xff] }
 0x1d5   : > { %v2239_v63 = vmin.f32 %v2071_v62, 0.0  ;;  %v3544_v6 = vpop.eup %3543  ;;  %2733 = vst [vmem:[%s4685_s30 + $0x108] sm:$0xff] %v2605_v11  ;;  %v2608_v22 = vadd.f32 %v3542_v51, %v4496_v13  ;;  %3563 = vpow2.f32 %v2410_v59  ;;  %v2416_v2 = vmul.f32 1.442695, %v2238_v48  ;;  %v1818_v53 = vpop.f32.mrb[90].mxu0 }
 0x1d6   : > { %v2414_v58 = vmul.f32 1.442695, %v2237_v32  ;;  %v3546_v37 = vpop.eup %3545  ;;  %2735 = vst [vmem:[%s4685_s30 + $0x118] sm:$0xff] %v2607_v47  ;;  %v2610_v23 = vadd.f32 %v3544_v6, %v4498_v18  ;;  %3565 = vpow2.f32 %v2412_v52  ;;  %v2240_v4 = vmin.f32 %v1818_v53, 0.0  ;;  %v2075_v34 = vpop.f32.mrb[90].mxu1  ;;  %v5090_v47 = vld [vmem:[#allocation10_spill] sm:$0xff] }
 0x1d7   : > { %v2418_v46 = vmul.f32 1.442695, %v2239_v63  ;;  %v1820_v60 = vpop.f32.mrb[91].mxu0  ;;  %v3548_v9 = vpop.eup %3547  ;;  %2736 = vst [vmem:[%s4685_s30 + $0x120] sm:$0xff] %v2608_v22  ;;  %v2609_v15 = vadd.f32 %v3546_v37, %v4500_v29  ;;  %3567 = vpow2.f32 %v2416_v2  ;;  %v2242_v13 = vmin.f32 %v2075_v34, 0.0  ;;  %v5091_v2 = vld [vmem:[#allocation11_spill] sm:$0xff] }
 0x1d8   : > { %v2241_v42 = vmin.f32 %v1820_v60, 0.0  ;;  %v2077_v55 = vpop.f32.mrb[91].mxu1  ;;  %v3550_v0 = vpop.eup %3549  ;;  %2738 = vst [vmem:[%s4685_s30 + $0x130] sm:$0xff] %v2610_v23  ;;  %v2611_v35 = vadd.f32 %v3548_v9, %v4502_v39  ;;  %3569 = vpow2.f32 %v2414_v58  ;;  %v2420_v18 = vmul.f32 1.442695, %v2240_v4  ;;  %v5092_v4 = vld [vmem:[#allocation12_spill] sm:$0xff] }
 0x1d9   : > { %v2243_v16 = vmin.f32 %v2077_v55, 0.0  ;;  %v3552_v3 = vpop.eup %3551  ;;  %2737 = vst [vmem:[%s4685_s30 + $0x128] sm:$0xff] %v2609_v15  ;;  %v2612_v27 = vadd.f32 %v3550_v0, %v4504_v50  ;;  %3571 = vpow2.f32 %v2418_v46  ;;  %v2424_v5 = vmul.f32 1.442695, %v2242_v13  ;;  %v1824_v45 = vpop.f32.mrb[92].mxu0  ;;  %v5093_v55 = vld [vmem:[#allocation13_spill] sm:$0xff] }
 0x1da   : > { %v2422_v29 = vmul.f32 1.442695, %v2241_v42  ;;  %v3554_v20 = vpop.eup %3553  ;;  %2739 = vst [vmem:[%s4685_s30 + $0x138] sm:$0xff] %v2611_v35  ;;  %v2614_v19 = vadd.f32 %v3552_v3, %v4506_v56  ;;  %3573 = vpow2.f32 %v2420_v18  ;;  %v2244_v39 = vmin.f32 %v1824_v45, 0.0  ;;  %v2081_v14 = vpop.f32.mrb[92].mxu1 }
 0x1db   : > { %v2426_v17 = vmul.f32 1.442695, %v2243_v16  ;;  %v1826_v44 = vpop.f32.mrb[93].mxu0  ;;  %v3556_v43 = vpop.eup %3555  ;;  %2740 = vst [vmem:[%s4685_s30 + $0x140] sm:$0xff] %v2612_v27  ;;  %v2613_v49 = vadd.f32 %v3554_v20, %v4508_v1  ;;  %3575 = vpow2.f32 %v2424_v5  ;;  %v2246_v50 = vmin.f32 %v2081_v14, 0.0  ;;  %v5094_v27 = vld [vmem:[#allocation14_spill] sm:$0xff] }
 0x1dc   : > { %v2245_v24 = vmin.f32 %v1826_v44, 0.0  ;;  %v2083_v21 = vpop.f32.mrb[93].mxu1  ;;  %v3558_v57 = vpop.eup %3557  ;;  %2742 = vst [vmem:[%s4685_s30 + $0x150] sm:$0xff] %v2614_v19  ;;  %v2615_v10 = vadd.f32 %v3556_v43, %v5086_v25  ;;  %3577 = vpow2.f32 %v2422_v29  ;;  %v2428_v56 = vmul.f32 1.442695, %v2244_v39  ;;  %v5095_v19 = vld [vmem:[#allocation15_spill] sm:$0xff] }
 0x1dd   : > { %v2247_v61 = vmin.f32 %v2083_v21, 0.0  ;;  %v3560_v26 = vpop.eup %3559  ;;  %2741 = vst [vmem:[%s4685_s30 + $0x148] sm:$0xff] %v2613_v49  ;;  %v2616_v54 = vadd.f32 %v3558_v57, %v5087_v31  ;;  %3579 = vpow2.f32 %v2426_v17  ;;  %v2432_v12 = vmul.f32 1.442695, %v2246_v50  ;;  %v1830_v7 = vpop.f32.mrb[94].mxu0  ;;  %v5096_v49 = vld [vmem:[#allocation16_spill] sm:$0xff] }
 0x1de   : > { %v2430_v1 = vmul.f32 1.442695, %v2245_v24  ;;  %v3562_v33 = vpop.eup %3561  ;;  %2743 = vst [vmem:[%s4685_s30 + $0x158] sm:$0xff] %v2615_v10  ;;  %v2618_v38 = vadd.f32 %v3560_v26, %v5088_v28  ;;  %3581 = vpow2.f32 %v2428_v56  ;;  %v2248_v59 = vmin.f32 %v1830_v7, 0.0  ;;  %v2087_v40 = vpop.f32.mrb[94].mxu1  ;;  %v5097_v56 = vld [vmem:[#allocation17_spill] sm:$0xff] }
 0x1df   : > { %v2434_v8 = vmul.f32 1.442695, %v2247_v61  ;;  %v1832_v30 = vpop.f32.mrb[95].mxu0  ;;  %v3564_v36 = vpop.eup %3563  ;;  %2744 = vst [vmem:[%s4685_s30 + $0x160] sm:$0xff] %v2616_v54  ;;  %v2617_v11 = vadd.f32 %v3562_v33, %v5089_v41  ;;  %3583 = vpow2.f32 %v2432_v12  ;;  %v2250_v48 = vmin.f32 %v2087_v40, 0.0 }
 0x1e0   : > { %v2249_v32 = vmin.f32 %v1832_v30, 0.0  ;;  %v2089_v62 = vpop.f32.mrb[95].mxu1  ;;  %v3566_v51 = vpop.eup %3565  ;;  %2746 = vst [vmem:[%s4685_s30 + $0x170] sm:$0xff] %v2618_v38  ;;  %v2619_v52 = vadd.f32 %v3564_v36, %v5090_v47  ;;  %3585 = vpow2.f32 %v2430_v1  ;;  %v2436_v63 = vmul.f32 1.442695, %v2248_v59  ;;  %v5098_v1 = vld [vmem:[#allocation18_spill] sm:$0xff] }
 0x1e1   : > { %v2251_v6 = vmin.f32 %v2089_v62, 0.0  ;;  %v3568_v22 = vpop.eup %3567  ;;  %2745 = vst [vmem:[%s4685_s30 + $0x168] sm:$0xff] %v2617_v11  ;;  %v2620_v58 = vadd.f32 %v3566_v51, %v5091_v2  ;;  %3587 = vpow2.f32 %v2434_v8  ;;  %v2440_v53 = vmul.f32 1.442695, %v2250_v48  ;;  %v1836_v23 = vpop.f32.mrb[96].mxu0  ;;  %v5099_v8 = vld [vmem:[#allocation19_spill] sm:$0xff] }
 0x1e2   : > { %v2438_v37 = vmul.f32 1.442695, %v2249_v32  ;;  %v3570_v46 = vpop.eup %3569  ;;  %2747 = vst [vmem:[%s4685_s30 + $0x178] sm:$0xff] %v2619_v52  ;;  %v2622_v34 = vadd.f32 %v3568_v22, %v5092_v4  ;;  %3589 = vpow2.f32 %v2436_v63  ;;  %v2252_v9 = vmin.f32 %v1836_v23, 0.0  ;;  %v2093_v15 = vpop.f32.mrb[96].mxu1  ;;  %v5100_v11 = vld [vmem:[#allocation20_spill] sm:$0xff] }
 0x1e3   : > { %v2442_v60 = vmul.f32 1.442695, %v2251_v6  ;;  %v1838_v13 = vpop.f32.mrb[97].mxu0  ;;  %v3572_v42 = vpop.eup %3571  ;;  %2748 = vst [vmem:[%s4685_s30 + $0x180] sm:$0xff] %v2620_v58  ;;  %v2621_v0 = vadd.f32 %v3570_v46, %v5093_v55  ;;  %3591 = vpow2.f32 %v2440_v53  ;;  %v2254_v35 = vmin.f32 %v2093_v15, 0.0  ;;  %v5101_v63 = vld [vmem:[#allocation21_spill] sm:$0xff] }
 0x1e4   : > { %v2253_v18 = vmin.f32 %v1838_v13, 0.0  ;;  %v2095_v16 = vpop.f32.mrb[97].mxu1  ;;  %v3574_v3 = vpop.eup %3573  ;;  %2750 = vst [vmem:[%s4685_s30 + $0x190] sm:$0xff] %v2622_v34  ;;  %v2623_v5 = vadd.f32 %v3572_v42, %v5094_v27  ;;  %3593 = vpow2.f32 %v2438_v37  ;;  %v2444_v29 = vmul.f32 1.442695, %v2252_v9  ;;  %v5102_v37 = vld [vmem:[#allocation22_spill] sm:$0xff] }
 0x1e5   : > { %v2255_v45 = vmin.f32 %v2095_v16, 0.0  ;;  %v3576_v20 = vpop.eup %3575  ;;  %2749 = vst [vmem:[%s4685_s30 + $0x188] sm:$0xff] %v2621_v0  ;;  %v2624_v17 = vadd.f32 %v3574_v3, %v5095_v19  ;;  %3595 = vpow2.f32 %v2442_v60  ;;  %v2448_v39 = vmul.f32 1.442695, %v2254_v35  ;;  %v1842_v44 = vpop.f32.mrb[98].mxu0  ;;  %v5103_v60 = vld [vmem:[#allocation23_spill] sm:$0xff] }
 0x1e6   : > { %v2446_v14 = vmul.f32 1.442695, %v2253_v18  ;;  %v3578_v43 = vpop.eup %3577  ;;  %2751 = vst [vmem:[%s4685_s30 + $0x198] sm:$0xff] %v2623_v5  ;;  %v2626_v50 = vadd.f32 %v3576_v20, %v5096_v49  ;;  %3597 = vpow2.f32 %v2444_v29  ;;  %v2256_v21 = vmin.f32 %v1842_v44, 0.0  ;;  %v2099_v57 = vpop.f32.mrb[98].mxu1  ;;  %v5104_v0 = vld [vmem:[#allocation24_spill] sm:$0xff] }
 0x1e7   : > { %v2450_v24 = vmul.f32 1.442695, %v2255_v45  ;;  %v1844_v25 = vpop.f32.mrb[99].mxu0  ;;  %v3580_v10 = vpop.eup %3579  ;;  %2752 = vst [vmem:[%s4685_s30 + $0x1a0] sm:$0xff] %v2624_v17  ;;  %v2625_v61 = vadd.f32 %v3578_v43, %v5097_v56  ;;  %3599 = vpow2.f32 %v2448_v39  ;;  %v2258_v26 = vmin.f32 %v2099_v57, 0.0  ;;  %v5105_v29 = vld [vmem:[#allocation25_spill] sm:$0xff] }
 0x1e8   : > { %v2257_v31 = vmin.f32 %v1844_v25, 0.0  ;;  %v2101_v54 = vpop.f32.mrb[99].mxu1  ;;  %v3582_v12 = vpop.eup %3581  ;;  %2754 = vst [vmem:[%s4685_s30 + $0x1b0] sm:$0xff] %v2626_v50  ;;  %v2627_v7 = vadd.f32 %v3580_v10, %v5098_v1  ;;  %3601 = vpow2.f32 %v2446_v14  ;;  %v2452_v33 = vmul.f32 1.442695, %v2256_v21  ;;  %v5106_v14 = vld [vmem:[#allocation26_spill] sm:$0xff] }
 0x1e9   : > { %v2259_v28 = vmin.f32 %v2101_v54, 0.0  ;;  %v3584_v38 = vpop.eup %3583  ;;  %2753 = vst [vmem:[%s4685_s30 + $0x1a8] sm:$0xff] %v2625_v61  ;;  %v2628_v59 = vadd.f32 %v3582_v12, %v5099_v8  ;;  %3603 = vpow2.f32 %v2450_v24  ;;  %v2456_v40 = vmul.f32 1.442695, %v2258_v26  ;;  %v1848_v36 = vpop.f32.mrb[100].mxu0  ;;  %v5107_v24 = vld [vmem:[#allocation27_spill] sm:$0xff] }
 0x1ea   : > { %v2454_v30 = vmul.f32 1.442695, %v2257_v31  ;;  %v3586_v41 = vpop.eup %3585  ;;  %2755 = vst [vmem:[%s4685_s30 + $0x1b8] sm:$0xff] %v2627_v7  ;;  %v2630_v48 = vadd.f32 %v3584_v38, %v5100_v11  ;;  %3605 = vpow2.f32 %v2452_v33  ;;  %v2260_v62 = vmin.f32 %v1848_v36, 0.0  ;;  %v2105_v51 = vpop.f32.mrb[100].mxu1  ;;  %v5108_v61 = vld [vmem:[#allocation28_spill] sm:$0xff] }
 0x1eb   : > { %v2458_v32 = vmul.f32 1.442695, %v2259_v28  ;;  %v1850_v47 = vpop.f32.mrb[101].mxu0  ;;  %v3588_v52 = vpop.eup %3587  ;;  %2756 = vst [vmem:[%s4685_s30 + $0x1c0] sm:$0xff] %v2628_v59  ;;  %v2629_v6 = vadd.f32 %v3586_v41, %v5101_v63  ;;  %3607 = vpow2.f32 %v2456_v40  ;;  %v2262_v22 = vmin.f32 %v2105_v51, 0.0  ;;  %v5109_v33 = vld [vmem:[#allocation29_spill] sm:$0xff] }
 0x1ec   : > { %v2261_v2 = vmin.f32 %v1850_v47, 0.0  ;;  %v2107_v58 = vpop.f32.mrb[101].mxu1  ;;  %v3590_v53 = vpop.eup %3589  ;;  %2758 = vst [vmem:[%s4685_s30 + $0x1d0] sm:$0xff] %v2630_v48  ;;  %v2631_v23 = vadd.f32 %v3588_v52, %v5102_v37  ;;  %3609 = vpow2.f32 %v2454_v30  ;;  %v2460_v46 = vmul.f32 1.442695, %v2260_v62  ;;  %v5110_v30 = vld [vmem:[#allocation30_spill] sm:$0xff] }
 0x1ed   : > { %v2263_v4 = vmin.f32 %v2107_v58, 0.0  ;;  %v3592_v34 = vpop.eup %3591  ;;  %2757 = vst [vmem:[%s4685_s30 + $0x1c8] sm:$0xff] %v2629_v6  ;;  %v2632_v9 = vadd.f32 %v3590_v53, %v5103_v60  ;;  %3611 = vpow2.f32 %v2458_v32  ;;  %v2464_v15 = vmul.f32 1.442695, %v2262_v22  ;;  %v1854_v42 = vpop.f32.mrb[102].mxu0  ;;  %v5111_v32 = vld [vmem:[#allocation31_spill] sm:$0xff] }
 0x1ee   : > { %v2462_v13 = vmul.f32 1.442695, %v2261_v2  ;;  %v3594_v55 = vpop.eup %3593  ;;  %2759 = vst [vmem:[%s4685_s30 + $0x1d8] sm:$0xff] %v2631_v23  ;;  %v2634_v35 = vadd.f32 %v3592_v34, %v5104_v0  ;;  %3613 = vpow2.f32 %v2460_v46  ;;  %v2264_v16 = vmin.f32 %v1854_v42, 0.0  ;;  %v2111_v3 = vpop.f32.mrb[102].mxu1  ;;  %v5112_v6 = vld [vmem:[#allocation32_spill] sm:$0xff] }
 0x1ef   : > { %v2466_v18 = vmul.f32 1.442695, %v2263_v4  ;;  %v1856_v27 = vpop.f32.mrb[103].mxu0  ;;  %v3596_v5 = vpop.eup %3595  ;;  %2760 = vst [vmem:[%s4685_s30 + $0x1e0] sm:$0xff] %v2632_v9  ;;  %v2633_v45 = vadd.f32 %v3594_v55, %v5105_v29  ;;  %3615 = vpow2.f32 %v2464_v15  ;;  %v2266_v20 = vmin.f32 %v2111_v3, 0.0  ;;  %v5113_v46 = vld [vmem:[#allocation33_spill] sm:$0xff] }
 0x1f0   : > { %v2265_v19 = vmin.f32 %v1856_v27, 0.0  ;;  %v2113_v17 = vpop.f32.mrb[103].mxu1  ;;  %v3598_v39 = vpop.eup %3597  ;;  %2762 = vst [vmem:[%s4685_s30 + $0x1f0] sm:$0xff] %v2634_v35  ;;  %v2635_v44 = vadd.f32 %v3596_v5, %v5106_v14  ;;  %3617 = vpow2.f32 %v2462_v13  ;;  %v2468_v43 = vmul.f32 1.442695, %v2264_v16  ;;  %v5114_v13 = vld [vmem:[#allocation34_spill] sm:$0xff] }
 0x1f1   : > { %v2267_v49 = vmin.f32 %v2113_v17, 0.0  ;;  %v3600_v50 = vpop.eup %3599  ;;  %2761 = vst [vmem:[%s4685_s30 + $0x1e8] sm:$0xff] %v2633_v45  ;;  %v2636_v21 = vadd.f32 %v3598_v39, %v5107_v24  ;;  %3619 = vpow2.f32 %v2466_v18  ;;  %v2472_v57 = vmul.f32 1.442695, %v2266_v20  ;;  %v1860_v10 = vpop.f32.mrb[104].mxu0  ;;  %v5115_v18 = vld [vmem:[#allocation35_spill] sm:$0xff] }
 0x1f2   : > { %v2470_v25 = vmul.f32 1.442695, %v2265_v19  ;;  %v3602_v56 = vpop.eup %3601  ;;  %2763 = vst [vmem:[%s4685_s30 + $0x1f8] sm:$0xff] %v2635_v44  ;;  %v2638_v26 = vadd.f32 %v3600_v50, %v5108_v61  ;;  %3621 = vpow2.f32 %v2468_v43  ;;  %v2268_v54 = vmin.f32 %v1860_v10, 0.0  ;;  %v2117_v12 = vpop.f32.mrb[104].mxu1  ;;  %v5116_v45 = vld [vmem:[#allocation36_spill] sm:$0xff] }
 0x1f3   : > { %v2474_v31 = vmul.f32 1.442695, %v2267_v49  ;;  %v1862_v1 = vpop.f32.mrb[105].mxu0  ;;  %v3604_v7 = vpop.eup %3603  ;;  %2764 = vst [vmem:[%s4685_s30 + $0x200] sm:$0xff] %v2636_v21  ;;  %v2637_v28 = vadd.f32 %v3602_v56, %v5109_v33  ;;  %3623 = vpow2.f32 %v2472_v57  ;;  %v2270_v38 = vmin.f32 %v2117_v12, 0.0  ;;  %v5117_v43 = vld [vmem:[#allocation37_spill] sm:$0xff] }
 0x1f4   : > { %v2269_v8 = vmin.f32 %v1862_v1, 0.0  ;;  %v2119_v59 = vpop.f32.mrb[105].mxu1  ;;  %v3606_v40 = vpop.eup %3605  ;;  %2766 = vst [vmem:[%s4685_s30 + $0x210] sm:$0xff] %v2638_v26  ;;  %v2639_v36 = vadd.f32 %v3604_v7, %v5110_v30  ;;  %3625 = vpow2.f32 %v2470_v25  ;;  %v2476_v41 = vmul.f32 1.442695, %v2268_v54  ;;  %v5118_v25 = vld [vmem:[#allocation38_spill] sm:$0xff] }
 0x1f5   : > { %v2271_v11 = vmin.f32 %v2119_v59, 0.0  ;;  %v3608_v48 = vpop.eup %3607  ;;  %2765 = vst [vmem:[%s4685_s30 + $0x208] sm:$0xff] %v2637_v28  ;;  %v2640_v62 = vadd.f32 %v3606_v40, %v5111_v32  ;;  %3627 = vpow2.f32 %v2474_v31  ;;  %v2480_v51 = vmul.f32 1.442695, %v2270_v38  ;;  %v1866_v52 = vpop.f32.mrb[106].mxu0  ;;  %v5119_v31 = vld [vmem:[#allocation39_spill] sm:$0xff] }
 0x1f6   : > { %v2478_v47 = vmul.f32 1.442695, %v2269_v8  ;;  %v3610_v63 = vpop.eup %3609  ;;  %2767 = vst [vmem:[%s4685_s30 + $0x218] sm:$0xff] %v2639_v36  ;;  %v2642_v22 = vadd.f32 %v3608_v48, %v5112_v6  ;;  %3629 = vpow2.f32 %v2476_v41  ;;  %v2272_v58 = vmin.f32 %v1866_v52, 0.0  ;;  %v2123_v53 = vpop.f32.mrb[106].mxu1  ;;  %v5120_v28 = vld [vmem:[#allocation40_spill] sm:$0xff] }
 0x1f7   : > { %v2482_v2 = vmul.f32 1.442695, %v2271_v11  ;;  %v1868_v37 = vpop.f32.mrb[107].mxu0  ;;  %v3612_v23 = vpop.eup %3611  ;;  %2768 = vst [vmem:[%s4685_s30 + $0x220] sm:$0xff] %v2640_v62  ;;  %v2641_v4 = vadd.f32 %v3610_v63, %v5113_v46  ;;  %3631 = vpow2.f32 %v2480_v51  ;;  %v2274_v34 = vmin.f32 %v2123_v53, 0.0  ;;  %v5121_v41 = vld [vmem:[#allocation41_spill] sm:$0xff] }
 0x1f8   : > { %v2273_v60 = vmin.f32 %v1868_v37, 0.0  ;;  %v2125_v9 = vpop.f32.mrb[107].mxu1  ;;  %v3614_v15 = vpop.eup %3613  ;;  %2770 = vst [vmem:[%s4685_s30 + $0x230] sm:$0xff] %v2642_v22  ;;  %v2643_v42 = vadd.f32 %v3612_v23, %v5114_v13  ;;  %3633 = vpow2.f32 %v2478_v47  ;;  %v2484_v55 = vmul.f32 1.442695, %v2272_v58  ;;  %v5122_v47 = vld [vmem:[#allocation42_spill] sm:$0xff] }
 0x1f9   : > { %v2275_v0 = vmin.f32 %v2125_v9, 0.0  ;;  %v3616_v35 = vpop.eup %3615  ;;  %2769 = vst [vmem:[%s4685_s30 + $0x228] sm:$0xff] %v2641_v4  ;;  %v2644_v16 = vadd.f32 %v3614_v15, %v5115_v18  ;;  %3635 = vpow2.f32 %v2482_v2  ;;  %v2488_v3 = vmul.f32 1.442695, %v2274_v34  ;;  %v1872_v5 = vpop.f32.mrb[108].mxu0  ;;  %v5123_v2 = vld [vmem:[#allocation43_spill] sm:$0xff] }
 0x1fa   : > { %v2486_v27 = vmul.f32 1.442695, %v2273_v60  ;;  %v3618_v29 = vpop.eup %3617  ;;  %2771 = vst [vmem:[%s4685_s30 + $0x238] sm:$0xff] %v2643_v42  ;;  %v2646_v20 = vadd.f32 %v3616_v35, %v5116_v45  ;;  %3637 = vpow2.f32 %v2484_v55  ;;  %v2276_v17 = vmin.f32 %v1872_v5, 0.0  ;;  %v2129_v39 = vpop.f32.mrb[108].mxu1  ;;  %v5124_v4 = vld [vmem:[#allocation44_spill] sm:$0xff] }
 0x1fb   : > { %v2490_v19 = vmul.f32 1.442695, %v2275_v0  ;;  %v1874_v14 = vpop.f32.mrb[109].mxu0  ;;  %v3620_v44 = vpop.eup %3619  ;;  %2772 = vst [vmem:[%s4685_s30 + $0x240] sm:$0xff] %v2644_v16  ;;  %v2645_v49 = vadd.f32 %v3618_v29, %v5117_v43  ;;  %3639 = vpow2.f32 %v2488_v3  ;;  %v2278_v50 = vmin.f32 %v2129_v39, 0.0  ;;  %v5125_v55 = vld [vmem:[#allocation45_spill] sm:$0xff] }
 0x1fc   : > { %v2277_v24 = vmin.f32 %v1874_v14, 0.0  ;;  %v2131_v21 = vpop.f32.mrb[109].mxu1  ;;  %v3622_v57 = vpop.eup %3621  ;;  %2774 = vst [vmem:[%s4685_s30 + $0x250] sm:$0xff] %v2646_v20  ;;  %v2647_v10 = vadd.f32 %v3620_v44, %v5118_v25  ;;  %3641 = vpow2.f32 %v2486_v27  ;;  %v2492_v56 = vmul.f32 1.442695, %v2276_v17  ;;  %v5126_v27 = vld [vmem:[#allocation46_spill] sm:$0xff] }
 0x1fd   : > { %v2279_v61 = vmin.f32 %v2131_v21, 0.0  ;;  %v3624_v26 = vpop.eup %3623  ;;  %2773 = vst [vmem:[%s4685_s30 + $0x248] sm:$0xff] %v2645_v49  ;;  %v2648_v54 = vadd.f32 %v3622_v57, %v5119_v31  ;;  %3643 = vpow2.f32 %v2490_v19  ;;  %v2496_v12 = vmul.f32 1.442695, %v2278_v50  ;;  %v1878_v7 = vpop.f32.mrb[110].mxu0  ;;  %v5127_v19 = vld [vmem:[#allocation47_spill] sm:$0xff] }
 0x1fe   : > { %v2494_v1 = vmul.f32 1.442695, %v2277_v24  ;;  %v3626_v33 = vpop.eup %3625  ;;  %2775 = vst [vmem:[%s4685_s30 + $0x258] sm:$0xff] %v2647_v10  ;;  %v2650_v38 = vadd.f32 %v3624_v26, %v5120_v28  ;;  %3645 = vpow2.f32 %v2492_v56  ;;  %v2280_v59 = vmin.f32 %v1878_v7, 0.0  ;;  %v2135_v40 = vpop.f32.mrb[110].mxu1  ;;  %v5128_v49 = vld [vmem:[#allocation48_spill] sm:$0xff] }
 0x1ff   : > { %v2498_v8 = vmul.f32 1.442695, %v2279_v61  ;;  %v1880_v30 = vpop.f32.mrb[111].mxu0  ;;  %v3628_v36 = vpop.eup %3627  ;;  %2776 = vst [vmem:[%s4685_s30 + $0x260] sm:$0xff] %v2648_v54  ;;  %v2649_v11 = vadd.f32 %v3626_v33, %v5121_v41  ;;  %3647 = vpow2.f32 %v2496_v12  ;;  %v2282_v48 = vmin.f32 %v2135_v40, 0.0  ;;  %v5129_v56 = vld [vmem:[#allocation49_spill] sm:$0xff] }
 0x200   : > { %v2281_v32 = vmin.f32 %v1880_v30, 0.0  ;;  %v2137_v62 = vpop.f32.mrb[111].mxu1  ;;  %v3630_v51 = vpop.eup %3629  ;;  %2778 = vst [vmem:[%s4685_s30 + $0x270] sm:$0xff] %v2650_v38  ;;  %v2651_v52 = vadd.f32 %v3628_v36, %v5122_v47  ;;  %3649 = vpow2.f32 %v2494_v1  ;;  %v2500_v63 = vmul.f32 1.442695, %v2280_v59  ;;  %v5130_v1 = vld [vmem:[#allocation50_spill] sm:$0xff] }
 0x201   : > { %v2283_v6 = vmin.f32 %v2137_v62, 0.0  ;;  %v3632_v22 = vpop.eup %3631  ;;  %2777 = vst [vmem:[%s4685_s30 + $0x268] sm:$0xff] %v2649_v11  ;;  %v2652_v58 = vadd.f32 %v3630_v51, %v5123_v2  ;;  %3651 = vpow2.f32 %v2498_v8  ;;  %v2504_v53 = vmul.f32 1.442695, %v2282_v48  ;;  %v1884_v23 = vpop.f32.mrb[112].mxu0  ;;  %v5131_v8 = vld [vmem:[#allocation51_spill] sm:$0xff] }
 0x202   : > { %v2502_v37 = vmul.f32 1.442695, %v2281_v32  ;;  %v3634_v46 = vpop.eup %3633  ;;  %2779 = vst [vmem:[%s4685_s30 + $0x278] sm:$0xff] %v2651_v52  ;;  %v2654_v34 = vadd.f32 %v3632_v22, %v5124_v4  ;;  %3653 = vpow2.f32 %v2500_v63  ;;  %v2284_v9 = vmin.f32 %v1884_v23, 0.0  ;;  %v2141_v15 = vpop.f32.mrb[112].mxu1  ;;  %v5132_v11 = vld [vmem:[#allocation52_spill] sm:$0xff] }
 0x203   : > { %v2506_v60 = vmul.f32 1.442695, %v2283_v6  ;;  %v1886_v13 = vpop.f32.mrb[113].mxu0  ;;  %v3636_v42 = vpop.eup %3635  ;;  %2780 = vst [vmem:[%s4685_s30 + $0x280] sm:$0xff] %v2652_v58  ;;  %v2653_v0 = vadd.f32 %v3634_v46, %v5125_v55  ;;  %3655 = vpow2.f32 %v2504_v53  ;;  %v2286_v35 = vmin.f32 %v2141_v15, 0.0  ;;  %v5133_v63 = vld [vmem:[#allocation53_spill] sm:$0xff] }
 0x204   : > { %v2285_v18 = vmin.f32 %v1886_v13, 0.0  ;;  %v2143_v16 = vpop.f32.mrb[113].mxu1  ;;  %v3638_v3 = vpop.eup %3637  ;;  %2782 = vst [vmem:[%s4685_s30 + $0x290] sm:$0xff] %v2654_v34  ;;  %v2655_v5 = vadd.f32 %v3636_v42, %v5126_v27  ;;  %3657 = vpow2.f32 %v2502_v37  ;;  %v2508_v29 = vmul.f32 1.442695, %v2284_v9  ;;  %v5134_v37 = vld [vmem:[#allocation54_spill] sm:$0xff] }
 0x205   : > { %v2287_v45 = vmin.f32 %v2143_v16, 0.0  ;;  %v3640_v20 = vpop.eup %3639  ;;  %2781 = vst [vmem:[%s4685_s30 + $0x288] sm:$0xff] %v2653_v0  ;;  %v2656_v17 = vadd.f32 %v3638_v3, %v5127_v19  ;;  %3659 = vpow2.f32 %v2506_v60  ;;  %v2512_v39 = vmul.f32 1.442695, %v2286_v35  ;;  %v1890_v44 = vpop.f32.mrb[114].mxu0  ;;  %v5135_v60 = vld [vmem:[#allocation55_spill] sm:$0xff] }
 0x206   : > { %v2510_v14 = vmul.f32 1.442695, %v2285_v18  ;;  %v3642_v43 = vpop.eup %3641  ;;  %2783 = vst [vmem:[%s4685_s30 + $0x298] sm:$0xff] %v2655_v5  ;;  %v2658_v50 = vadd.f32 %v3640_v20, %v5128_v49  ;;  %3661 = vpow2.f32 %v2508_v29  ;;  %v2288_v21 = vmin.f32 %v1890_v44, 0.0  ;;  %v2147_v57 = vpop.f32.mrb[114].mxu1  ;;  %v5136_v0 = vld [vmem:[#allocation56_spill] sm:$0xff] }
 0x207   : > { %v2514_v24 = vmul.f32 1.442695, %v2287_v45  ;;  %v1892_v25 = vpop.f32.mrb[115].mxu0  ;;  %v3644_v10 = vpop.eup %3643  ;;  %2784 = vst [vmem:[%s4685_s30 + $0x2a0] sm:$0xff] %v2656_v17  ;;  %v2657_v61 = vadd.f32 %v3642_v43, %v5129_v56  ;;  %3663 = vpow2.f32 %v2512_v39  ;;  %v2290_v26 = vmin.f32 %v2147_v57, 0.0  ;;  %v5137_v29 = vld [vmem:[#allocation57_spill] sm:$0xff] }
 0x208   : > { %v2289_v31 = vmin.f32 %v1892_v25, 0.0  ;;  %v2149_v54 = vpop.f32.mrb[115].mxu1  ;;  %v3646_v12 = vpop.eup %3645  ;;  %2786 = vst [vmem:[%s4685_s30 + $0x2b0] sm:$0xff] %v2658_v50  ;;  %v2659_v7 = vadd.f32 %v3644_v10, %v5130_v1  ;;  %3665 = vpow2.f32 %v2510_v14  ;;  %v2516_v33 = vmul.f32 1.442695, %v2288_v21  ;;  %v5138_v14 = vld [vmem:[#allocation58_spill] sm:$0xff] }
 0x209   : > { %v2291_v28 = vmin.f32 %v2149_v54, 0.0  ;;  %v3648_v38 = vpop.eup %3647  ;;  %2785 = vst [vmem:[%s4685_s30 + $0x2a8] sm:$0xff] %v2657_v61  ;;  %v2660_v59 = vadd.f32 %v3646_v12, %v5131_v8  ;;  %3667 = vpow2.f32 %v2514_v24  ;;  %v2520_v40 = vmul.f32 1.442695, %v2290_v26  ;;  %v1896_v36 = vpop.f32.mrb[116].mxu0  ;;  %v5139_v24 = vld [vmem:[#allocation59_spill] sm:$0xff] }
 0x20a   : > { %v2518_v30 = vmul.f32 1.442695, %v2289_v31  ;;  %v3650_v41 = vpop.eup %3649  ;;  %2787 = vst [vmem:[%s4685_s30 + $0x2b8] sm:$0xff] %v2659_v7  ;;  %v2662_v48 = vadd.f32 %v3648_v38, %v5132_v11  ;;  %3669 = vpow2.f32 %v2516_v33  ;;  %v2292_v62 = vmin.f32 %v1896_v36, 0.0  ;;  %v2153_v51 = vpop.f32.mrb[116].mxu1  ;;  %v5140_v61 = vld [vmem:[#allocation60_spill] sm:$0xff] }
 0x20b   : > { %v2522_v32 = vmul.f32 1.442695, %v2291_v28  ;;  %v1898_v47 = vpop.f32.mrb[117].mxu0  ;;  %v3652_v52 = vpop.eup %3651  ;;  %2788 = vst [vmem:[%s4685_s30 + $0x2c0] sm:$0xff] %v2660_v59  ;;  %v2661_v6 = vadd.f32 %v3650_v41, %v5133_v63  ;;  %3671 = vpow2.f32 %v2520_v40  ;;  %v2294_v22 = vmin.f32 %v2153_v51, 0.0  ;;  %v5141_v33 = vld [vmem:[#allocation61_spill] sm:$0xff] }
 0x20c   : > { %v2293_v2 = vmin.f32 %v1898_v47, 0.0  ;;  %v2155_v58 = vpop.f32.mrb[117].mxu1  ;;  %v3654_v53 = vpop.eup %3653  ;;  %2790 = vst [vmem:[%s4685_s30 + $0x2d0] sm:$0xff] %v2662_v48  ;;  %v2663_v23 = vadd.f32 %v3652_v52, %v5134_v37  ;;  %3673 = vpow2.f32 %v2518_v30  ;;  %v2524_v46 = vmul.f32 1.442695, %v2292_v62  ;;  %v5142_v30 = vld [vmem:[#allocation62_spill] sm:$0xff] }
 0x20d   : > { %v2295_v4 = vmin.f32 %v2155_v58, 0.0  ;;  %v3656_v34 = vpop.eup %3655  ;;  %2789 = vst [vmem:[%s4685_s30 + $0x2c8] sm:$0xff] %v2661_v6  ;;  %v2664_v9 = vadd.f32 %v3654_v53, %v5135_v60  ;;  %3675 = vpow2.f32 %v2522_v32  ;;  %v2528_v15 = vmul.f32 1.442695, %v2294_v22  ;;  %v1902_v42 = vpop.f32.mrb[118].mxu0  ;;  %v5143_v32 = vld [vmem:[#allocation63_spill] sm:$0xff] }
 0x20e   : > { %v2526_v13 = vmul.f32 1.442695, %v2293_v2  ;;  %v3658_v55 = vpop.eup %3657  ;;  %2791 = vst [vmem:[%s4685_s30 + $0x2d8] sm:$0xff] %v2663_v23  ;;  %v2666_v35 = vadd.f32 %v3656_v34, %v5136_v0  ;;  %3677 = vpow2.f32 %v2524_v46  ;;  %v2296_v16 = vmin.f32 %v1902_v42, 0.0  ;;  %v2159_v3 = vpop.f32.mrb[118].mxu1  ;;  %v5144_v6 = vld [vmem:[#allocation64_spill] sm:$0xff] }
 0x20f   : > { %v2530_v18 = vmul.f32 1.442695, %v2295_v4  ;;  %v1904_v27 = vpop.f32.mrb[119].mxu0  ;;  %v3660_v5 = vpop.eup %3659  ;;  %2792 = vst [vmem:[%s4685_s30 + $0x2e0] sm:$0xff] %v2664_v9  ;;  %v2665_v45 = vadd.f32 %v3658_v55, %v5137_v29  ;;  %3679 = vpow2.f32 %v2528_v15  ;;  %v2298_v20 = vmin.f32 %v2159_v3, 0.0  ;;  %v5145_v46 = vld [vmem:[#allocation65_spill] sm:$0xff] }
 0x210   : > { %v2297_v19 = vmin.f32 %v1904_v27, 0.0  ;;  %v2161_v17 = vpop.f32.mrb[119].mxu1  ;;  %v3662_v39 = vpop.eup %3661  ;;  %2794 = vst [vmem:[%s4685_s30 + $0x2f0] sm:$0xff] %v2666_v35  ;;  %v2667_v44 = vadd.f32 %v3660_v5, %v5138_v14  ;;  %3681 = vpow2.f32 %v2526_v13  ;;  %v2532_v43 = vmul.f32 1.442695, %v2296_v16  ;;  %v5146_v13 = vld [vmem:[#allocation66_spill] sm:$0xff] }
 0x211   : > { %v2299_v49 = vmin.f32 %v2161_v17, 0.0  ;;  %v3664_v50 = vpop.eup %3663  ;;  %2793 = vst [vmem:[%s4685_s30 + $0x2e8] sm:$0xff] %v2665_v45  ;;  %v2668_v21 = vadd.f32 %v3662_v39, %v5139_v24  ;;  %3683 = vpow2.f32 %v2530_v18  ;;  %v2536_v57 = vmul.f32 1.442695, %v2298_v20  ;;  %v1908_v10 = vpop.f32.mrb[120].mxu0  ;;  %v5147_v18 = vld [vmem:[#allocation67_spill] sm:$0xff] }
 0x212   : > { %v2534_v25 = vmul.f32 1.442695, %v2297_v19  ;;  %v3666_v56 = vpop.eup %3665  ;;  %2795 = vst [vmem:[%s4685_s30 + $0x2f8] sm:$0xff] %v2667_v44  ;;  %v2670_v26 = vadd.f32 %v3664_v50, %v5140_v61  ;;  %3685 = vpow2.f32 %v2532_v43  ;;  %v2300_v54 = vmin.f32 %v1908_v10, 0.0  ;;  %v2165_v12 = vpop.f32.mrb[120].mxu1  ;;  %v5148_v45 = vld [vmem:[#allocation68_spill] sm:$0xff] }
 0x213   : > { %v2538_v31 = vmul.f32 1.442695, %v2299_v49  ;;  %v1910_v1 = vpop.f32.mrb[121].mxu0  ;;  %v3668_v7 = vpop.eup %3667  ;;  %2796 = vst [vmem:[%s4685_s30 + $0x300] sm:$0xff] %v2668_v21  ;;  %v2669_v28 = vadd.f32 %v3666_v56, %v5141_v33  ;;  %3687 = vpow2.f32 %v2536_v57  ;;  %v2302_v38 = vmin.f32 %v2165_v12, 0.0  ;;  %v5149_v43 = vld [vmem:[#allocation69_spill] sm:$0xff] }
 0x214   : > { %v2301_v8 = vmin.f32 %v1910_v1, 0.0  ;;  %v2167_v59 = vpop.f32.mrb[121].mxu1  ;;  %v3670_v40 = vpop.eup %3669  ;;  %2798 = vst [vmem:[%s4685_s30 + $0x310] sm:$0xff] %v2670_v26  ;;  %v2671_v36 = vadd.f32 %v3668_v7, %v5142_v30  ;;  %3689 = vpow2.f32 %v2534_v25  ;;  %v2540_v41 = vmul.f32 1.442695, %v2300_v54  ;;  %v5150_v25 = vld [vmem:[#allocation70_spill] sm:$0xff] }
 0x215   : > { %v2303_v11 = vmin.f32 %v2167_v59, 0.0  ;;  %v3672_v48 = vpop.eup %3671  ;;  %2797 = vst [vmem:[%s4685_s30 + $0x308] sm:$0xff] %v2669_v28  ;;  %v2672_v62 = vadd.f32 %v3670_v40, %v5143_v32  ;;  %3691 = vpow2.f32 %v2538_v31  ;;  %v2544_v51 = vmul.f32 1.442695, %v2302_v38  ;;  %v1914_v52 = vpop.f32.mrb[122].mxu0  ;;  %v5151_v31 = vld [vmem:[#allocation71_spill] sm:$0xff] }
 0x216   : > { %v2542_v47 = vmul.f32 1.442695, %v2301_v8  ;;  %v3674_v63 = vpop.eup %3673  ;;  %2799 = vst [vmem:[%s4685_s30 + $0x318] sm:$0xff] %v2671_v36  ;;  %v2674_v22 = vadd.f32 %v3672_v48, %v5144_v6  ;;  %3693 = vpow2.f32 %v2540_v41  ;;  %v2304_v58 = vmin.f32 %v1914_v52, 0.0  ;;  %v2171_v53 = vpop.f32.mrb[122].mxu1  ;;  %v5152_v28 = vld [vmem:[#allocation72_spill] sm:$0xff] }
 0x217   : > { %v2546_v2 = vmul.f32 1.442695, %v2303_v11  ;;  %v1916_v37 = vpop.f32.mrb[123].mxu0  ;;  %v3676_v23 = vpop.eup %3675  ;;  %2800 = vst [vmem:[%s4685_s30 + $0x320] sm:$0xff] %v2672_v62  ;;  %v2673_v4 = vadd.f32 %v3674_v63, %v5145_v46  ;;  %3695 = vpow2.f32 %v2544_v51  ;;  %v2306_v34 = vmin.f32 %v2171_v53, 0.0  ;;  %v5153_v41 = vld [vmem:[#allocation73_spill] sm:$0xff] }
 0x218   : > { %v2305_v60 = vmin.f32 %v1916_v37, 0.0  ;;  %v2173_v9 = vpop.f32.mrb[123].mxu1  ;;  %v3678_v15 = vpop.eup %3677  ;;  %2802 = vst [vmem:[%s4685_s30 + $0x330] sm:$0xff] %v2674_v22  ;;  %v2675_v42 = vadd.f32 %v3676_v23, %v5146_v13  ;;  %3697 = vpow2.f32 %v2542_v47  ;;  %v2548_v55 = vmul.f32 1.442695, %v2304_v58  ;;  %v5154_v47 = vld [vmem:[#allocation74_spill] sm:$0xff] }
 0x219   : > { %v2307_v0 = vmin.f32 %v2173_v9, 0.0  ;;  %v3680_v35 = vpop.eup %3679  ;;  %2801 = vst [vmem:[%s4685_s30 + $0x328] sm:$0xff] %v2673_v4  ;;  %v2676_v16 = vadd.f32 %v3678_v15, %v5147_v18  ;;  %3699 = vpow2.f32 %v2546_v2  ;;  %v2552_v3 = vmul.f32 1.442695, %v2306_v34  ;;  %v1920_v5 = vpop.f32.mrb[124].mxu0  ;;  %v5155_v2 = vld [vmem:[#allocation75_spill] sm:$0xff] }
 0x21a   : > { %v2550_v27 = vmul.f32 1.442695, %v2305_v60  ;;  %v3682_v29 = vpop.eup %3681  ;;  %2803 = vst [vmem:[%s4685_s30 + $0x338] sm:$0xff] %v2675_v42  ;;  %v2678_v20 = vadd.f32 %v3680_v35, %v5148_v45  ;;  %3701 = vpow2.f32 %v2548_v55  ;;  %v2308_v17 = vmin.f32 %v1920_v5, 0.0  ;;  %v2177_v39 = vpop.f32.mrb[124].mxu1  ;;  %v5156_v46 = vld [vmem:[#allocation76_spill] sm:$0xff] }
 0x21b   : > { %v2554_v19 = vmul.f32 1.442695, %v2307_v0  ;;  %v1922_v14 = vpop.f32.mrb[125].mxu0  ;;  %v3684_v44 = vpop.eup %3683  ;;  %2804 = vst [vmem:[%s4685_s30 + $0x340] sm:$0xff] %v2676_v16  ;;  %v2677_v49 = vadd.f32 %v3682_v29, %v5149_v43  ;;  %3703 = vpow2.f32 %v2552_v3  ;;  %v2310_v50 = vmin.f32 %v2177_v39, 0.0  ;;  %v5157_v9 = vld [vmem:[#allocation77_spill] sm:$0xff] }
 0x21c   : > { %v2309_v24 = vmin.f32 %v1922_v14, 0.0  ;;  %v2179_v21 = vpop.f32.mrb[125].mxu1  ;;  %v3686_v57 = vpop.eup %3685  ;;  %2806 = vst [vmem:[%s4685_s30 + $0x350] sm:$0xff] %v2678_v20  ;;  %v2679_v10 = vadd.f32 %v3684_v44, %v5150_v25  ;;  %3705 = vpow2.f32 %v2550_v27  ;;  %v2556_v56 = vmul.f32 1.442695, %v2308_v17  ;;  %v5158_v42 = vld [vmem:[#allocation78_spill] sm:$0xff] }
 0x21d   : > { %v2311_v61 = vmin.f32 %v2179_v21, 0.0  ;;  %v3688_v26 = vpop.eup %3687  ;;  %2805 = vst [vmem:[%s4685_s30 + $0x348] sm:$0xff] %v2677_v49  ;;  %v2680_v54 = vadd.f32 %v3686_v57, %v5151_v31  ;;  %3707 = vpow2.f32 %v2554_v19  ;;  %v2560_v12 = vmul.f32 1.442695, %v2310_v50  ;;  %v1926_v7 = vpop.f32.mrb[126].mxu0  ;;  %v5159_v35 = vld [vmem:[#allocation79_spill] sm:$0xff] }
 0x21e   : > { %v2558_v1 = vmul.f32 1.442695, %v2309_v24  ;;  %v3690_v33 = vpop.eup %3689  ;;  %2807 = vst [vmem:[%s4685_s30 + $0x358] sm:$0xff] %v2679_v10  ;;  %v2682_v38 = vadd.f32 %v3688_v26, %v5152_v28  ;;  %3709 = vpow2.f32 %v2556_v56  ;;  %v2312_v59 = vmin.f32 %v1926_v7, 0.0  ;;  %v2183_v40 = vpop.f32.mrb[126].mxu1  ;;  %v5160_v3 = vld [vmem:[#allocation80_spill] sm:$0xff] }
 0x21f   : > { %v2562_v8 = vmul.f32 1.442695, %v2311_v61  ;;  %v1928_v30 = vpop.f32.mrb[127].mxu0  ;;  %v3692_v36 = vpop.eup %3691  ;;  %2808 = vst [vmem:[%s4685_s30 + $0x360] sm:$0xff] %v2680_v54  ;;  %v2681_v11 = vadd.f32 %v3690_v33, %v5153_v41  ;;  %3711 = vpow2.f32 %v2560_v12  ;;  %v2314_v48 = vmin.f32 %v2183_v40, 0.0  ;;  %v5161_v29 = vld [vmem:[#allocation81_spill] sm:$0xff] }
 0x220   : > { %v2313_v32 = vmin.f32 %v1928_v30, 0.0  ;;  %v2185_v62 = vpop.f32.mrb[127].mxu1  ;;  %v3694_v51 = vpop.eup %3693  ;;  %2810 = vst [vmem:[%s4685_s30 + $0x370] sm:$0xff] %v2682_v38  ;;  %v2683_v52 = vadd.f32 %v3692_v36, %v5154_v47  ;;  %3713 = vpow2.f32 %v2558_v1  ;;  %v2564_v63 = vmul.f32 1.442695, %v2312_v59  ;;  %v5162_v19 = vld [vmem:[#allocation82_spill] sm:$0xff] }
 0x221   : > { %v2315_v6 = vmin.f32 %v2185_v62, 0.0  ;;  %v3696_v22 = vpop.eup %3695  ;;  %2809 = vst [vmem:[%s4685_s30 + $0x368] sm:$0xff] %v2681_v11  ;;  %v2684_v58 = vadd.f32 %v3694_v51, %v5155_v2  ;;  %3715 = vpow2.f32 %v2562_v8  ;;  %v2568_v53 = vmul.f32 1.442695, %v2314_v48  ;;  %v5163_v14 = vld [vmem:[#allocation83_spill] sm:$0xff]  ;;  %v5164_v49 = vld [vmem:[#allocation84_spill] sm:$0xff] }
 0x222   : > { %v2566_v37 = vmul.f32 1.442695, %v2313_v32  ;;  %v3698_v23 = vpop.eup %3697  ;;  %2811 = vst [vmem:[%s4685_s30 + $0x378] sm:$0xff] %v2683_v52  ;;  %v2686_v4 = vadd.f32 %v3696_v22, %v5156_v46  ;;  %3717 = vpow2.f32 %v2564_v63  ;;  %v5165_v21 = vld [vmem:[#allocation85_spill] sm:$0xff]  ;;  %v5166_v10 = vld [vmem:[#allocation86_spill] sm:$0xff]  ;;  %v5167_v26 = vld [vmem:[#allocation87_spill] sm:$0xff] }
 0x223   : > { %v2570_v34 = vmul.f32 1.442695, %v2315_v6  ;;  %v3700_v60 = vpop.eup %3699  ;;  %2812 = vst [vmem:[%s4685_s30 + $0x380] sm:$0xff] %v2684_v58  ;;  %v2685_v15 = vadd.f32 %v3698_v23, %v5157_v9  ;;  %3719 = vpow2.f32 %v2568_v53  ;;  %v5168_v12 = vld [vmem:[#allocation88_spill] sm:$0xff]  ;;  %v5169_v33 = vld [vmem:[#allocation89_spill] sm:$0xff]  ;;  %v5170_v38 = vld [vmem:[#allocation90_spill] sm:$0xff] }
 0x224   : > { %v3702_v13 = vpop.eup %3701  ;;  %2814 = vst [vmem:[%s4685_s30 + $0x390] sm:$0xff] %v2686_v4  ;;  %v2687_v55 = vadd.f32 %v3700_v60, %v5158_v42  ;;  %3721 = vpow2.f32 %v2566_v37 }
 0x225   : > { %v3704_v0 = vpop.eup %3703  ;;  %2813 = vst [vmem:[%s4685_s30 + $0x388] sm:$0xff] %v2685_v15  ;;  %v2688_v18 = vadd.f32 %v3702_v13, %v5159_v35  ;;  %3723 = vpow2.f32 %v2570_v34 }
 0x226   : > { %v3706_v16 = vpop.eup %3705  ;;  %2815 = vst [vmem:[%s4685_s30 + $0x398] sm:$0xff] %v2687_v55  ;;  %v2690_v27 = vadd.f32 %v3704_v0, %v5160_v3 }
 0x227   : > { %v3708_v5 = vpop.eup %3707  ;;  %2816 = vst [vmem:[%s4685_s30 + $0x3a0] sm:$0xff] %v2688_v18  ;;  %v2689_v45 = vadd.f32 %v3706_v16, %v5161_v29 }
 0x228   : > { %v3710_v20 = vpop.eup %3709  ;;  %2818 = vst [vmem:[%s4685_s30 + $0x3b0] sm:$0xff] %v2690_v27  ;;  %v2691_v17 = vadd.f32 %v3708_v5, %v5162_v19 }
 0x229   : > { %v3712_v39 = vpop.eup %3711  ;;  %2817 = vst [vmem:[%s4685_s30 + $0x3a8] sm:$0xff] %v2689_v45  ;;  %v2692_v44 = vadd.f32 %v3710_v20, %v5163_v14 }
 0x22a   : > { %v3714_v43 = vpop.eup %3713  ;;  %2819 = vst [vmem:[%s4685_s30 + $0x3b8] sm:$0xff] %v2691_v17  ;;  %v2694_v50 = vadd.f32 %v3712_v39, %v5164_v49 }
 0x22b   : > { %v3716_v24 = vpop.eup %3715  ;;  %2820 = vst [vmem:[%s4685_s30 + $0x3c0] sm:$0xff] %v2692_v44  ;;  %v2693_v57 = vadd.f32 %v3714_v43, %v5165_v21 }
 0x22c   : > { %v3718_v25 = vpop.eup %3717  ;;  %2822 = vst [vmem:[%s4685_s30 + $0x3d0] sm:$0xff] %v2694_v50  ;;  %v2695_v56 = vadd.f32 %v3716_v24, %v5166_v10 }
 0x22d   : > { %v3720_v61 = vpop.eup %3719  ;;  %2821 = vst [vmem:[%s4685_s30 + $0x3c8] sm:$0xff] %v2693_v57  ;;  %v2696_v31 = vadd.f32 %v3718_v25, %v5167_v26 }
 0x22e   : > { %v3722_v54 = vpop.eup %3721  ;;  %2823 = vst [vmem:[%s4685_s30 + $0x3d8] sm:$0xff] %v2695_v56  ;;  %v2698_v1 = vadd.f32 %v3720_v61, %v5168_v12 }
 0x22f   : > { %v3724_v7 = vpop.eup %3723  ;;  %2824 = vst [vmem:[%s4685_s30 + $0x3e0] sm:$0xff] %v2696_v31  ;;  %v2697_v28 = vadd.f32 %v3722_v54, %v5169_v33 }
 0x230   : > { %2826 = vst [vmem:[%s4685_s30 + $0x3f0] sm:$0xff] %v2698_v1  ;;  %v2699_v8 = vadd.f32 %v3724_v7, %v5170_v38 }
 0x231   : > { %2825 = vst [vmem:[%s4685_s30 + $0x3e8] sm:$0xff] %v2697_v28 }
 0x232   : > { %2827 = vst [vmem:[%s4685_s30 + $0x3f8] sm:$0xff] %v2699_v8 }
 0x233   : > { %3738 = shalt.err (!%p3735_p7)
}
 0x234   : > { %s3739_s24 = scalar_lea.hbm %s4942_s12, 16384  ;;  %s3743_s28 = scalar_lea.hbm %s4998_s2, 65536 }
 0x235   : > { %p3740_p8 = scmp.ne.s32.totalorder %s4942_s12, %s3739_s24  ;;  %p3744_p12 = scmp.lt.u32.totalorder %s4942_s12, %s4998_s2 }
 0x236   : > { %p3745_p13 = scmp.lt.u32.totalorder %s3743_s28, %s3739_s24  ;;  %p3747_p1 = scmp.lt.u32.totalorder %s3739_s24, %s4942_s12 }
 0x237   : > { %p3741_p10 = pnand %p3740_p8, %p3863_p5 }
 0x238   : > { %p3746_p0 = por %p3745_p13, %p3744_p12 }
 0x239   : > { %p3742_p11 = pneg %p3741_p10 }
 0x23a   : > { %p3748_p2 = por %p3747_p1, %p3746_p0 }
 0x23c   : > { %p3749_p3 = pnand %p3748_p2, %p3742_p11 }
 0x23e   : > { %3752 = shalt.err (!%p3749_p3)
}
 0x23f   : > { %s3807_s18 = smov 512   ;;  %s3808_s30 = smov 32  }
 0x240   : > { %3155 = dma.vmem_to_hbm [thread:$0]  (%p3863_p5), %s4944_s4, 16384, %s4942_s12, %s2829_s7, %s3807_s18, %s3807_s18, %s3808_s30  }
 0x241 PF: > { %p3161_p4 = scmp.ge.s32.totalorder %s3803_s14, 2  ;;  %s2860_s3 = sand.u32 1, %s3783_s9  }
 0x242   : > { %s2861_s5 = scalar_lea.sflag [#allocation4], %s2860_s3 }
 0x243   : > { %p3158_p6 = pnand %p3161_p4, %p3874_p9 }
 0x245   : > { %3778 = dma.done.wait (!%p3158_p6), %s2861_s5, 16384  }
 0x246   : > { %3780 = vsyncadd (!%p3158_p6), %s2861_s5, 4294950912  ;;  %s15_s14 = sadd.s32 1, %s3803_s14   ;;  %s5171_s9 = smov %s3787_s10 }
 0x247   : > { %p12_p7 = scmp.ge.s32.totalorder %s15_s14, 6   ;;  %s5172_s10 = smov %s3791_s11 }
 0x248   : > { %s5173_s11 = smov %s3872_s21  ;;  %s5174_s12 = smov %s3799_s13 }
 0x249   : > { %s5175_s13 = smov %s5177_s17  ;;  %14 = sbr.rel (!%p12_p7) target bundleno = 4 (0x4), region = 111 }
 0x250   :  { %2866 = vsyncpa [#allocation4], 1 }
 0x251   :  { %2868 = vsyncpa [#allocation4 + $0x1], 1 }

</bundles_post_ra>
